<compile_context>
chip_gen: v7x
topology: tpu7x:2x2x1
jax: 0.10.0
libtpu: 0.0.40
codegen_flags: <defaults>
</compile_context>

<pallas_src>
import numpy as np
import jax
import jax.numpy as jnp
from jax import lax
from jax.experimental import pallas as pl
from jax.experimental.pallas import tpu as pltpu

IMPOSSIBLE = -1e4   # const.IMPOSSIBLE in the reference code
SUB = 8             # TPU sublane count


def _round_up(x, m):
    return (x + m - 1) // m * m


def _pick_batch_tile(B):
    """Batch lives on lanes: tile must be a multiple of 128 or the full batch
    (BlockSpec lane rule).  Prefer >=2 blocks so v7x megacore can shard the
    'parallel' batch axis (review item 9)."""
    if B >= 256 and B % 128 == 0:
        return 128
    return B


def _pick_time_tile(L, BT, F, C8, cap=32, budget=16 * 1024 * 1024):
    """Largest divisor of L <= cap whose double-buffered blocks
    (features + mask + bps) plus the emission slab stay within ~budget bytes
    (keeps v7x's 64 MiB physical VMEM safe; review items 5 & 6)."""
    per_t = 2 * BT * 4 * (F + 1 + C8) + BT * 4 * C8
    max_tl = max(1, min(cap, budget // max(per_t, 1)))
    for t in range(min(L, max_tl), 0, -1):
        if L % t == 0:
            return t
    return 1


# ----------------------------------------------------------------------------
# Fused FC + Viterbi-forward kernel (tags on sublanes, batch on lanes)
# ----------------------------------------------------------------------------
def _make_crf_kernel(TL, BT, F, C, C8, start_idx):
    def kernel(flags_ref, x_ref, mask_ref, w_ref, b_ref, trans_ref, stop_ref,
               bps_ref, final_ref, ms_ref):
        # flags_ref: [nb, nt] int32 (SMEM, scalar prefetch) block liveness
        # x_ref    : [TL, BT, F]   time-major features
        # mask_ref : [TL, 1, BT]   float mask
        # w_ref    : [C8, F]       FC weight (padded rows = 0)
        # b_ref    : [C8, 1]       FC bias   (padded rows = IMPOSSIBLE)
        # trans_ref: [C8, C8]      transitions (padded rows/cols = IMPOSSIBLE)
        # stop_ref : [C8, 1]       transitions[stop_idx, :] as a column
        # bps_ref  : [TL, C8, BT]  int32 back-pointers (out)
        # final_ref: [C8, BT]      final scores incl. stop transition (out)
        # ms_ref   : [C8, BT]      VMEM scratch carrying the recursion
        ib = pl.program_id(0)
        it = pl.program_id(1)

        @pl.when(it == 0)
        def _init():
            row = lax.broadcasted_iota(jnp.int32, (C8, BT), 0)
            ms_ref[...] = jnp.where(row == start_idx,
                                    jnp.float32(0.0),
                                    jnp.float32(IMPOSSIBLE))

        # Skip time blocks in which every row of this batch tile is masked
        # (their bps entries are never read by the backtrace).
        @pl.when(flags_ref[ib, it] != 0)
        def _work():
            # Hoisted, fused nn.Linear: one block-sized MXU call.
            #   emit_T[c, t*BT + b] = sum_f W[c, f] * x[t, b, f] + bias[c]
            x2d = x_ref[...].reshape(TL * BT, F)
            emit_T = lax.dot_general(
                w_ref[...], x2d,
                dimension_numbers=(((1,), (1,)), ((), ())),
                preferred_element_type=jnp.float32) + b_ref[...]   # [C8, TL*BT]

            trans = trans_ref[...]                    # [C8, C8]
            ms = ms_ref[...]                          # [C8, BT]

            # Static unrolled time recursion; the per-step body is ~C vreg-ops
            # so live-range pressure stays tiny.
            for t in range(TL):
                emit_t = emit_T[:, t * BT:(t + 1) * BT]        # [C8, BT]
                mask_t = mask_ref[t]                           # [1, BT]

                # Single fused max + argmax pass over the C REAL source tags:
                #   cand_j[i, b] = ms[j, b] + trans[i, j]
                best = ms[0:1, :] + trans[:, 0:1]              # [C8, BT]
                bp = jnp.zeros((C8, BT), jnp.int32)
                for j in range(1, C):
                    cand = ms[j:j + 1, :] + trans[:, j:j + 1]
                    take = cand > best                         # first-max ties
                    best = jnp.where(take, cand, best)
                    bp = jnp.where(take, j, bp)

                bps_ref[t] = bp
                ms = jnp.where(mask_t > 0.0, best + emit_t, ms)

            ms_ref[...] = ms

        @pl.when(it == pl.num_programs(1) - 1)
        def _finalize():
            final_ref[...] = ms_ref[...] + stop_ref[...]

    return kernel


def crf_viterbi_fused(features_tm, masks_l1b, flags, w8, b_col, trans8,
                      stop_col, start_idx, num_real_tags, *, TL, BT):
    """features_tm: [L, B, F]; masks_l1b: [L, 1, B]; flags: [nb, nt] int32.
    Returns (bps [L, C8, B] int32, final [C8, B] f32)."""
    L, B, F = features_tm.shape
    C8 = trans8.shape[0]
    C = num_real_tags
    nb, nt = B // BT, L // TL

    kernel = _make_crf_kernel(TL, BT, F, C, C8, start_idx)

    flops = 2 * B * L * F * C8 + 6 * B * L * C * C8
    bytes_accessed = 4 * (L * B * F + L * B + C8 * (F + C8 + 2)
                          + L * C8 * B + C8 * B)

    bps, final = pl.pallas_call(
        kernel,
        out_shape=(
            jax.ShapeDtypeStruct((L, C8, B), jnp.int32),   # back-pointers
            jax.ShapeDtypeStruct((C8, B), jnp.float32),    # final scores
        ),
        grid_spec=pltpu.PrefetchScalarGridSpec(
            num_scalar_prefetch=1,
            grid=(nb, nt),
            in_specs=[
                pl.BlockSpec((TL, BT, F), lambda ib, it, fl: (it, ib, 0)),
                pl.BlockSpec((TL, 1, BT), lambda ib, it, fl: (it, 0, ib)),
                pl.BlockSpec((C8, F), lambda ib, it, fl: (0, 0)),
                pl.BlockSpec((C8, 1), lambda ib, it, fl: (0, 0)),
                pl.BlockSpec((C8, C8), lambda ib, it, fl: (0, 0)),
                pl.BlockSpec((C8, 1), lambda ib, it, fl: (0, 0)),
            ],
            out_specs=(
                pl.BlockSpec((TL, C8, BT), lambda ib, it, fl: (it, 0, ib)),
                pl.BlockSpec((C8, BT), lambda ib, it, fl: (0, ib)),
            ),
            scratch_shapes=[pltpu.VMEM((C8, BT), jnp.float32)],
        ),
        compiler_params=pltpu.CompilerParams(
            dimension_semantics=("parallel", "arbitrary"),
            vmem_limit_bytes=48 * 1024 * 1024,
        ),
        cost_estimate=pl.CostEstimate(
            flops=flops, transcendentals=0, bytes_accessed=bytes_accessed),
    )(flags, features_tm, masks_l1b, w8, b_col, trans8, stop_col)
    return bps, final


# ----------------------------------------------------------------------------
# On-device backtrace: only [B, L] int paths cross to the host.
# ----------------------------------------------------------------------------
def _backtrace_device(bps, best_tag, lengths):
    """bps: [L, C8, B] int32; best_tag, lengths: [B] int32 -> paths [B, L]."""
    L = bps.shape[0]

    def step(tag, xs):
        t, bps_t = xs                                   # bps_t: [C8, B]
        tag = jnp.where(t == lengths - 1, best_tag, tag)
        nxt = jnp.take_along_axis(bps_t, tag[None, :], axis=0)[0]
        return nxt, tag

    ts = jnp.arange(L, dtype=jnp.int32)
    _, outs = lax.scan(step, best_tag, (ts, bps), reverse=True)   # [L, B]
    return outs.T                                                 # [B, L]


# ----------------------------------------------------------------------------
# CRF module (forward pass == Viterbi decode)
# ----------------------------------------------------------------------------
class CRF:
    def __init__(self, in_feature, num_tags, key):
        self.num_tags = num_tags + 2
        self.start_idx = self.num_tags - 2
        self.stop_idx = self.num_tags - 1
        C, F = self.num_tags, in_feature
        self.in_feature = F
        kw, kb, kt = jax.random.split(key, 3)
        bound = 1.0 / np.sqrt(F)
        # nn.Linear(F, C): weight [C, F], bias [C]
        self.w_fc = jax.random.uniform(kw, (C, F), jnp.float32, -bound, bound)
        self.b_fc = jax.random.uniform(kb, (C,), jnp.float32, -bound, bound)
        trans = jax.random.normal(kt, (C, C), jnp.float32)
        trans = trans.at[self.start_idx, :].set(IMPOSSIBLE)
        trans = trans.at[:, self.stop_idx].set(IMPOSSIBLE)
        self.transitions = trans

        # ---- sublane-padded parameters (tag dim -> multiple of 8) ----------
        # Padded transition rows/cols and padded bias lanes are IMPOSSIBLE so
        # the max/argmax can never select a padded tag (same soft -inf as the
        # reference).
        self.C8 = _round_up(C, SUB)
        self.w8 = (jnp.zeros((self.C8, F), jnp.float32)
                   .at[:C, :].set(self.w_fc))
        self.b_col = (jnp.full((self.C8, 1), IMPOSSIBLE, jnp.float32)
                      .at[:C, 0].set(self.b_fc))
        self.trans8 = (jnp.full((self.C8, self.C8), IMPOSSIBLE, jnp.float32)
                       .at[:C, :C].set(trans))
        self.stop_col = (jnp.full((self.C8, 1), IMPOSSIBLE, jnp.float32)
                         .at[:C, 0].set(trans[self.stop_idx, :]))

    def forward(self, features, masks):
        """features: [B, L, F] float32, masks: [B, L] (0/1)
        returns (best_score [B], best_paths: list of B lists of length seq_len)
        """
        B, L, F = features.shape
        C, C8 = self.num_tags, self.C8
        masks_f = masks[:, :L].astype(jnp.float32)            # [B, L]

        # time-major layouts: batch on lanes, time blocked by the grid
        features_tm = jnp.transpose(features, (1, 0, 2))       # [L, B, F]
        masks_l1b = jnp.transpose(masks_f)[:, None, :]         # [L, 1, B]

        BT = _pick_batch_tile(B)
        TL = _pick_time_tile(L, BT, F, C8)
        nb, nt = B // BT, L // TL
        # per-(batch-block, time-block) liveness flags -> scalar prefetch
        flags = (masks_f.reshape(nb, BT, nt, TL).max(axis=(1, 3)) > 0
                 ).astype(jnp.int32)

        bps, final = crf_viterbi_fused(
            features_tm, masks_l1b, flags, self.w8, self.b_col, self.trans8,
            self.stop_col, self.start_idx, C, TL=TL, BT=BT)

        final_real = final[:C, :]                              # [C, B]
        best_score = jnp.max(final_real, axis=0)               # [B]
        best_tag = jnp.argmax(final_real, axis=0).astype(jnp.int32)

        lengths = jnp.sum(masks_f, axis=1).astype(jnp.int32)   # [B]
        paths = _backtrace_device(bps, best_tag, lengths)      # [B, L]

        # host side: only ragged slicing remains (reference returns ragged
        # Python lists, which has no dense device equivalent)
        paths_np = np.asarray(paths)
        lens_np = np.asarray(lengths)
        best_paths = [paths_np[b, :int(lens_np[b])].tolist() for b in range(B)]
        return best_score, best_paths


# ----------------------------------------------------------------------------
# numpy references (sanity checks)
# ----------------------------------------------------------------------------
def numpy_reference_best_score(features, masks, w_fc, b_fc, transitions,
                               start_idx, stop_idx):
    feats = features @ w_fc.T + b_fc            # [B, L, C]
    B, L, C = feats.shape
    masks = masks[:, :L].astype(np.float32)
    max_score = np.full((B, C), IMPOSSIBLE, np.float32)
    max_score[:, start_idx] = 0.0
    for t in range(L):
        mask_t = masks[:, t][:, None]
        emit = feats[:, t]
        acc = max_score[:, None, :] + transitions[None, :, :]
        acc_max = acc.max(-1) + emit
        max_score = acc_max * mask_t + max_score * (1.0 - mask_t)
    max_score = max_score + transitions[stop_idx]
    return max_score.max(-1)


def numpy_path_score(path, b, feats, transitions, start_idx, stop_idx):
    """Score of a decoded tag path (emissions + transitions + stop)."""
    score, prev = 0.0, start_idx
    for t, tag in enumerate(path):
        score += feats[b, t, tag] + transitions[tag, prev]
        prev = tag
    return score + transitions[stop_idx, prev]


if __name__ == "__main__":
    B, L, F, num_tags = 2, 16, 32, 5     # C = num_tags + 2 = 7, C8 = 8

    key = jax.random.PRNGKey(0)
    k_param, k_feat = jax.random.split(key)

    crf = CRF(F, num_tags, k_param)

    features = jax.random.normal(k_feat, (B, L, F), jnp.float32)
    lengths = jnp.array([L, 11], dtype=jnp.int32)
    masks = (jnp.arange(L)[None, :] < lengths[:, None]).astype(jnp.int32)

    best_score, best_paths = crf.forward(features, masks)
    best_score = jax.block_until_ready(best_score)

    # ---- checks against pure-numpy references -------------------------------
    trans_np = np.asarray(crf.transitions)
    feats_np = (np.asarray(features) @ np.asarray(crf.w_fc).T
                + np.asarray(crf.b_fc))
    ref_score = numpy_reference_best_score(
        np.asarray(features), np.asarray(masks),
        np.asarray(crf.w_fc), np.asarray(crf.b_fc), trans_np,
        crf.start_idx, crf.stop_idx)
    np.testing.assert_allclose(np.asarray(best_score), ref_score,
                               rtol=1e-3, atol=1e-3)

    masks_np = np.asarray(masks)
    assert len(best_paths) == B
    for b in range(B):
        seq_len = int(masks_np[b].sum())
        assert len(best_paths[b]) == seq_len
        assert all(0 <= t < crf.num_tags for t in best_paths[b])
        path_score = numpy_path_score(best_paths[b], b, feats_np, trans_np,
                                      crf.start_idx, crf.stop_idx)
        np.testing.assert_allclose(path_score, np.asarray(best_score)[b],
                                   rtol=1e-3, atol=1e-3)

    print("KERNEL_OK")
</pallas_src>

<mosaic_0001>
module attributes {stable_mosaic.version = 11 : i64} {
  func.func @kernel(%arg0: i32, %arg1: i32, %arg2: memref<1x1xi32, #tpu.memory_space<smem>>, %arg3: memref<16x2x32xf32, #tpu.memory_space<vmem>>, %arg4: memref<16x1x2xf32, #tpu.memory_space<vmem>>, %arg5: memref<8x32xf32, #tpu.memory_space<vmem>>, %arg6: memref<8x1xf32, #tpu.memory_space<vmem>>, %arg7: memref<8x8xf32, #tpu.memory_space<vmem>>, %arg8: memref<8x1xf32, #tpu.memory_space<vmem>>, %arg9: memref<16x8x2xi32, #tpu.memory_space<vmem>>, %arg10: memref<8x2xf32, #tpu.memory_space<vmem>>, %arg11: memref<8x2xf32, #tpu.memory_space<vmem>>) attributes {dimension_semantics = [#tpu.dimension_semantics<parallel>, #tpu.dimension_semantics<arbitrary>], iteration_bounds = array<i64: 1, 1>, scalar_prefetch = 1 : i64, scratch_operands = 1 : i64, tpu.core_type = #tpu.core_type<tc>, window_params = [{transform_indices = @transform_0, window_bounds = array<i64: 16, 2, 32>}, {transform_indices = @transform_1, window_bounds = array<i64: 16, 1, 2>}, {pipeline_mode = #tpu.pipeline_mode<synchronous>, transform_indices = @transform_2, window_bounds = array<i64: 8, 32>}, {pipeline_mode = #tpu.pipeline_mode<synchronous>, transform_indices = @transform_3, window_bounds = array<i64: 8, 1>}, {pipeline_mode = #tpu.pipeline_mode<synchronous>, transform_indices = @transform_4, window_bounds = array<i64: 8, 8>}, {pipeline_mode = #tpu.pipeline_mode<synchronous>, transform_indices = @transform_5, window_bounds = array<i64: 8, 1>}, {transform_indices = @transform_6, window_bounds = array<i64: 16, 8, 2>}, {transform_indices = @transform_7, window_bounds = array<i64: 8, 2>}]} {
    %c0_i32 = arith.constant 0 : i32
    %0 = arith.cmpi eq, %arg1, %c0_i32 : i32
    %1 = arith.extui %0 : i1 to i32
    %c0_i32_0 = arith.constant 0 : i32
    %2 = arith.cmpi ne, %1, %c0_i32_0 : i32
    scf.if %2 {
      %12 = tpu.iota {dimensions = array<i32: 0>} : vector<8x2xi32>
      %c5_i32 = arith.constant 5 : i32
      %13 = vector.broadcast %c5_i32 : i32 to vector<8x2xi32>
      %14 = arith.cmpi eq, %12, %13 : vector<8x2xi32>
      %cst = arith.constant 0.000000e+00 : f32
      %cst_5 = arith.constant -1.000000e+04 : f32
      %15 = vector.broadcast %cst : f32 to vector<8x2xf32>
      %16 = vector.broadcast %cst_5 : f32 to vector<8x2xf32>
      %17 = arith.select %14, %15, %16 : vector<8x2xi1>, vector<8x2xf32>
      %c0 = arith.constant 0 : index
      %c0_6 = arith.constant 0 : index
      %18 = vector.load %arg11[%c0, %c0_6] : memref<8x2xf32, #tpu.memory_space<vmem>>, vector<8x2xf32>
      tpu.vector_store %arg11[%c0, %c0_6], %17 {strides = array<i32>} : memref<8x2xf32, #tpu.memory_space<vmem>>, vector<8x2xf32>,
    } else {
    }
    %3 = arith.index_cast %arg0 : i32 to index
    %4 = arith.index_cast %arg1 : i32 to index
    %5 = memref.load %arg2[%3, %4] : memref<1x1xi32, #tpu.memory_space<smem>>
    %c0_i32_1 = arith.constant 0 : i32
    %6 = arith.cmpi ne, %5, %c0_i32_1 : i32
    %7 = arith.extui %6 : i1 to i32
    %c0_i32_2 = arith.constant 0 : i32
    %8 = arith.cmpi ne, %7, %c0_i32_2 : i32
    scf.if %8 {
      %c0 = arith.constant 0 : index
      %c0_5 = arith.constant 0 : index
      %c0_6 = arith.constant 0 : index
      %12 = vector.load %arg3[%c0, %c0_5, %c0_6] : memref<16x2x32xf32, #tpu.memory_space<vmem>>, vector<16x2x32xf32>
      %13 = vector.shape_cast %12 : vector<16x2x32xf32> to vector<32x32xf32>
      %c0_7 = arith.constant 0 : index
      %c0_8 = arith.constant 0 : index
      %14 = vector.load %arg5[%c0_7, %c0_8] : memref<8x32xf32, #tpu.memory_space<vmem>>, vector<8x32xf32>
      %cst = arith.constant dense<0.000000e+00> : vector<8x32xf32>
      %15 = tpu.matmul %14, %13, %cst {dimension_numbers = #tpu.dot_dimension_numbers<[1], [1], [0], [0], [0, 0, 1, 0], [], []>} : vector<8x32xf32>, vector<32x32xf32>, vector<8x32xf32> -> vector<8x32xf32>
      %c0_9 = arith.constant 0 : index
      %c0_10 = arith.constant 0 : index
      %16 = vector.load %arg6[%c0_9, %c0_10] : memref<8x1xf32, #tpu.memory_space<vmem>>, vector<8x1xf32>
      %17 = vector.broadcast %16 : vector<8x1xf32> to vector<8x32xf32>
      %18 = arith.addf %15, %17 : vector<8x32xf32>
      %c0_11 = arith.constant 0 : index
      %c0_12 = arith.constant 0 : index
      %19 = vector.load %arg7[%c0_11, %c0_12] : memref<8x8xf32, #tpu.memory_space<vmem>>, vector<8x8xf32>
      %c0_13 = arith.constant 0 : index
      %c0_14 = arith.constant 0 : index
      %20 = vector.load %arg11[%c0_13, %c0_14] : memref<8x2xf32, #tpu.memory_space<vmem>>, vector<8x2xf32>
      %21 = vector.extract_strided_slice %18 {offsets = [0, 0], sizes = [8, 2], strides = [1, 1]} : vector<8x32xf32> to vector<8x2xf32>
      %c0_15 = arith.constant 0 : index
      %c0_16 = arith.constant 0 : index
      %c0_17 = arith.constant 0 : index
      %22 = vector.load %arg4[%c0_15, %c0_16, %c0_17] : memref<16x1x2xf32, #tpu.memory_space<vmem>>, vector<1x1x2xf32>
      %23 = vector.shape_cast %22 : vector<1x1x2xf32> to vector<1x2xf32>
      %24 = vector.extract_strided_slice %20 {offsets = [0, 0], sizes = [1, 2], strides = [1, 1]} : vector<8x2xf32> to vector<1x2xf32>
      %25 = vector.extract_strided_slice %19 {offsets = [0, 0], sizes = [8, 1], strides = [1, 1]} : vector<8x8xf32> to vector<8x1xf32>
      %26 = vector.broadcast %24 : vector<1x2xf32> to vector<8x2xf32>
      %27 = vector.broadcast %25 : vector<8x1xf32> to vector<8x2xf32>
      %28 = arith.addf %26, %27 : vector<8x2xf32>
      %c0_i32_18 = arith.constant 0 : i32
      %29 = vector.broadcast %c0_i32_18 : i32 to vector<8x2xi32>
      %30 = vector.extract_strided_slice %20 {offsets = [1, 0], sizes = [1, 2], strides = [1, 1]} : vector<8x2xf32> to vector<1x2xf32>
      %31 = vector.extract_strided_slice %19 {offsets = [0, 1], sizes = [8, 1], strides = [1, 1]} : vector<8x8xf32> to vector<8x1xf32>
      %32 = vector.broadcast %30 : vector<1x2xf32> to vector<8x2xf32>
      %33 = vector.broadcast %31 : vector<8x1xf32> to vector<8x2xf32>
      %34 = arith.addf %32, %33 : vector<8x2xf32>
      %35 = arith.cmpf ogt, %34, %28 : vector<8x2xf32>
      %36 = arith.select %35, %34, %28 : vector<8x2xi1>, vector<8x2xf32>
      %c1_i32 = arith.constant 1 : i32
      %37 = vector.broadcast %c1_i32 : i32 to vector<8x2xi32>
      %38 = arith.select %35, %37, %29 : vector<8x2xi1>, vector<8x2xi32>
      %39 = vector.extract_strided_slice %20 {offsets = [2, 0], sizes = [1, 2], strides = [1, 1]} : vector<8x2xf32> to vector<1x2xf32>
      %40 = vector.extract_strided_slice %19 {offsets = [0, 2], sizes = [8, 1], strides = [1, 1]} : vector<8x8xf32> to vector<8x1xf32>
      %41 = vector.broadcast %39 : vector<1x2xf32> to vector<8x2xf32>
      %42 = vector.broadcast %40 : vector<8x1xf32> to vector<8x2xf32>
      %43 = arith.addf %41, %42 : vector<8x2xf32>
      %44 = arith.cmpf ogt, %43, %36 : vector<8x2xf32>
      %45 = arith.select %44, %43, %36 : vector<8x2xi1>, vector<8x2xf32>
      %c2_i32 = arith.constant 2 : i32
      %46 = vector.broadcast %c2_i32 : i32 to vector<8x2xi32>
      %47 = arith.select %44, %46, %38 : vector<8x2xi1>, vector<8x2xi32>
      %48 = vector.extract_strided_slice %20 {offsets = [3, 0], sizes = [1, 2], strides = [1, 1]} : vector<8x2xf32> to vector<1x2xf32>
      %49 = vector.extract_strided_slice %19 {offsets = [0, 3], sizes = [8, 1], strides = [1, 1]} : vector<8x8xf32> to vector<8x1xf32>
      %50 = vector.broadcast %48 : vector<1x2xf32> to vector<8x2xf32>
      %51 = vector.broadcast %49 : vector<8x1xf32> to vector<8x2xf32>
      %52 = arith.addf %50, %51 : vector<8x2xf32>
      %53 = arith.cmpf ogt, %52, %45 : vector<8x2xf32>
      %54 = arith.select %53, %52, %45 : vector<8x2xi1>, vector<8x2xf32>
      %c3_i32 = arith.constant 3 : i32
      %55 = vector.broadcast %c3_i32 : i32 to vector<8x2xi32>
      %56 = arith.select %53, %55, %47 : vector<8x2xi1>, vector<8x2xi32>
      %57 = vector.extract_strided_slice %20 {offsets = [4, 0], sizes = [1, 2], strides = [1, 1]} : vector<8x2xf32> to vector<1x2xf32>
      %58 = vector.extract_strided_slice %19 {offsets = [0, 4], sizes = [8, 1], strides = [1, 1]} : vector<8x8xf32> to vector<8x1xf32>
      %59 = vector.broadcast %57 : vector<1x2xf32> to vector<8x2xf32>
      %60 = vector.broadcast %58 : vector<8x1xf32> to vector<8x2xf32>
      %61 = arith.addf %59, %60 : vector<8x2xf32>
      %62 = arith.cmpf ogt, %61, %54 : vector<8x2xf32>
      %63 = arith.select %62, %61, %54 : vector<8x2xi1>, vector<8x2xf32>
      %c4_i32 = arith.constant 4 : i32
      %64 = vector.broadcast %c4_i32 : i32 to vector<8x2xi32>
      %65 = arith.select %62, %64, %56 : vector<8x2xi1>, vector<8x2xi32>
      %66 = vector.extract_strided_slice %20 {offsets = [5, 0], sizes = [1, 2], strides = [1, 1]} : vector<8x2xf32> to vector<1x2xf32>
      %67 = vector.extract_strided_slice %19 {offsets = [0, 5], sizes = [8, 1], strides = [1, 1]} : vector<8x8xf32> to vector<8x1xf32>
      %68 = vector.broadcast %66 : vector<1x2xf32> to vector<8x2xf32>
      %69 = vector.broadcast %67 : vector<8x1xf32> to vector<8x2xf32>
      %70 = arith.addf %68, %69 : vector<8x2xf32>
      %71 = arith.cmpf ogt, %70, %63 : vector<8x2xf32>
      %72 = arith.select %71, %70, %63 : vector<8x2xi1>, vector<8x2xf32>
      %c5_i32 = arith.constant 5 : i32
      %73 = vector.broadcast %c5_i32 : i32 to vector<8x2xi32>
      %74 = arith.select %71, %73, %65 : vector<8x2xi1>, vector<8x2xi32>
      %75 = vector.extract_strided_slice %20 {offsets = [6, 0], sizes = [1, 2], strides = [1, 1]} : vector<8x2xf32> to vector<1x2xf32>
      %76 = vector.extract_strided_slice %19 {offsets = [0, 6], sizes = [8, 1], strides = [1, 1]} : vector<8x8xf32> to vector<8x1xf32>
      %77 = vector.broadcast %75 : vector<1x2xf32> to vector<8x2xf32>
      %78 = vector.broadcast %76 : vector<8x1xf32> to vector<8x2xf32>
      %79 = arith.addf %77, %78 : vector<8x2xf32>
      %80 = arith.cmpf ogt, %79, %72 : vector<8x2xf32>
      %81 = arith.select %80, %79, %72 : vector<8x2xi1>, vector<8x2xf32>
      %c6_i32 = arith.constant 6 : i32
      %82 = vector.broadcast %c6_i32 : i32 to vector<8x2xi32>
      %83 = arith.select %80, %82, %74 : vector<8x2xi1>, vector<8x2xi32>
      %c0_19 = arith.constant 0 : index
      %c0_20 = arith.constant 0 : index
      %c0_21 = arith.constant 0 : index
      %84 = vector.load %arg9[%c0_19, %c0_20, %c0_21] : memref<16x8x2xi32, #tpu.memory_space<vmem>>, vector<1x8x2xi32>
      %85 = vector.shape_cast %84 : vector<1x8x2xi32> to vector<8x2xi32>
      %86 = vector.shape_cast %83 : vector<8x2xi32> to vector<1x8x2xi32>
      tpu.vector_store %arg9[%c0_19, %c0_20, %c0_21], %86 {strides = array<i32>} : memref<16x8x2xi32, #tpu.memory_space<vmem>>, vector<1x8x2xi32>,
      %cst_22 = arith.constant 0.000000e+00 : f32
      %87 = vector.broadcast %cst_22 : f32 to vector<1x2xf32>
      %88 = arith.cmpf ogt, %23, %87 : vector<1x2xf32>
      %89 = arith.addf %81, %21 : vector<8x2xf32>
      %90 = vector.shape_cast %88 : vector<1x2xi1> to vector<1x2xi1>
      %91 = vector.broadcast %90 : vector<1x2xi1> to vector<8x2xi1>
      %92 = arith.select %91, %89, %20 : vector<8x2xi1>, vector<8x2xf32>
      %93 = vector.extract_strided_slice %18 {offsets = [0, 2], sizes = [8, 2], strides = [1, 1]} : vector<8x32xf32> to vector<8x2xf32>
      %c1 = arith.constant 1 : index
      %c0_23 = arith.constant 0 : index
      %c0_24 = arith.constant 0 : index
      %94 = vector.load %arg4[%c1, %c0_23, %c0_24] : memref<16x1x2xf32, #tpu.memory_space<vmem>>, vector<1x1x2xf32>
      %95 = vector.shape_cast %94 : vector<1x1x2xf32> to vector<1x2xf32>
      %96 = vector.extract_strided_slice %92 {offsets = [0, 0], sizes = [1, 2], strides = [1, 1]} : vector<8x2xf32> to vector<1x2xf32>
      %97 = vector.extract_strided_slice %19 {offsets = [0, 0], sizes = [8, 1], strides = [1, 1]} : vector<8x8xf32> to vector<8x1xf32>
      %98 = vector.broadcast %96 : vector<1x2xf32> to vector<8x2xf32>
      %99 = vector.broadcast %97 : vector<8x1xf32> to vector<8x2xf32>
      %100 = arith.addf %98, %99 : vector<8x2xf32>
      %c0_i32_25 = arith.constant 0 : i32
      %101 = vector.broadcast %c0_i32_25 : i32 to vector<8x2xi32>
      %102 = vector.extract_strided_slice %92 {offsets = [1, 0], sizes = [1, 2], strides = [1, 1]} : vector<8x2xf32> to vector<1x2xf32>
      %103 = vector.extract_strided_slice %19 {offsets = [0, 1], sizes = [8, 1], strides = [1, 1]} : vector<8x8xf32> to vector<8x1xf32>
      %104 = vector.broadcast %102 : vector<1x2xf32> to vector<8x2xf32>
      %105 = vector.broadcast %103 : vector<8x1xf32> to vector<8x2xf32>
      %106 = arith.addf %104, %105 : vector<8x2xf32>
      %107 = arith.cmpf ogt, %106, %100 : vector<8x2xf32>
      %108 = arith.select %107, %106, %100 : vector<8x2xi1>, vector<8x2xf32>
      %c1_i32_26 = arith.constant 1 : i32
      %109 = vector.broadcast %c1_i32_26 : i32 to vector<8x2xi32>
      %110 = arith.select %107, %109, %101 : vector<8x2xi1>, vector<8x2xi32>
      %111 = vector.extract_strided_slice %92 {offsets = [2, 0], sizes = [1, 2], strides = [1, 1]} : vector<8x2xf32> to vector<1x2xf32>
      %112 = vector.extract_strided_slice %19 {offsets = [0, 2], sizes = [8, 1], strides = [1, 1]} : vector<8x8xf32> to vector<8x1xf32>
      %113 = vector.broadcast %111 : vector<1x2xf32> to vector<8x2xf32>
      %114 = vector.broadcast %112 : vector<8x1xf32> to vector<8x2xf32>
      %115 = arith.addf %113, %114 : vector<8x2xf32>
      %116 = arith.cmpf ogt, %115, %108 : vector<8x2xf32>
      %117 = arith.select %116, %115, %108 : vector<8x2xi1>, vector<8x2xf32>
      %c2_i32_27 = arith.constant 2 : i32
      %118 = vector.broadcast %c2_i32_27 : i32 to vector<8x2xi32>
      %119 = arith.select %116, %118, %110 : vector<8x2xi1>, vector<8x2xi32>
      %120 = vector.extract_strided_slice %92 {offsets = [3, 0], sizes = [1, 2], strides = [1, 1]} : vector<8x2xf32> to vector<1x2xf32>
      %121 = vector.extract_strided_slice %19 {offsets = [0, 3], sizes = [8, 1], strides = [1, 1]} : vector<8x8xf32> to vector<8x1xf32>
      %122 = vector.broadcast %120 : vector<1x2xf32> to vector<8x2xf32>
      %123 = vector.broadcast %121 : vector<8x1xf32> to vector<8x2xf32>
      %124 = arith.addf %122, %123 : vector<8x2xf32>
      %125 = arith.cmpf ogt, %124, %117 : vector<8x2xf32>
      %126 = arith.select %125, %124, %117 : vector<8x2xi1>, vector<8x2xf32>
      %c3_i32_28 = arith.constant 3 : i32
      %127 = vector.broadcast %c3_i32_28 : i32 to vector<8x2xi32>
      %128 = arith.select %125, %127, %119 : vector<8x2xi1>, vector<8x2xi32>
      %129 = vector.extract_strided_slice %92 {offsets = [4, 0], sizes = [1, 2], strides = [1, 1]} : vector<8x2xf32> to vector<1x2xf32>
      %130 = vector.extract_strided_slice %19 {offsets = [0, 4], sizes = [8, 1], strides = [1, 1]} : vector<8x8xf32> to vector<8x1xf32>
      %131 = vector.broadcast %129 : vector<1x2xf32> to vector<8x2xf32>
      %132 = vector.broadcast %130 : vector<8x1xf32> to vector<8x2xf32>
      %133 = arith.addf %131, %132 : vector<8x2xf32>
      %134 = arith.cmpf ogt, %133, %126 : vector<8x2xf32>
      %135 = arith.select %134, %133, %126 : vector<8x2xi1>, vector<8x2xf32>
      %c4_i32_29 = arith.constant 4 : i32
      %136 = vector.broadcast %c4_i32_29 : i32 to vector<8x2xi32>
      %137 = arith.select %134, %136, %128 : vector<8x2xi1>, vector<8x2xi32>
      %138 = vector.extract_strided_slice %92 {offsets = [5, 0], sizes = [1, 2], strides = [1, 1]} : vector<8x2xf32> to vector<1x2xf32>
      %139 = vector.extract_strided_slice %19 {offsets = [0, 5], sizes = [8, 1], strides = [1, 1]} : vector<8x8xf32> to vector<8x1xf32>
      %140 = vector.broadcast %138 : vector<1x2xf32> to vector<8x2xf32>
      %141 = vector.broadcast %139 : vector<8x1xf32> to vector<8x2xf32>
      %142 = arith.addf %140, %141 : vector<8x2xf32>
      %143 = arith.cmpf ogt, %142, %135 : vector<8x2xf32>
      %144 = arith.select %143, %142, %135 : vector<8x2xi1>, vector<8x2xf32>
      %c5_i32_30 = arith.constant 5 : i32
      %145 = vector.broadcast %c5_i32_30 : i32 to vector<8x2xi32>
      %146 = arith.select %143, %145, %137 : vector<8x2xi1>, vector<8x2xi32>
      %147 = vector.extract_strided_slice %92 {offsets = [6, 0], sizes = [1, 2], strides = [1, 1]} : vector<8x2xf32> to vector<1x2xf32>
      %148 = vector.extract_strided_slice %19 {offsets = [0, 6], sizes = [8, 1], strides = [1, 1]} : vector<8x8xf32> to vector<8x1xf32>
      %149 = vector.broadcast %147 : vector<1x2xf32> to vector<8x2xf32>
      %150 = vector.broadcast %148 : vector<8x1xf32> to vector<8x2xf32>
      %151 = arith.addf %149, %150 : vector<8x2xf32>
      %152 = arith.cmpf ogt, %151, %144 : vector<8x2xf32>
      %153 = arith.select %152, %151, %144 : vector<8x2xi1>, vector<8x2xf32>
      %c6_i32_31 = arith.constant 6 : i32
      %154 = vector.broadcast %c6_i32_31 : i32 to vector<8x2xi32>
      %155 = arith.select %152, %154, %146 : vector<8x2xi1>, vector<8x2xi32>
      %c1_32 = arith.constant 1 : index
      %c0_33 = arith.constant 0 : index
      %c0_34 = arith.constant 0 : index
      %156 = vector.load %arg9[%c1_32, %c0_33, %c0_34] : memref<16x8x2xi32, #tpu.memory_space<vmem>>, vector<1x8x2xi32>
      %157 = vector.shape_cast %156 : vector<1x8x2xi32> to vector<8x2xi32>
      %158 = vector.shape_cast %155 : vector<8x2xi32> to vector<1x8x2xi32>
      tpu.vector_store %arg9[%c1_32, %c0_33, %c0_34], %158 {strides = array<i32>} : memref<16x8x2xi32, #tpu.memory_space<vmem>>, vector<1x8x2xi32>,
      %cst_35 = arith.constant 0.000000e+00 : f32
      %159 = vector.broadcast %cst_35 : f32 to vector<1x2xf32>
      %160 = arith.cmpf ogt, %95, %159 : vector<1x2xf32>
      %161 = arith.addf %153, %93 : vector<8x2xf32>
      %162 = vector.shape_cast %160 : vector<1x2xi1> to vector<1x2xi1>
      %163 = vector.broadcast %162 : vector<1x2xi1> to vector<8x2xi1>
      %164 = arith.select %163, %161, %92 : vector<8x2xi1>, vector<8x2xf32>
      %165 = vector.extract_strided_slice %18 {offsets = [0, 4], sizes = [8, 2], strides = [1, 1]} : vector<8x32xf32> to vector<8x2xf32>
      %c2 = arith.constant 2 : index
      %c0_36 = arith.constant 0 : index
      %c0_37 = arith.constant 0 : index
      %166 = vector.load %arg4[%c2, %c0_36, %c0_37] : memref<16x1x2xf32, #tpu.memory_space<vmem>>, vector<1x1x2xf32>
      %167 = vector.shape_cast %166 : vector<1x1x2xf32> to vector<1x2xf32>
      %168 = vector.extract_strided_slice %164 {offsets = [0, 0], sizes = [1, 2], strides = [1, 1]} : vector<8x2xf32> to vector<1x2xf32>
      %169 = vector.extract_strided_slice %19 {offsets = [0, 0], sizes = [8, 1], strides = [1, 1]} : vector<8x8xf32> to vector<8x1xf32>
      %170 = vector.broadcast %168 : vector<1x2xf32> to vector<8x2xf32>
      %171 = vector.broadcast %169 : vector<8x1xf32> to vector<8x2xf32>
      %172 = arith.addf %170, %171 : vector<8x2xf32>
      %c0_i32_38 = arith.constant 0 : i32
      %173 = vector.broadcast %c0_i32_38 : i32 to vector<8x2xi32>
      %174 = vector.extract_strided_slice %164 {offsets = [1, 0], sizes = [1, 2], strides = [1, 1]} : vector<8x2xf32> to vector<1x2xf32>
      %175 = vector.extract_strided_slice %19 {offsets = [0, 1], sizes = [8, 1], strides = [1, 1]} : vector<8x8xf32> to vector<8x1xf32>
      %176 = vector.broadcast %174 : vector<1x2xf32> to vector<8x2xf32>
      %177 = vector.broadcast %175 : vector<8x1xf32> to vector<8x2xf32>
      %178 = arith.addf %176, %177 : vector<8x2xf32>
      %179 = arith.cmpf ogt, %178, %172 : vector<8x2xf32>
      %180 = arith.select %179, %178, %172 : vector<8x2xi1>, vector<8x2xf32>
      %c1_i32_39 = arith.constant 1 : i32
      %181 = vector.broadcast %c1_i32_39 : i32 to vector<8x2xi32>
      %182 = arith.select %179, %181, %173 : vector<8x2xi1>, vector<8x2xi32>
      %183 = vector.extract_strided_slice %164 {offsets = [2, 0], sizes = [1, 2], strides = [1, 1]} : vector<8x2xf32> to vector<1x2xf32>
      %184 = vector.extract_strided_slice %19 {offsets = [0, 2], sizes = [8, 1], strides = [1, 1]} : vector<8x8xf32> to vector<8x1xf32>
      %185 = vector.broadcast %183 : vector<1x2xf32> to vector<8x2xf32>
      %186 = vector.broadcast %184 : vector<8x1xf32> to vector<8x2xf32>
      %187 = arith.addf %185, %186 : vector<8x2xf32>
      %188 = arith.cmpf ogt, %187, %180 : vector<8x2xf32>
      %189 = arith.select %188, %187, %180 : vector<8x2xi1>, vector<8x2xf32>
      %c2_i32_40 = arith.constant 2 : i32
      %190 = vector.broadcast %c2_i32_40 : i32 to vector<8x2xi32>
      %191 = arith.select %188, %190, %182 : vector<8x2xi1>, vector<8x2xi32>
      %192 = vector.extract_strided_slice %164 {offsets = [3, 0], sizes = [1, 2], strides = [1, 1]} : vector<8x2xf32> to vector<1x2xf32>
      %193 = vector.extract_strided_slice %19 {offsets = [0, 3], sizes = [8, 1], strides = [1, 1]} : vector<8x8xf32> to vector<8x1xf32>
      %194 = vector.broadcast %192 : vector<1x2xf32> to vector<8x2xf32>
      %195 = vector.broadcast %193 : vector<8x1xf32> to vector<8x2xf32>
      %196 = arith.addf %194, %195 : vector<8x2xf32>
      %197 = arith.cmpf ogt, %196, %189 : vector<8x2xf32>
      %198 = arith.select %197, %196, %189 : vector<8x2xi1>, vector<8x2xf32>
      %c3_i32_41 = arith.constant 3 : i32
      %199 = vector.broadcast %c3_i32_41 : i32 to vector<8x2xi32>
      %200 = arith.select %197, %199, %191 : vector<8x2xi1>, vector<8x2xi32>
      %201 = vector.extract_strided_slice %164 {offsets = [4, 0], sizes = [1, 2], strides = [1, 1]} : vector<8x2xf32> to vector<1x2xf32>
      %202 = vector.extract_strided_slice %19 {offsets = [0, 4], sizes = [8, 1], strides = [1, 1]} : vector<8x8xf32> to vector<8x1xf32>
      %203 = vector.broadcast %201 : vector<1x2xf32> to vector<8x2xf32>
      %204 = vector.broadcast %202 : vector<8x1xf32> to vector<8x2xf32>
      %205 = arith.addf %203, %204 : vector<8x2xf32>
      %206 = arith.cmpf ogt, %205, %198 : vector<8x2xf32>
      %207 = arith.select %206, %205, %198 : vector<8x2xi1>, vector<8x2xf32>
      %c4_i32_42 = arith.constant 4 : i32
      %208 = vector.broadcast %c4_i32_42 : i32 to vector<8x2xi32>
      %209 = arith.select %206, %208, %200 : vector<8x2xi1>, vector<8x2xi32>
      %210 = vector.extract_strided_slice %164 {offsets = [5, 0], sizes = [1, 2], strides = [1, 1]} : vector<8x2xf32> to vector<1x2xf32>
      %211 = vector.extract_strided_slice %19 {offsets = [0, 5], sizes = [8, 1], strides = [1, 1]} : vector<8x8xf32> to vector<8x1xf32>
      %212 = vector.broadcast %210 : vector<1x2xf32> to vector<8x2xf32>
      %213 = vector.broadcast %211 : vector<8x1xf32> to vector<8x2xf32>
      %214 = arith.addf %212, %213 : vector<8x2xf32>
      %215 = arith.cmpf ogt, %214, %207 : vector<8x2xf32>
      %216 = arith.select %215, %214, %207 : vector<8x2xi1>, vector<8x2xf32>
      %c5_i32_43 = arith.constant 5 : i32
      %217 = vector.broadcast %c5_i32_43 : i32 to vector<8x2xi32>
      %218 = arith.select %215, %217, %209 : vector<8x2xi1>, vector<8x2xi32>
      %219 = vector.extract_strided_slice %164 {offsets = [6, 0], sizes = [1, 2], strides = [1, 1]} : vector<8x2xf32> to vector<1x2xf32>
      %220 = vector.extract_strided_slice %19 {offsets = [0, 6], sizes = [8, 1], strides = [1, 1]} : vector<8x8xf32> to vector<8x1xf32>
      %221 = vector.broadcast %219 : vector<1x2xf32> to vector<8x2xf32>
      %222 = vector.broadcast %220 : vector<8x1xf32> to vector<8x2xf32>
      %223 = arith.addf %221, %222 : vector<8x2xf32>
      %224 = arith.cmpf ogt, %223, %216 : vector<8x2xf32>
      %225 = arith.select %224, %223, %216 : vector<8x2xi1>, vector<8x2xf32>
      %c6_i32_44 = arith.constant 6 : i32
      %226 = vector.broadcast %c6_i32_44 : i32 to vector<8x2xi32>
      %227 = arith.select %224, %226, %218 : vector<8x2xi1>, vector<8x2xi32>
      %c2_45 = arith.constant 2 : index
      %c0_46 = arith.constant 0 : index
      %c0_47 = arith.constant 0 : index
      %228 = vector.load %arg9[%c2_45, %c0_46, %c0_47] : memref<16x8x2xi32, #tpu.memory_space<vmem>>, vector<1x8x2xi32>
      %229 = vector.shape_cast %228 : vector<1x8x2xi32> to vector<8x2xi32>
      %230 = vector.shape_cast %227 : vector<8x2xi32> to vector<1x8x2xi32>
      tpu.vector_store %arg9[%c2_45, %c0_46, %c0_47], %230 {strides = array<i32>} : memref<16x8x2xi32, #tpu.memory_space<vmem>>, vector<1x8x2xi32>,
      %cst_48 = arith.constant 0.000000e+00 : f32
      %231 = vector.broadcast %cst_48 : f32 to vector<1x2xf32>
      %232 = arith.cmpf ogt, %167, %231 : vector<1x2xf32>
      %233 = arith.addf %225, %165 : vector<8x2xf32>
      %234 = vector.shape_cast %232 : vector<1x2xi1> to vector<1x2xi1>
      %235 = vector.broadcast %234 : vector<1x2xi1> to vector<8x2xi1>
      %236 = arith.select %235, %233, %164 : vector<8x2xi1>, vector<8x2xf32>
      %237 = vector.extract_strided_slice %18 {offsets = [0, 6], sizes = [8, 2], strides = [1, 1]} : vector<8x32xf32> to vector<8x2xf32>
      %c3 = arith.constant 3 : index
      %c0_49 = arith.constant 0 : index
      %c0_50 = arith.constant 0 : index
      %238 = vector.load %arg4[%c3, %c0_49, %c0_50] : memref<16x1x2xf32, #tpu.memory_space<vmem>>, vector<1x1x2xf32>
      %239 = vector.shape_cast %238 : vector<1x1x2xf32> to vector<1x2xf32>
      %240 = vector.extract_strided_slice %236 {offsets = [0, 0], sizes = [1, 2], strides = [1, 1]} : vector<8x2xf32> to vector<1x2xf32>
      %241 = vector.extract_strided_slice %19 {offsets = [0, 0], sizes = [8, 1], strides = [1, 1]} : vector<8x8xf32> to vector<8x1xf32>
      %242 = vector.broadcast %240 : vector<1x2xf32> to vector<8x2xf32>
      %243 = vector.broadcast %241 : vector<8x1xf32> to vector<8x2xf32>
      %244 = arith.addf %242, %243 : vector<8x2xf32>
      %c0_i32_51 = arith.constant 0 : i32
      %245 = vector.broadcast %c0_i32_51 : i32 to vector<8x2xi32>
      %246 = vector.extract_strided_slice %236 {offsets = [1, 0], sizes = [1, 2], strides = [1, 1]} : vector<8x2xf32> to vector<1x2xf32>
      %247 = vector.extract_strided_slice %19 {offsets = [0, 1], sizes = [8, 1], strides = [1, 1]} : vector<8x8xf32> to vector<8x1xf32>
      %248 = vector.broadcast %246 : vector<1x2xf32> to vector<8x2xf32>
      %249 = vector.broadcast %247 : vector<8x1xf32> to vector<8x2xf32>
      %250 = arith.addf %248, %249 : vector<8x2xf32>
      %251 = arith.cmpf ogt, %250, %244 : vector<8x2xf32>
      %252 = arith.select %251, %250, %244 : vector<8x2xi1>, vector<8x2xf32>
      %c1_i32_52 = arith.constant 1 : i32
      %253 = vector.broadcast %c1_i32_52 : i32 to vector<8x2xi32>
      %254 = arith.select %251, %253, %245 : vector<8x2xi1>, vector<8x2xi32>
      %255 = vector.extract_strided_slice %236 {offsets = [2, 0], sizes = [1, 2], strides = [1, 1]} : vector<8x2xf32> to vector<1x2xf32>
      %256 = vector.extract_strided_slice %19 {offsets = [0, 2], sizes = [8, 1], strides = [1, 1]} : vector<8x8xf32> to vector<8x1xf32>
      %257 = vector.broadcast %255 : vector<1x2xf32> to vector<8x2xf32>
      %258 = vector.broadcast %256 : vector<8x1xf32> to vector<8x2xf32>
      %259 = arith.addf %257, %258 : vector<8x2xf32>
      %260 = arith.cmpf ogt, %259, %252 : vector<8x2xf32>
      %261 = arith.select %260, %259, %252 : vector<8x2xi1>, vector<8x2xf32>
      %c2_i32_53 = arith.constant 2 : i32
      %262 = vector.broadcast %c2_i32_53 : i32 to vector<8x2xi32>
      %263 = arith.select %260, %262, %254 : vector<8x2xi1>, vector<8x2xi32>
      %264 = vector.extract_strided_slice %236 {offsets = [3, 0], sizes = [1, 2], strides = [1, 1]} : vector<8x2xf32> to vector<1x2xf32>
      %265 = vector.extract_strided_slice %19 {offsets = [0, 3], sizes = [8, 1], strides = [1, 1]} : vector<8x8xf32> to vector<8x1xf32>
      %266 = vector.broadcast %264 : vector<1x2xf32> to vector<8x2xf32>
      %267 = vector.broadcast %265 : vector<8x1xf32> to vector<8x2xf32>
      %268 = arith.addf %266, %267 : vector<8x2xf32>
      %269 = arith.cmpf ogt, %268, %261 : vector<8x2xf32>
      %270 = arith.select %269, %268, %261 : vector<8x2xi1>, vector<8x2xf32>
      %c3_i32_54 = arith.constant 3 : i32
      %271 = vector.broadcast %c3_i32_54 : i32 to vector<8x2xi32>
      %272 = arith.select %269, %271, %263 : vector<8x2xi1>, vector<8x2xi32>
      %273 = vector.extract_strided_slice %236 {offsets = [4, 0], sizes = [1, 2], strides = [1, 1]} : vector<8x2xf32> to vector<1x2xf32>
      %274 = vector.extract_strided_slice %19 {offsets = [0, 4], sizes = [8, 1], strides = [1, 1]} : vector<8x8xf32> to vector<8x1xf32>
      %275 = vector.broadcast %273 : vector<1x2xf32> to vector<8x2xf32>
      %276 = vector.broadcast %274 : vector<8x1xf32> to vector<8x2xf32>
      %277 = arith.addf %275, %276 : vector<8x2xf32>
      %278 = arith.cmpf ogt, %277, %270 : vector<8x2xf32>
      %279 = arith.select %278, %277, %270 : vector<8x2xi1>, vector<8x2xf32>
      %c4_i32_55 = arith.constant 4 : i32
      %280 = vector.broadcast %c4_i32_55 : i32 to vector<8x2xi32>
      %281 = arith.select %278, %280, %272 : vector<8x2xi1>, vector<8x2xi32>
      %282 = vector.extract_strided_slice %236 {offsets = [5, 0], sizes = [1, 2], strides = [1, 1]} : vector<8x2xf32> to vector<1x2xf32>
      %283 = vector.extract_strided_slice %19 {offsets = [0, 5], sizes = [8, 1], strides = [1, 1]} : vector<8x8xf32> to vector<8x1xf32>
      %284 = vector.broadcast %282 : vector<1x2xf32> to vector<8x2xf32>
      %285 = vector.broadcast %283 : vector<8x1xf32> to vector<8x2xf32>
      %286 = arith.addf %284, %285 : vector<8x2xf32>
      %287 = arith.cmpf ogt, %286, %279 : vector<8x2xf32>
      %288 = arith.select %287, %286, %279 : vector<8x2xi1>, vector<8x2xf32>
      %c5_i32_56 = arith.constant 5 : i32
      %289 = vector.broadcast %c5_i32_56 : i32 to vector<8x2xi32>
      %290 = arith.select %287, %289, %281 : vector<8x2xi1>, vector<8x2xi32>
      %291 = vector.extract_strided_slice %236 {offsets = [6, 0], sizes = [1, 2], strides = [1, 1]} : vector<8x2xf32> to vector<1x2xf32>
      %292 = vector.extract_strided_slice %19 {offsets = [0, 6], sizes = [8, 1], strides = [1, 1]} : vector<8x8xf32> to vector<8x1xf32>
      %293 = vector.broadcast %291 : vector<1x2xf32> to vector<8x2xf32>
      %294 = vector.broadcast %292 : vector<8x1xf32> to vector<8x2xf32>
      %295 = arith.addf %293, %294 : vector<8x2xf32>
      %296 = arith.cmpf ogt, %295, %288 : vector<8x2xf32>
      %297 = arith.select %296, %295, %288 : vector<8x2xi1>, vector<8x2xf32>
      %c6_i32_57 = arith.constant 6 : i32
      %298 = vector.broadcast %c6_i32_57 : i32 to vector<8x2xi32>
      %299 = arith.select %296, %298, %290 : vector<8x2xi1>, vector<8x2xi32>
      %c3_58 = arith.constant 3 : index
      %c0_59 = arith.constant 0 : index
      %c0_60 = arith.constant 0 : index
      %300 = vector.load %arg9[%c3_58, %c0_59, %c0_60] : memref<16x8x2xi32, #tpu.memory_space<vmem>>, vector<1x8x2xi32>
      %301 = vector.shape_cast %300 : vector<1x8x2xi32> to vector<8x2xi32>
      %302 = vector.shape_cast %299 : vector<8x2xi32> to vector<1x8x2xi32>
      tpu.vector_store %arg9[%c3_58, %c0_59, %c0_60], %302 {strides = array<i32>} : memref<16x8x2xi32, #tpu.memory_space<vmem>>, vector<1x8x2xi32>,
      %cst_61 = arith.constant 0.000000e+00 : f32
      %303 = vector.broadcast %cst_61 : f32 to vector<1x2xf32>
      %304 = arith.cmpf ogt, %239, %303 : vector<1x2xf32>
      %305 = arith.addf %297, %237 : vector<8x2xf32>
      %306 = vector.shape_cast %304 : vector<1x2xi1> to vector<1x2xi1>
      %307 = vector.broadcast %306 : vector<1x2xi1> to vector<8x2xi1>
      %308 = arith.select %307, %305, %236 : vector<8x2xi1>, vector<8x2xf32>
      %309 = vector.extract_strided_slice %18 {offsets = [0, 8], sizes = [8, 2], strides = [1, 1]} : vector<8x32xf32> to vector<8x2xf32>
      %c4 = arith.constant 4 : index
      %c0_62 = arith.constant 0 : index
      %c0_63 = arith.constant 0 : index
      %310 = vector.load %arg4[%c4, %c0_62, %c0_63] : memref<16x1x2xf32, #tpu.memory_space<vmem>>, vector<1x1x2xf32>
      %311 = vector.shape_cast %310 : vector<1x1x2xf32> to vector<1x2xf32>
      %312 = vector.extract_strided_slice %308 {offsets = [0, 0], sizes = [1, 2], strides = [1, 1]} : vector<8x2xf32> to vector<1x2xf32>
      %313 = vector.extract_strided_slice %19 {offsets = [0, 0], sizes = [8, 1], strides = [1, 1]} : vector<8x8xf32> to vector<8x1xf32>
      %314 = vector.broadcast %312 : vector<1x2xf32> to vector<8x2xf32>
      %315 = vector.broadcast %313 : vector<8x1xf32> to vector<8x2xf32>
      %316 = arith.addf %314, %315 : vector<8x2xf32>
      %c0_i32_64 = arith.constant 0 : i32
      %317 = vector.broadcast %c0_i32_64 : i32 to vector<8x2xi32>
      %318 = vector.extract_strided_slice %308 {offsets = [1, 0], sizes = [1, 2], strides = [1, 1]} : vector<8x2xf32> to vector<1x2xf32>
      %319 = vector.extract_strided_slice %19 {offsets = [0, 1], sizes = [8, 1], strides = [1, 1]} : vector<8x8xf32> to vector<8x1xf32>
      %320 = vector.broadcast %318 : vector<1x2xf32> to vector<8x2xf32>
      %321 = vector.broadcast %319 : vector<8x1xf32> to vector<8x2xf32>
      %322 = arith.addf %320, %321 : vector<8x2xf32>
      %323 = arith.cmpf ogt, %322, %316 : vector<8x2xf32>
      %324 = arith.select %323, %322, %316 : vector<8x2xi1>, vector<8x2xf32>
      %c1_i32_65 = arith.constant 1 : i32
      %325 = vector.broadcast %c1_i32_65 : i32 to vector<8x2xi32>
      %326 = arith.select %323, %325, %317 : vector<8x2xi1>, vector<8x2xi32>
      %327 = vector.extract_strided_slice %308 {offsets = [2, 0], sizes = [1, 2], strides = [1, 1]} : vector<8x2xf32> to vector<1x2xf32>
      %328 = vector.extract_strided_slice %19 {offsets = [0, 2], sizes = [8, 1], strides = [1, 1]} : vector<8x8xf32> to vector<8x1xf32>
      %329 = vector.broadcast %327 : vector<1x2xf32> to vector<8x2xf32>
      %330 = vector.broadcast %328 : vector<8x1xf32> to vector<8x2xf32>
      %331 = arith.addf %329, %330 : vector<8x2xf32>
      %332 = arith.cmpf ogt, %331, %324 : vector<8x2xf32>
      %333 = arith.select %332, %331, %324 : vector<8x2xi1>, vector<8x2xf32>
      %c2_i32_66 = arith.constant 2 : i32
      %334 = vector.broadcast %c2_i32_66 : i32 to vector<8x2xi32>
      %335 = arith.select %332, %334, %326 : vector<8x2xi1>, vector<8x2xi32>
      %336 = vector.extract_strided_slice %308 {offsets = [3, 0], sizes = [1, 2], strides = [1, 1]} : vector<8x2xf32> to vector<1x2xf32>
      %337 = vector.extract_strided_slice %19 {offsets = [0, 3], sizes = [8, 1], strides = [1, 1]} : vector<8x8xf32> to vector<8x1xf32>
      %338 = vector.broadcast %336 : vector<1x2xf32> to vector<8x2xf32>
      %339 = vector.broadcast %337 : vector<8x1xf32> to vector<8x2xf32>
      %340 = arith.addf %338, %339 : vector<8x2xf32>
      %341 = arith.cmpf ogt, %340, %333 : vector<8x2xf32>
      %342 = arith.select %341, %340, %333 : vector<8x2xi1>, vector<8x2xf32>
      %c3_i32_67 = arith.constant 3 : i32
      %343 = vector.broadcast %c3_i32_67 : i32 to vector<8x2xi32>
      %344 = arith.select %341, %343, %335 : vector<8x2xi1>, vector<8x2xi32>
      %345 = vector.extract_strided_slice %308 {offsets = [4, 0], sizes = [1, 2], strides = [1, 1]} : vector<8x2xf32> to vector<1x2xf32>
      %346 = vector.extract_strided_slice %19 {offsets = [0, 4], sizes = [8, 1], strides = [1, 1]} : vector<8x8xf32> to vector<8x1xf32>
      %347 = vector.broadcast %345 : vector<1x2xf32> to vector<8x2xf32>
      %348 = vector.broadcast %346 : vector<8x1xf32> to vector<8x2xf32>
      %349 = arith.addf %347, %348 : vector<8x2xf32>
      %350 = arith.cmpf ogt, %349, %342 : vector<8x2xf32>
      %351 = arith.select %350, %349, %342 : vector<8x2xi1>, vector<8x2xf32>
      %c4_i32_68 = arith.constant 4 : i32
      %352 = vector.broadcast %c4_i32_68 : i32 to vector<8x2xi32>
      %353 = arith.select %350, %352, %344 : vector<8x2xi1>, vector<8x2xi32>
      %354 = vector.extract_strided_slice %308 {offsets = [5, 0], sizes = [1, 2], strides = [1, 1]} : vector<8x2xf32> to vector<1x2xf32>
      %355 = vector.extract_strided_slice %19 {offsets = [0, 5], sizes = [8, 1], strides = [1, 1]} : vector<8x8xf32> to vector<8x1xf32>
      %356 = vector.broadcast %354 : vector<1x2xf32> to vector<8x2xf32>
      %357 = vector.broadcast %355 : vector<8x1xf32> to vector<8x2xf32>
      %358 = arith.addf %356, %357 : vector<8x2xf32>
      %359 = arith.cmpf ogt, %358, %351 : vector<8x2xf32>
      %360 = arith.select %359, %358, %351 : vector<8x2xi1>, vector<8x2xf32>
      %c5_i32_69 = arith.constant 5 : i32
      %361 = vector.broadcast %c5_i32_69 : i32 to vector<8x2xi32>
      %362 = arith.select %359, %361, %353 : vector<8x2xi1>, vector<8x2xi32>
      %363 = vector.extract_strided_slice %308 {offsets = [6, 0], sizes = [1, 2], strides = [1, 1]} : vector<8x2xf32> to vector<1x2xf32>
      %364 = vector.extract_strided_slice %19 {offsets = [0, 6], sizes = [8, 1], strides = [1, 1]} : vector<8x8xf32> to vector<8x1xf32>
      %365 = vector.broadcast %363 : vector<1x2xf32> to vector<8x2xf32>
      %366 = vector.broadcast %364 : vector<8x1xf32> to vector<8x2xf32>
      %367 = arith.addf %365, %366 : vector<8x2xf32>
      %368 = arith.cmpf ogt, %367, %360 : vector<8x2xf32>
      %369 = arith.select %368, %367, %360 : vector<8x2xi1>, vector<8x2xf32>
      %c6_i32_70 = arith.constant 6 : i32
      %370 = vector.broadcast %c6_i32_70 : i32 to vector<8x2xi32>
      %371 = arith.select %368, %370, %362 : vector<8x2xi1>, vector<8x2xi32>
      %c4_71 = arith.constant 4 : index
      %c0_72 = arith.constant 0 : index
      %c0_73 = arith.constant 0 : index
      %372 = vector.load %arg9[%c4_71, %c0_72, %c0_73] : memref<16x8x2xi32, #tpu.memory_space<vmem>>, vector<1x8x2xi32>
      %373 = vector.shape_cast %372 : vector<1x8x2xi32> to vector<8x2xi32>
      %374 = vector.shape_cast %371 : vector<8x2xi32> to vector<1x8x2xi32>
      tpu.vector_store %arg9[%c4_71, %c0_72, %c0_73], %374 {strides = array<i32>} : memref<16x8x2xi32, #tpu.memory_space<vmem>>, vector<1x8x2xi32>,
      %cst_74 = arith.constant 0.000000e+00 : f32
      %375 = vector.broadcast %cst_74 : f32 to vector<1x2xf32>
      %376 = arith.cmpf ogt, %311, %375 : vector<1x2xf32>
      %377 = arith.addf %369, %309 : vector<8x2xf32>
      %378 = vector.shape_cast %376 : vector<1x2xi1> to vector<1x2xi1>
      %379 = vector.broadcast %378 : vector<1x2xi1> to vector<8x2xi1>
      %380 = arith.select %379, %377, %308 : vector<8x2xi1>, vector<8x2xf32>
      %381 = vector.extract_strided_slice %18 {offsets = [0, 10], sizes = [8, 2], strides = [1, 1]} : vector<8x32xf32> to vector<8x2xf32>
      %c5 = arith.constant 5 : index
      %c0_75 = arith.constant 0 : index
      %c0_76 = arith.constant 0 : index
      %382 = vector.load %arg4[%c5, %c0_75, %c0_76] : memref<16x1x2xf32, #tpu.memory_space<vmem>>, vector<1x1x2xf32>
      %383 = vector.shape_cast %382 : vector<1x1x2xf32> to vector<1x2xf32>
      %384 = vector.extract_strided_slice %380 {offsets = [0, 0], sizes = [1, 2], strides = [1, 1]} : vector<8x2xf32> to vector<1x2xf32>
      %385 = vector.extract_strided_slice %19 {offsets = [0, 0], sizes = [8, 1], strides = [1, 1]} : vector<8x8xf32> to vector<8x1xf32>
      %386 = vector.broadcast %384 : vector<1x2xf32> to vector<8x2xf32>
      %387 = vector.broadcast %385 : vector<8x1xf32> to vector<8x2xf32>
      %388 = arith.addf %386, %387 : vector<8x2xf32>
      %c0_i32_77 = arith.constant 0 : i32
      %389 = vector.broadcast %c0_i32_77 : i32 to vector<8x2xi32>
      %390 = vector.extract_strided_slice %380 {offsets = [1, 0], sizes = [1, 2], strides = [1, 1]} : vector<8x2xf32> to vector<1x2xf32>
      %391 = vector.extract_strided_slice %19 {offsets = [0, 1], sizes = [8, 1], strides = [1, 1]} : vector<8x8xf32> to vector<8x1xf32>
      %392 = vector.broadcast %390 : vector<1x2xf32> to vector<8x2xf32>
      %393 = vector.broadcast %391 : vector<8x1xf32> to vector<8x2xf32>
      %394 = arith.addf %392, %393 : vector<8x2xf32>
      %395 = arith.cmpf ogt, %394, %388 : vector<8x2xf32>
      %396 = arith.select %395, %394, %388 : vector<8x2xi1>, vector<8x2xf32>
      %c1_i32_78 = arith.constant 1 : i32
      %397 = vector.broadcast %c1_i32_78 : i32 to vector<8x2xi32>
      %398 = arith.select %395, %397, %389 : vector<8x2xi1>, vector<8x2xi32>
      %399 = vector.extract_strided_slice %380 {offsets = [2, 0], sizes = [1, 2], strides = [1, 1]} : vector<8x2xf32> to vector<1x2xf32>
      %400 = vector.extract_strided_slice %19 {offsets = [0, 2], sizes = [8, 1], strides = [1, 1]} : vector<8x8xf32> to vector<8x1xf32>
      %401 = vector.broadcast %399 : vector<1x2xf32> to vector<8x2xf32>
      %402 = vector.broadcast %400 : vector<8x1xf32> to vector<8x2xf32>
      %403 = arith.addf %401, %402 : vector<8x2xf32>
      %404 = arith.cmpf ogt, %403, %396 : vector<8x2xf32>
      %405 = arith.select %404, %403, %396 : vector<8x2xi1>, vector<8x2xf32>
      %c2_i32_79 = arith.constant 2 : i32
      %406 = vector.broadcast %c2_i32_79 : i32 to vector<8x2xi32>
      %407 = arith.select %404, %406, %398 : vector<8x2xi1>, vector<8x2xi32>
      %408 = vector.extract_strided_slice %380 {offsets = [3, 0], sizes = [1, 2], strides = [1, 1]} : vector<8x2xf32> to vector<1x2xf32>
      %409 = vector.extract_strided_slice %19 {offsets = [0, 3], sizes = [8, 1], strides = [1, 1]} : vector<8x8xf32> to vector<8x1xf32>
      %410 = vector.broadcast %408 : vector<1x2xf32> to vector<8x2xf32>
      %411 = vector.broadcast %409 : vector<8x1xf32> to vector<8x2xf32>
      %412 = arith.addf %410, %411 : vector<8x2xf32>
      %413 = arith.cmpf ogt, %412, %405 : vector<8x2xf32>
      %414 = arith.select %413, %412, %405 : vector<8x2xi1>, vector<8x2xf32>
      %c3_i32_80 = arith.constant 3 : i32
      %415 = vector.broadcast %c3_i32_80 : i32 to vector<8x2xi32>
      %416 = arith.select %413, %415, %407 : vector<8x2xi1>, vector<8x2xi32>
      %417 = vector.extract_strided_slice %380 {offsets = [4, 0], sizes = [1, 2], strides = [1, 1]} : vector<8x2xf32> to vector<1x2xf32>
      %418 = vector.extract_strided_slice %19 {offsets = [0, 4], sizes = [8, 1], strides = [1, 1]} : vector<8x8xf32> to vector<8x1xf32>
      %419 = vector.broadcast %417 : vector<1x2xf32> to vector<8x2xf32>
      %420 = vector.broadcast %418 : vector<8x1xf32> to vector<8x2xf32>
      %421 = arith.addf %419, %420 : vector<8x2xf32>
      %422 = arith.cmpf ogt, %421, %414 : vector<8x2xf32>
      %423 = arith.select %422, %421, %414 : vector<8x2xi1>, vector<8x2xf32>
      %c4_i32_81 = arith.constant 4 : i32
      %424 = vector.broadcast %c4_i32_81 : i32 to vector<8x2xi32>
      %425 = arith.select %422, %424, %416 : vector<8x2xi1>, vector<8x2xi32>
      %426 = vector.extract_strided_slice %380 {offsets = [5, 0], sizes = [1, 2], strides = [1, 1]} : vector<8x2xf32> to vector<1x2xf32>
      %427 = vector.extract_strided_slice %19 {offsets = [0, 5], sizes = [8, 1], strides = [1, 1]} : vector<8x8xf32> to vector<8x1xf32>
      %428 = vector.broadcast %426 : vector<1x2xf32> to vector<8x2xf32>
      %429 = vector.broadcast %427 : vector<8x1xf32> to vector<8x2xf32>
      %430 = arith.addf %428, %429 : vector<8x2xf32>
      %431 = arith.cmpf ogt, %430, %423 : vector<8x2xf32>
      %432 = arith.select %431, %430, %423 : vector<8x2xi1>, vector<8x2xf32>
      %c5_i32_82 = arith.constant 5 : i32
      %433 = vector.broadcast %c5_i32_82 : i32 to vector<8x2xi32>
      %434 = arith.select %431, %433, %425 : vector<8x2xi1>, vector<8x2xi32>
      %435 = vector.extract_strided_slice %380 {offsets = [6, 0], sizes = [1, 2], strides = [1, 1]} : vector<8x2xf32> to vector<1x2xf32>
      %436 = vector.extract_strided_slice %19 {offsets = [0, 6], sizes = [8, 1], strides = [1, 1]} : vector<8x8xf32> to vector<8x1xf32>
      %437 = vector.broadcast %435 : vector<1x2xf32> to vector<8x2xf32>
      %438 = vector.broadcast %436 : vector<8x1xf32> to vector<8x2xf32>
      %439 = arith.addf %437, %438 : vector<8x2xf32>
      %440 = arith.cmpf ogt, %439, %432 : vector<8x2xf32>
      %441 = arith.select %440, %439, %432 : vector<8x2xi1>, vector<8x2xf32>
      %c6_i32_83 = arith.constant 6 : i32
      %442 = vector.broadcast %c6_i32_83 : i32 to vector<8x2xi32>
      %443 = arith.select %440, %442, %434 : vector<8x2xi1>, vector<8x2xi32>
      %c5_84 = arith.constant 5 : index
      %c0_85 = arith.constant 0 : index
      %c0_86 = arith.constant 0 : index
      %444 = vector.load %arg9[%c5_84, %c0_85, %c0_86] : memref<16x8x2xi32, #tpu.memory_space<vmem>>, vector<1x8x2xi32>
      %445 = vector.shape_cast %444 : vector<1x8x2xi32> to vector<8x2xi32>
      %446 = vector.shape_cast %443 : vector<8x2xi32> to vector<1x8x2xi32>
      tpu.vector_store %arg9[%c5_84, %c0_85, %c0_86], %446 {strides = array<i32>} : memref<16x8x2xi32, #tpu.memory_space<vmem>>, vector<1x8x2xi32>,
      %cst_87 = arith.constant 0.000000e+00 : f32
      %447 = vector.broadcast %cst_87 : f32 to vector<1x2xf32>
      %448 = arith.cmpf ogt, %383, %447 : vector<1x2xf32>
      %449 = arith.addf %441, %381 : vector<8x2xf32>
      %450 = vector.shape_cast %448 : vector<1x2xi1> to vector<1x2xi1>
      %451 = vector.broadcast %450 : vector<1x2xi1> to vector<8x2xi1>
      %452 = arith.select %451, %449, %380 : vector<8x2xi1>, vector<8x2xf32>
      %453 = vector.extract_strided_slice %18 {offsets = [0, 12], sizes = [8, 2], strides = [1, 1]} : vector<8x32xf32> to vector<8x2xf32>
      %c6 = arith.constant 6 : index
      %c0_88 = arith.constant 0 : index
      %c0_89 = arith.constant 0 : index
      %454 = vector.load %arg4[%c6, %c0_88, %c0_89] : memref<16x1x2xf32, #tpu.memory_space<vmem>>, vector<1x1x2xf32>
      %455 = vector.shape_cast %454 : vector<1x1x2xf32> to vector<1x2xf32>
      %456 = vector.extract_strided_slice %452 {offsets = [0, 0], sizes = [1, 2], strides = [1, 1]} : vector<8x2xf32> to vector<1x2xf32>
      %457 = vector.extract_strided_slice %19 {offsets = [0, 0], sizes = [8, 1], strides = [1, 1]} : vector<8x8xf32> to vector<8x1xf32>
      %458 = vector.broadcast %456 : vector<1x2xf32> to vector<8x2xf32>
      %459 = vector.broadcast %457 : vector<8x1xf32> to vector<8x2xf32>
      %460 = arith.addf %458, %459 : vector<8x2xf32>
      %c0_i32_90 = arith.constant 0 : i32
      %461 = vector.broadcast %c0_i32_90 : i32 to vector<8x2xi32>
      %462 = vector.extract_strided_slice %452 {offsets = [1, 0], sizes = [1, 2], strides = [1, 1]} : vector<8x2xf32> to vector<1x2xf32>
      %463 = vector.extract_strided_slice %19 {offsets = [0, 1], sizes = [8, 1], strides = [1, 1]} : vector<8x8xf32> to vector<8x1xf32>
      %464 = vector.broadcast %462 : vector<1x2xf32> to vector<8x2xf32>
      %465 = vector.broadcast %463 : vector<8x1xf32> to vector<8x2xf32>
      %466 = arith.addf %464, %465 : vector<8x2xf32>
      %467 = arith.cmpf ogt, %466, %460 : vector<8x2xf32>
      %468 = arith.select %467, %466, %460 : vector<8x2xi1>, vector<8x2xf32>
      %c1_i32_91 = arith.constant 1 : i32
      %469 = vector.broadcast %c1_i32_91 : i32 to vector<8x2xi32>
      %470 = arith.select %467, %469, %461 : vector<8x2xi1>, vector<8x2xi32>
      %471 = vector.extract_strided_slice %452 {offsets = [2, 0], sizes = [1, 2], strides = [1, 1]} : vector<8x2xf32> to vector<1x2xf32>
      %472 = vector.extract_strided_slice %19 {offsets = [0, 2], sizes = [8, 1], strides = [1, 1]} : vector<8x8xf32> to vector<8x1xf32>
      %473 = vector.broadcast %471 : vector<1x2xf32> to vector<8x2xf32>
      %474 = vector.broadcast %472 : vector<8x1xf32> to vector<8x2xf32>
      %475 = arith.addf %473, %474 : vector<8x2xf32>
      %476 = arith.cmpf ogt, %475, %468 : vector<8x2xf32>
      %477 = arith.select %476, %475, %468 : vector<8x2xi1>, vector<8x2xf32>
      %c2_i32_92 = arith.constant 2 : i32
      %478 = vector.broadcast %c2_i32_92 : i32 to vector<8x2xi32>
      %479 = arith.select %476, %478, %470 : vector<8x2xi1>, vector<8x2xi32>
      %480 = vector.extract_strided_slice %452 {offsets = [3, 0], sizes = [1, 2], strides = [1, 1]} : vector<8x2xf32> to vector<1x2xf32>
      %481 = vector.extract_strided_slice %19 {offsets = [0, 3], sizes = [8, 1], strides = [1, 1]} : vector<8x8xf32> to vector<8x1xf32>
      %482 = vector.broadcast %480 : vector<1x2xf32> to vector<8x2xf32>
      %483 = vector.broadcast %481 : vector<8x1xf32> to vector<8x2xf32>
      %484 = arith.addf %482, %483 : vector<8x2xf32>
      %485 = arith.cmpf ogt, %484, %477 : vector<8x2xf32>
      %486 = arith.select %485, %484, %477 : vector<8x2xi1>, vector<8x2xf32>
      %c3_i32_93 = arith.constant 3 : i32
      %487 = vector.broadcast %c3_i32_93 : i32 to vector<8x2xi32>
      %488 = arith.select %485, %487, %479 : vector<8x2xi1>, vector<8x2xi32>
      %489 = vector.extract_strided_slice %452 {offsets = [4, 0], sizes = [1, 2], strides = [1, 1]} : vector<8x2xf32> to vector<1x2xf32>
      %490 = vector.extract_strided_slice %19 {offsets = [0, 4], sizes = [8, 1], strides = [1, 1]} : vector<8x8xf32> to vector<8x1xf32>
      %491 = vector.broadcast %489 : vector<1x2xf32> to vector<8x2xf32>
      %492 = vector.broadcast %490 : vector<8x1xf32> to vector<8x2xf32>
      %493 = arith.addf %491, %492 : vector<8x2xf32>
      %494 = arith.cmpf ogt, %493, %486 : vector<8x2xf32>
      %495 = arith.select %494, %493, %486 : vector<8x2xi1>, vector<8x2xf32>
      %c4_i32_94 = arith.constant 4 : i32
      %496 = vector.broadcast %c4_i32_94 : i32 to vector<8x2xi32>
      %497 = arith.select %494, %496, %488 : vector<8x2xi1>, vector<8x2xi32>
      %498 = vector.extract_strided_slice %452 {offsets = [5, 0], sizes = [1, 2], strides = [1, 1]} : vector<8x2xf32> to vector<1x2xf32>
      %499 = vector.extract_strided_slice %19 {offsets = [0, 5], sizes = [8, 1], strides = [1, 1]} : vector<8x8xf32> to vector<8x1xf32>
      %500 = vector.broadcast %498 : vector<1x2xf32> to vector<8x2xf32>
      %501 = vector.broadcast %499 : vector<8x1xf32> to vector<8x2xf32>
      %502 = arith.addf %500, %501 : vector<8x2xf32>
      %503 = arith.cmpf ogt, %502, %495 : vector<8x2xf32>
      %504 = arith.select %503, %502, %495 : vector<8x2xi1>, vector<8x2xf32>
      %c5_i32_95 = arith.constant 5 : i32
      %505 = vector.broadcast %c5_i32_95 : i32 to vector<8x2xi32>
      %506 = arith.select %503, %505, %497 : vector<8x2xi1>, vector<8x2xi32>
      %507 = vector.extract_strided_slice %452 {offsets = [6, 0], sizes = [1, 2], strides = [1, 1]} : vector<8x2xf32> to vector<1x2xf32>
      %508 = vector.extract_strided_slice %19 {offsets = [0, 6], sizes = [8, 1], strides = [1, 1]} : vector<8x8xf32> to vector<8x1xf32>
      %509 = vector.broadcast %507 : vector<1x2xf32> to vector<8x2xf32>
      %510 = vector.broadcast %508 : vector<8x1xf32> to vector<8x2xf32>
      %511 = arith.addf %509, %510 : vector<8x2xf32>
      %512 = arith.cmpf ogt, %511, %504 : vector<8x2xf32>
      %513 = arith.select %512, %511, %504 : vector<8x2xi1>, vector<8x2xf32>
      %c6_i32_96 = arith.constant 6 : i32
      %514 = vector.broadcast %c6_i32_96 : i32 to vector<8x2xi32>
      %515 = arith.select %512, %514, %506 : vector<8x2xi1>, vector<8x2xi32>
      %c6_97 = arith.constant 6 : index
      %c0_98 = arith.constant 0 : index
      %c0_99 = arith.constant 0 : index
      %516 = vector.load %arg9[%c6_97, %c0_98, %c0_99] : memref<16x8x2xi32, #tpu.memory_space<vmem>>, vector<1x8x2xi32>
      %517 = vector.shape_cast %516 : vector<1x8x2xi32> to vector<8x2xi32>
      %518 = vector.shape_cast %515 : vector<8x2xi32> to vector<1x8x2xi32>
      tpu.vector_store %arg9[%c6_97, %c0_98, %c0_99], %518 {strides = array<i32>} : memref<16x8x2xi32, #tpu.memory_space<vmem>>, vector<1x8x2xi32>,
      %cst_100 = arith.constant 0.000000e+00 : f32
      %519 = vector.broadcast %cst_100 : f32 to vector<1x2xf32>
      %520 = arith.cmpf ogt, %455, %519 : vector<1x2xf32>
      %521 = arith.addf %513, %453 : vector<8x2xf32>
      %522 = vector.shape_cast %520 : vector<1x2xi1> to vector<1x2xi1>
      %523 = vector.broadcast %522 : vector<1x2xi1> to vector<8x2xi1>
      %524 = arith.select %523, %521, %452 : vector<8x2xi1>, vector<8x2xf32>
      %525 = vector.extract_strided_slice %18 {offsets = [0, 14], sizes = [8, 2], strides = [1, 1]} : vector<8x32xf32> to vector<8x2xf32>
      %c7 = arith.constant 7 : index
      %c0_101 = arith.constant 0 : index
      %c0_102 = arith.constant 0 : index
      %526 = vector.load %arg4[%c7, %c0_101, %c0_102] : memref<16x1x2xf32, #tpu.memory_space<vmem>>, vector<1x1x2xf32>
      %527 = vector.shape_cast %526 : vector<1x1x2xf32> to vector<1x2xf32>
      %528 = vector.extract_strided_slice %524 {offsets = [0, 0], sizes = [1, 2], strides = [1, 1]} : vector<8x2xf32> to vector<1x2xf32>
      %529 = vector.extract_strided_slice %19 {offsets = [0, 0], sizes = [8, 1], strides = [1, 1]} : vector<8x8xf32> to vector<8x1xf32>
      %530 = vector.broadcast %528 : vector<1x2xf32> to vector<8x2xf32>
      %531 = vector.broadcast %529 : vector<8x1xf32> to vector<8x2xf32>
      %532 = arith.addf %530, %531 : vector<8x2xf32>
      %c0_i32_103 = arith.constant 0 : i32
      %533 = vector.broadcast %c0_i32_103 : i32 to vector<8x2xi32>
      %534 = vector.extract_strided_slice %524 {offsets = [1, 0], sizes = [1, 2], strides = [1, 1]} : vector<8x2xf32> to vector<1x2xf32>
      %535 = vector.extract_strided_slice %19 {offsets = [0, 1], sizes = [8, 1], strides = [1, 1]} : vector<8x8xf32> to vector<8x1xf32>
      %536 = vector.broadcast %534 : vector<1x2xf32> to vector<8x2xf32>
      %537 = vector.broadcast %535 : vector<8x1xf32> to vector<8x2xf32>
      %538 = arith.addf %536, %537 : vector<8x2xf32>
      %539 = arith.cmpf ogt, %538, %532 : vector<8x2xf32>
      %540 = arith.select %539, %538, %532 : vector<8x2xi1>, vector<8x2xf32>
      %c1_i32_104 = arith.constant 1 : i32
      %541 = vector.broadcast %c1_i32_104 : i32 to vector<8x2xi32>
      %542 = arith.select %539, %541, %533 : vector<8x2xi1>, vector<8x2xi32>
      %543 = vector.extract_strided_slice %524 {offsets = [2, 0], sizes = [1, 2], strides = [1, 1]} : vector<8x2xf32> to vector<1x2xf32>
      %544 = vector.extract_strided_slice %19 {offsets = [0, 2], sizes = [8, 1], strides = [1, 1]} : vector<8x8xf32> to vector<8x1xf32>
      %545 = vector.broadcast %543 : vector<1x2xf32> to vector<8x2xf32>
      %546 = vector.broadcast %544 : vector<8x1xf32> to vector<8x2xf32>
      %547 = arith.addf %545, %546 : vector<8x2xf32>
      %548 = arith.cmpf ogt, %547, %540 : vector<8x2xf32>
      %549 = arith.select %548, %547, %540 : vector<8x2xi1>, vector<8x2xf32>
      %c2_i32_105 = arith.constant 2 : i32
      %550 = vector.broadcast %c2_i32_105 : i32 to vector<8x2xi32>
      %551 = arith.select %548, %550, %542 : vector<8x2xi1>, vector<8x2xi32>
      %552 = vector.extract_strided_slice %524 {offsets = [3, 0], sizes = [1, 2], strides = [1, 1]} : vector<8x2xf32> to vector<1x2xf32>
      %553 = vector.extract_strided_slice %19 {offsets = [0, 3], sizes = [8, 1], strides = [1, 1]} : vector<8x8xf32> to vector<8x1xf32>
      %554 = vector.broadcast %552 : vector<1x2xf32> to vector<8x2xf32>
      %555 = vector.broadcast %553 : vector<8x1xf32> to vector<8x2xf32>
      %556 = arith.addf %554, %555 : vector<8x2xf32>
      %557 = arith.cmpf ogt, %556, %549 : vector<8x2xf32>
      %558 = arith.select %557, %556, %549 : vector<8x2xi1>, vector<8x2xf32>
      %c3_i32_106 = arith.constant 3 : i32
      %559 = vector.broadcast %c3_i32_106 : i32 to vector<8x2xi32>
      %560 = arith.select %557, %559, %551 : vector<8x2xi1>, vector<8x2xi32>
      %561 = vector.extract_strided_slice %524 {offsets = [4, 0], sizes = [1, 2], strides = [1, 1]} : vector<8x2xf32> to vector<1x2xf32>
      %562 = vector.extract_strided_slice %19 {offsets = [0, 4], sizes = [8, 1], strides = [1, 1]} : vector<8x8xf32> to vector<8x1xf32>
      %563 = vector.broadcast %561 : vector<1x2xf32> to vector<8x2xf32>
      %564 = vector.broadcast %562 : vector<8x1xf32> to vector<8x2xf32>
      %565 = arith.addf %563, %564 : vector<8x2xf32>
      %566 = arith.cmpf ogt, %565, %558 : vector<8x2xf32>
      %567 = arith.select %566, %565, %558 : vector<8x2xi1>, vector<8x2xf32>
      %c4_i32_107 = arith.constant 4 : i32
      %568 = vector.broadcast %c4_i32_107 : i32 to vector<8x2xi32>
      %569 = arith.select %566, %568, %560 : vector<8x2xi1>, vector<8x2xi32>
      %570 = vector.extract_strided_slice %524 {offsets = [5, 0], sizes = [1, 2], strides = [1, 1]} : vector<8x2xf32> to vector<1x2xf32>
      %571 = vector.extract_strided_slice %19 {offsets = [0, 5], sizes = [8, 1], strides = [1, 1]} : vector<8x8xf32> to vector<8x1xf32>
      %572 = vector.broadcast %570 : vector<1x2xf32> to vector<8x2xf32>
      %573 = vector.broadcast %571 : vector<8x1xf32> to vector<8x2xf32>
      %574 = arith.addf %572, %573 : vector<8x2xf32>
      %575 = arith.cmpf ogt, %574, %567 : vector<8x2xf32>
      %576 = arith.select %575, %574, %567 : vector<8x2xi1>, vector<8x2xf32>
      %c5_i32_108 = arith.constant 5 : i32
      %577 = vector.broadcast %c5_i32_108 : i32 to vector<8x2xi32>
      %578 = arith.select %575, %577, %569 : vector<8x2xi1>, vector<8x2xi32>
      %579 = vector.extract_strided_slice %524 {offsets = [6, 0], sizes = [1, 2], strides = [1, 1]} : vector<8x2xf32> to vector<1x2xf32>
      %580 = vector.extract_strided_slice %19 {offsets = [0, 6], sizes = [8, 1], strides = [1, 1]} : vector<8x8xf32> to vector<8x1xf32>
      %581 = vector.broadcast %579 : vector<1x2xf32> to vector<8x2xf32>
      %582 = vector.broadcast %580 : vector<8x1xf32> to vector<8x2xf32>
      %583 = arith.addf %581, %582 : vector<8x2xf32>
      %584 = arith.cmpf ogt, %583, %576 : vector<8x2xf32>
      %585 = arith.select %584, %583, %576 : vector<8x2xi1>, vector<8x2xf32>
      %c6_i32_109 = arith.constant 6 : i32
      %586 = vector.broadcast %c6_i32_109 : i32 to vector<8x2xi32>
      %587 = arith.select %584, %586, %578 : vector<8x2xi1>, vector<8x2xi32>
      %c7_110 = arith.constant 7 : index
      %c0_111 = arith.constant 0 : index
      %c0_112 = arith.constant 0 : index
      %588 = vector.load %arg9[%c7_110, %c0_111, %c0_112] : memref<16x8x2xi32, #tpu.memory_space<vmem>>, vector<1x8x2xi32>
      %589 = vector.shape_cast %588 : vector<1x8x2xi32> to vector<8x2xi32>
      %590 = vector.shape_cast %587 : vector<8x2xi32> to vector<1x8x2xi32>
      tpu.vector_store %arg9[%c7_110, %c0_111, %c0_112], %590 {strides = array<i32>} : memref<16x8x2xi32, #tpu.memory_space<vmem>>, vector<1x8x2xi32>,
      %cst_113 = arith.constant 0.000000e+00 : f32
      %591 = vector.broadcast %cst_113 : f32 to vector<1x2xf32>
      %592 = arith.cmpf ogt, %527, %591 : vector<1x2xf32>
      %593 = arith.addf %585, %525 : vector<8x2xf32>
      %594 = vector.shape_cast %592 : vector<1x2xi1> to vector<1x2xi1>
      %595 = vector.broadcast %594 : vector<1x2xi1> to vector<8x2xi1>
      %596 = arith.select %595, %593, %524 : vector<8x2xi1>, vector<8x2xf32>
      %597 = vector.extract_strided_slice %18 {offsets = [0, 16], sizes = [8, 2], strides = [1, 1]} : vector<8x32xf32> to vector<8x2xf32>
      %c8 = arith.constant 8 : index
      %c0_114 = arith.constant 0 : index
      %c0_115 = arith.constant 0 : index
      %598 = vector.load %arg4[%c8, %c0_114, %c0_115] : memref<16x1x2xf32, #tpu.memory_space<vmem>>, vector<1x1x2xf32>
      %599 = vector.shape_cast %598 : vector<1x1x2xf32> to vector<1x2xf32>
      %600 = vector.extract_strided_slice %596 {offsets = [0, 0], sizes = [1, 2], strides = [1, 1]} : vector<8x2xf32> to vector<1x2xf32>
      %601 = vector.extract_strided_slice %19 {offsets = [0, 0], sizes = [8, 1], strides = [1, 1]} : vector<8x8xf32> to vector<8x1xf32>
      %602 = vector.broadcast %600 : vector<1x2xf32> to vector<8x2xf32>
      %603 = vector.broadcast %601 : vector<8x1xf32> to vector<8x2xf32>
      %604 = arith.addf %602, %603 : vector<8x2xf32>
      %c0_i32_116 = arith.constant 0 : i32
      %605 = vector.broadcast %c0_i32_116 : i32 to vector<8x2xi32>
      %606 = vector.extract_strided_slice %596 {offsets = [1, 0], sizes = [1, 2], strides = [1, 1]} : vector<8x2xf32> to vector<1x2xf32>
      %607 = vector.extract_strided_slice %19 {offsets = [0, 1], sizes = [8, 1], strides = [1, 1]} : vector<8x8xf32> to vector<8x1xf32>
      %608 = vector.broadcast %606 : vector<1x2xf32> to vector<8x2xf32>
      %609 = vector.broadcast %607 : vector<8x1xf32> to vector<8x2xf32>
      %610 = arith.addf %608, %609 : vector<8x2xf32>
      %611 = arith.cmpf ogt, %610, %604 : vector<8x2xf32>
      %612 = arith.select %611, %610, %604 : vector<8x2xi1>, vector<8x2xf32>
      %c1_i32_117 = arith.constant 1 : i32
      %613 = vector.broadcast %c1_i32_117 : i32 to vector<8x2xi32>
      %614 = arith.select %611, %613, %605 : vector<8x2xi1>, vector<8x2xi32>
      %615 = vector.extract_strided_slice %596 {offsets = [2, 0], sizes = [1, 2], strides = [1, 1]} : vector<8x2xf32> to vector<1x2xf32>
      %616 = vector.extract_strided_slice %19 {offsets = [0, 2], sizes = [8, 1], strides = [1, 1]} : vector<8x8xf32> to vector<8x1xf32>
      %617 = vector.broadcast %615 : vector<1x2xf32> to vector<8x2xf32>
      %618 = vector.broadcast %616 : vector<8x1xf32> to vector<8x2xf32>
      %619 = arith.addf %617, %618 : vector<8x2xf32>
      %620 = arith.cmpf ogt, %619, %612 : vector<8x2xf32>
      %621 = arith.select %620, %619, %612 : vector<8x2xi1>, vector<8x2xf32>
      %c2_i32_118 = arith.constant 2 : i32
      %622 = vector.broadcast %c2_i32_118 : i32 to vector<8x2xi32>
      %623 = arith.select %620, %622, %614 : vector<8x2xi1>, vector<8x2xi32>
      %624 = vector.extract_strided_slice %596 {offsets = [3, 0], sizes = [1, 2], strides = [1, 1]} : vector<8x2xf32> to vector<1x2xf32>
      %625 = vector.extract_strided_slice %19 {offsets = [0, 3], sizes = [8, 1], strides = [1, 1]} : vector<8x8xf32> to vector<8x1xf32>
      %626 = vector.broadcast %624 : vector<1x2xf32> to vector<8x2xf32>
      %627 = vector.broadcast %625 : vector<8x1xf32> to vector<8x2xf32>
      %628 = arith.addf %626, %627 : vector<8x2xf32>
      %629 = arith.cmpf ogt, %628, %621 : vector<8x2xf32>
      %630 = arith.select %629, %628, %621 : vector<8x2xi1>, vector<8x2xf32>
      %c3_i32_119 = arith.constant 3 : i32
      %631 = vector.broadcast %c3_i32_119 : i32 to vector<8x2xi32>
      %632 = arith.select %629, %631, %623 : vector<8x2xi1>, vector<8x2xi32>
      %633 = vector.extract_strided_slice %596 {offsets = [4, 0], sizes = [1, 2], strides = [1, 1]} : vector<8x2xf32> to vector<1x2xf32>
      %634 = vector.extract_strided_slice %19 {offsets = [0, 4], sizes = [8, 1], strides = [1, 1]} : vector<8x8xf32> to vector<8x1xf32>
      %635 = vector.broadcast %633 : vector<1x2xf32> to vector<8x2xf32>
      %636 = vector.broadcast %634 : vector<8x1xf32> to vector<8x2xf32>
      %637 = arith.addf %635, %636 : vector<8x2xf32>
      %638 = arith.cmpf ogt, %637, %630 : vector<8x2xf32>
      %639 = arith.select %638, %637, %630 : vector<8x2xi1>, vector<8x2xf32>
      %c4_i32_120 = arith.constant 4 : i32
      %640 = vector.broadcast %c4_i32_120 : i32 to vector<8x2xi32>
      %641 = arith.select %638, %640, %632 : vector<8x2xi1>, vector<8x2xi32>
      %642 = vector.extract_strided_slice %596 {offsets = [5, 0], sizes = [1, 2], strides = [1, 1]} : vector<8x2xf32> to vector<1x2xf32>
      %643 = vector.extract_strided_slice %19 {offsets = [0, 5], sizes = [8, 1], strides = [1, 1]} : vector<8x8xf32> to vector<8x1xf32>
      %644 = vector.broadcast %642 : vector<1x2xf32> to vector<8x2xf32>
      %645 = vector.broadcast %643 : vector<8x1xf32> to vector<8x2xf32>
      %646 = arith.addf %644, %645 : vector<8x2xf32>
      %647 = arith.cmpf ogt, %646, %639 : vector<8x2xf32>
      %648 = arith.select %647, %646, %639 : vector<8x2xi1>, vector<8x2xf32>
      %c5_i32_121 = arith.constant 5 : i32
      %649 = vector.broadcast %c5_i32_121 : i32 to vector<8x2xi32>
      %650 = arith.select %647, %649, %641 : vector<8x2xi1>, vector<8x2xi32>
      %651 = vector.extract_strided_slice %596 {offsets = [6, 0], sizes = [1, 2], strides = [1, 1]} : vector<8x2xf32> to vector<1x2xf32>
      %652 = vector.extract_strided_slice %19 {offsets = [0, 6], sizes = [8, 1], strides = [1, 1]} : vector<8x8xf32> to vector<8x1xf32>
      %653 = vector.broadcast %651 : vector<1x2xf32> to vector<8x2xf32>
      %654 = vector.broadcast %652 : vector<8x1xf32> to vector<8x2xf32>
      %655 = arith.addf %653, %654 : vector<8x2xf32>
      %656 = arith.cmpf ogt, %655, %648 : vector<8x2xf32>
      %657 = arith.select %656, %655, %648 : vector<8x2xi1>, vector<8x2xf32>
      %c6_i32_122 = arith.constant 6 : i32
      %658 = vector.broadcast %c6_i32_122 : i32 to vector<8x2xi32>
      %659 = arith.select %656, %658, %650 : vector<8x2xi1>, vector<8x2xi32>
      %c8_123 = arith.constant 8 : index
      %c0_124 = arith.constant 0 : index
      %c0_125 = arith.constant 0 : index
      %660 = vector.load %arg9[%c8_123, %c0_124, %c0_125] : memref<16x8x2xi32, #tpu.memory_space<vmem>>, vector<1x8x2xi32>
      %661 = vector.shape_cast %660 : vector<1x8x2xi32> to vector<8x2xi32>
      %662 = vector.shape_cast %659 : vector<8x2xi32> to vector<1x8x2xi32>
      tpu.vector_store %arg9[%c8_123, %c0_124, %c0_125], %662 {strides = array<i32>} : memref<16x8x2xi32, #tpu.memory_space<vmem>>, vector<1x8x2xi32>,
      %cst_126 = arith.constant 0.000000e+00 : f32
      %663 = vector.broadcast %cst_126 : f32 to vector<1x2xf32>
      %664 = arith.cmpf ogt, %599, %663 : vector<1x2xf32>
      %665 = arith.addf %657, %597 : vector<8x2xf32>
      %666 = vector.shape_cast %664 : vector<1x2xi1> to vector<1x2xi1>
      %667 = vector.broadcast %666 : vector<1x2xi1> to vector<8x2xi1>
      %668 = arith.select %667, %665, %596 : vector<8x2xi1>, vector<8x2xf32>
      %669 = vector.extract_strided_slice %18 {offsets = [0, 18], sizes = [8, 2], strides = [1, 1]} : vector<8x32xf32> to vector<8x2xf32>
      %c9 = arith.constant 9 : index
      %c0_127 = arith.constant 0 : index
      %c0_128 = arith.constant 0 : index
      %670 = vector.load %arg4[%c9, %c0_127, %c0_128] : memref<16x1x2xf32, #tpu.memory_space<vmem>>, vector<1x1x2xf32>
      %671 = vector.shape_cast %670 : vector<1x1x2xf32> to vector<1x2xf32>
      %672 = vector.extract_strided_slice %668 {offsets = [0, 0], sizes = [1, 2], strides = [1, 1]} : vector<8x2xf32> to vector<1x2xf32>
      %673 = vector.extract_strided_slice %19 {offsets = [0, 0], sizes = [8, 1], strides = [1, 1]} : vector<8x8xf32> to vector<8x1xf32>
      %674 = vector.broadcast %672 : vector<1x2xf32> to vector<8x2xf32>
      %675 = vector.broadcast %673 : vector<8x1xf32> to vector<8x2xf32>
      %676 = arith.addf %674, %675 : vector<8x2xf32>
      %c0_i32_129 = arith.constant 0 : i32
      %677 = vector.broadcast %c0_i32_129 : i32 to vector<8x2xi32>
      %678 = vector.extract_strided_slice %668 {offsets = [1, 0], sizes = [1, 2], strides = [1, 1]} : vector<8x2xf32> to vector<1x2xf32>
      %679 = vector.extract_strided_slice %19 {offsets = [0, 1], sizes = [8, 1], strides = [1, 1]} : vector<8x8xf32> to vector<8x1xf32>
      %680 = vector.broadcast %678 : vector<1x2xf32> to vector<8x2xf32>
      %681 = vector.broadcast %679 : vector<8x1xf32> to vector<8x2xf32>
      %682 = arith.addf %680, %681 : vector<8x2xf32>
      %683 = arith.cmpf ogt, %682, %676 : vector<8x2xf32>
      %684 = arith.select %683, %682, %676 : vector<8x2xi1>, vector<8x2xf32>
      %c1_i32_130 = arith.constant 1 : i32
      %685 = vector.broadcast %c1_i32_130 : i32 to vector<8x2xi32>
      %686 = arith.select %683, %685, %677 : vector<8x2xi1>, vector<8x2xi32>
      %687 = vector.extract_strided_slice %668 {offsets = [2, 0], sizes = [1, 2], strides = [1, 1]} : vector<8x2xf32> to vector<1x2xf32>
      %688 = vector.extract_strided_slice %19 {offsets = [0, 2], sizes = [8, 1], strides = [1, 1]} : vector<8x8xf32> to vector<8x1xf32>
      %689 = vector.broadcast %687 : vector<1x2xf32> to vector<8x2xf32>
      %690 = vector.broadcast %688 : vector<8x1xf32> to vector<8x2xf32>
      %691 = arith.addf %689, %690 : vector<8x2xf32>
      %692 = arith.cmpf ogt, %691, %684 : vector<8x2xf32>
      %693 = arith.select %692, %691, %684 : vector<8x2xi1>, vector<8x2xf32>
      %c2_i32_131 = arith.constant 2 : i32
      %694 = vector.broadcast %c2_i32_131 : i32 to vector<8x2xi32>
      %695 = arith.select %692, %694, %686 : vector<8x2xi1>, vector<8x2xi32>
      %696 = vector.extract_strided_slice %668 {offsets = [3, 0], sizes = [1, 2], strides = [1, 1]} : vector<8x2xf32> to vector<1x2xf32>
      %697 = vector.extract_strided_slice %19 {offsets = [0, 3], sizes = [8, 1], strides = [1, 1]} : vector<8x8xf32> to vector<8x1xf32>
      %698 = vector.broadcast %696 : vector<1x2xf32> to vector<8x2xf32>
      %699 = vector.broadcast %697 : vector<8x1xf32> to vector<8x2xf32>
      %700 = arith.addf %698, %699 : vector<8x2xf32>
      %701 = arith.cmpf ogt, %700, %693 : vector<8x2xf32>
      %702 = arith.select %701, %700, %693 : vector<8x2xi1>, vector<8x2xf32>
      %c3_i32_132 = arith.constant 3 : i32
      %703 = vector.broadcast %c3_i32_132 : i32 to vector<8x2xi32>
      %704 = arith.select %701, %703, %695 : vector<8x2xi1>, vector<8x2xi32>
      %705 = vector.extract_strided_slice %668 {offsets = [4, 0], sizes = [1, 2], strides = [1, 1]} : vector<8x2xf32> to vector<1x2xf32>
      %706 = vector.extract_strided_slice %19 {offsets = [0, 4], sizes = [8, 1], strides = [1, 1]} : vector<8x8xf32> to vector<8x1xf32>
      %707 = vector.broadcast %705 : vector<1x2xf32> to vector<8x2xf32>
      %708 = vector.broadcast %706 : vector<8x1xf32> to vector<8x2xf32>
      %709 = arith.addf %707, %708 : vector<8x2xf32>
      %710 = arith.cmpf ogt, %709, %702 : vector<8x2xf32>
      %711 = arith.select %710, %709, %702 : vector<8x2xi1>, vector<8x2xf32>
      %c4_i32_133 = arith.constant 4 : i32
      %712 = vector.broadcast %c4_i32_133 : i32 to vector<8x2xi32>
      %713 = arith.select %710, %712, %704 : vector<8x2xi1>, vector<8x2xi32>
      %714 = vector.extract_strided_slice %668 {offsets = [5, 0], sizes = [1, 2], strides = [1, 1]} : vector<8x2xf32> to vector<1x2xf32>
      %715 = vector.extract_strided_slice %19 {offsets = [0, 5], sizes = [8, 1], strides = [1, 1]} : vector<8x8xf32> to vector<8x1xf32>
      %716 = vector.broadcast %714 : vector<1x2xf32> to vector<8x2xf32>
      %717 = vector.broadcast %715 : vector<8x1xf32> to vector<8x2xf32>
      %718 = arith.addf %716, %717 : vector<8x2xf32>
      %719 = arith.cmpf ogt, %718, %711 : vector<8x2xf32>
      %720 = arith.select %719, %718, %711 : vector<8x2xi1>, vector<8x2xf32>
      %c5_i32_134 = arith.constant 5 : i32
      %721 = vector.broadcast %c5_i32_134 : i32 to vector<8x2xi32>
      %722 = arith.select %719, %721, %713 : vector<8x2xi1>, vector<8x2xi32>
      %723 = vector.extract_strided_slice %668 {offsets = [6, 0], sizes = [1, 2], strides = [1, 1]} : vector<8x2xf32> to vector<1x2xf32>
      %724 = vector.extract_strided_slice %19 {offsets = [0, 6], sizes = [8, 1], strides = [1, 1]} : vector<8x8xf32> to vector<8x1xf32>
      %725 = vector.broadcast %723 : vector<1x2xf32> to vector<8x2xf32>
      %726 = vector.broadcast %724 : vector<8x1xf32> to vector<8x2xf32>
      %727 = arith.addf %725, %726 : vector<8x2xf32>
      %728 = arith.cmpf ogt, %727, %720 : vector<8x2xf32>
      %729 = arith.select %728, %727, %720 : vector<8x2xi1>, vector<8x2xf32>
      %c6_i32_135 = arith.constant 6 : i32
      %730 = vector.broadcast %c6_i32_135 : i32 to vector<8x2xi32>
      %731 = arith.select %728, %730, %722 : vector<8x2xi1>, vector<8x2xi32>
      %c9_136 = arith.constant 9 : index
      %c0_137 = arith.constant 0 : index
      %c0_138 = arith.constant 0 : index
      %732 = vector.load %arg9[%c9_136, %c0_137, %c0_138] : memref<16x8x2xi32, #tpu.memory_space<vmem>>, vector<1x8x2xi32>
      %733 = vector.shape_cast %732 : vector<1x8x2xi32> to vector<8x2xi32>
      %734 = vector.shape_cast %731 : vector<8x2xi32> to vector<1x8x2xi32>
      tpu.vector_store %arg9[%c9_136, %c0_137, %c0_138], %734 {strides = array<i32>} : memref<16x8x2xi32, #tpu.memory_space<vmem>>, vector<1x8x2xi32>,
      %cst_139 = arith.constant 0.000000e+00 : f32
      %735 = vector.broadcast %cst_139 : f32 to vector<1x2xf32>
      %736 = arith.cmpf ogt, %671, %735 : vector<1x2xf32>
      %737 = arith.addf %729, %669 : vector<8x2xf32>
      %738 = vector.shape_cast %736 : vector<1x2xi1> to vector<1x2xi1>
      %739 = vector.broadcast %738 : vector<1x2xi1> to vector<8x2xi1>
      %740 = arith.select %739, %737, %668 : vector<8x2xi1>, vector<8x2xf32>
      %741 = vector.extract_strided_slice %18 {offsets = [0, 20], sizes = [8, 2], strides = [1, 1]} : vector<8x32xf32> to vector<8x2xf32>
      %c10 = arith.constant 10 : index
      %c0_140 = arith.constant 0 : index
      %c0_141 = arith.constant 0 : index
      %742 = vector.load %arg4[%c10, %c0_140, %c0_141] : memref<16x1x2xf32, #tpu.memory_space<vmem>>, vector<1x1x2xf32>
      %743 = vector.shape_cast %742 : vector<1x1x2xf32> to vector<1x2xf32>
      %744 = vector.extract_strided_slice %740 {offsets = [0, 0], sizes = [1, 2], strides = [1, 1]} : vector<8x2xf32> to vector<1x2xf32>
      %745 = vector.extract_strided_slice %19 {offsets = [0, 0], sizes = [8, 1], strides = [1, 1]} : vector<8x8xf32> to vector<8x1xf32>
      %746 = vector.broadcast %744 : vector<1x2xf32> to vector<8x2xf32>
      %747 = vector.broadcast %745 : vector<8x1xf32> to vector<8x2xf32>
      %748 = arith.addf %746, %747 : vector<8x2xf32>
      %c0_i32_142 = arith.constant 0 : i32
      %749 = vector.broadcast %c0_i32_142 : i32 to vector<8x2xi32>
      %750 = vector.extract_strided_slice %740 {offsets = [1, 0], sizes = [1, 2], strides = [1, 1]} : vector<8x2xf32> to vector<1x2xf32>
      %751 = vector.extract_strided_slice %19 {offsets = [0, 1], sizes = [8, 1], strides = [1, 1]} : vector<8x8xf32> to vector<8x1xf32>
      %752 = vector.broadcast %750 : vector<1x2xf32> to vector<8x2xf32>
      %753 = vector.broadcast %751 : vector<8x1xf32> to vector<8x2xf32>
      %754 = arith.addf %752, %753 : vector<8x2xf32>
      %755 = arith.cmpf ogt, %754, %748 : vector<8x2xf32>
      %756 = arith.select %755, %754, %748 : vector<8x2xi1>, vector<8x2xf32>
      %c1_i32_143 = arith.constant 1 : i32
      %757 = vector.broadcast %c1_i32_143 : i32 to vector<8x2xi32>
      %758 = arith.select %755, %757, %749 : vector<8x2xi1>, vector<8x2xi32>
      %759 = vector.extract_strided_slice %740 {offsets = [2, 0], sizes = [1, 2], strides = [1, 1]} : vector<8x2xf32> to vector<1x2xf32>
      %760 = vector.extract_strided_slice %19 {offsets = [0, 2], sizes = [8, 1], strides = [1, 1]} : vector<8x8xf32> to vector<8x1xf32>
      %761 = vector.broadcast %759 : vector<1x2xf32> to vector<8x2xf32>
      %762 = vector.broadcast %760 : vector<8x1xf32> to vector<8x2xf32>
      %763 = arith.addf %761, %762 : vector<8x2xf32>
      %764 = arith.cmpf ogt, %763, %756 : vector<8x2xf32>
      %765 = arith.select %764, %763, %756 : vector<8x2xi1>, vector<8x2xf32>
      %c2_i32_144 = arith.constant 2 : i32
      %766 = vector.broadcast %c2_i32_144 : i32 to vector<8x2xi32>
      %767 = arith.select %764, %766, %758 : vector<8x2xi1>, vector<8x2xi32>
      %768 = vector.extract_strided_slice %740 {offsets = [3, 0], sizes = [1, 2], strides = [1, 1]} : vector<8x2xf32> to vector<1x2xf32>
      %769 = vector.extract_strided_slice %19 {offsets = [0, 3], sizes = [8, 1], strides = [1, 1]} : vector<8x8xf32> to vector<8x1xf32>
      %770 = vector.broadcast %768 : vector<1x2xf32> to vector<8x2xf32>
      %771 = vector.broadcast %769 : vector<8x1xf32> to vector<8x2xf32>
      %772 = arith.addf %770, %771 : vector<8x2xf32>
      %773 = arith.cmpf ogt, %772, %765 : vector<8x2xf32>
      %774 = arith.select %773, %772, %765 : vector<8x2xi1>, vector<8x2xf32>
      %c3_i32_145 = arith.constant 3 : i32
      %775 = vector.broadcast %c3_i32_145 : i32 to vector<8x2xi32>
      %776 = arith.select %773, %775, %767 : vector<8x2xi1>, vector<8x2xi32>
      %777 = vector.extract_strided_slice %740 {offsets = [4, 0], sizes = [1, 2], strides = [1, 1]} : vector<8x2xf32> to vector<1x2xf32>
      %778 = vector.extract_strided_slice %19 {offsets = [0, 4], sizes = [8, 1], strides = [1, 1]} : vector<8x8xf32> to vector<8x1xf32>
      %779 = vector.broadcast %777 : vector<1x2xf32> to vector<8x2xf32>
      %780 = vector.broadcast %778 : vector<8x1xf32> to vector<8x2xf32>
      %781 = arith.addf %779, %780 : vector<8x2xf32>
      %782 = arith.cmpf ogt, %781, %774 : vector<8x2xf32>
      %783 = arith.select %782, %781, %774 : vector<8x2xi1>, vector<8x2xf32>
      %c4_i32_146 = arith.constant 4 : i32
      %784 = vector.broadcast %c4_i32_146 : i32 to vector<8x2xi32>
      %785 = arith.select %782, %784, %776 : vector<8x2xi1>, vector<8x2xi32>
      %786 = vector.extract_strided_slice %740 {offsets = [5, 0], sizes = [1, 2], strides = [1, 1]} : vector<8x2xf32> to vector<1x2xf32>
      %787 = vector.extract_strided_slice %19 {offsets = [0, 5], sizes = [8, 1], strides = [1, 1]} : vector<8x8xf32> to vector<8x1xf32>
      %788 = vector.broadcast %786 : vector<1x2xf32> to vector<8x2xf32>
      %789 = vector.broadcast %787 : vector<8x1xf32> to vector<8x2xf32>
      %790 = arith.addf %788, %789 : vector<8x2xf32>
      %791 = arith.cmpf ogt, %790, %783 : vector<8x2xf32>
      %792 = arith.select %791, %790, %783 : vector<8x2xi1>, vector<8x2xf32>
      %c5_i32_147 = arith.constant 5 : i32
      %793 = vector.broadcast %c5_i32_147 : i32 to vector<8x2xi32>
      %794 = arith.select %791, %793, %785 : vector<8x2xi1>, vector<8x2xi32>
      %795 = vector.extract_strided_slice %740 {offsets = [6, 0], sizes = [1, 2], strides = [1, 1]} : vector<8x2xf32> to vector<1x2xf32>
      %796 = vector.extract_strided_slice %19 {offsets = [0, 6], sizes = [8, 1], strides = [1, 1]} : vector<8x8xf32> to vector<8x1xf32>
      %797 = vector.broadcast %795 : vector<1x2xf32> to vector<8x2xf32>
      %798 = vector.broadcast %796 : vector<8x1xf32> to vector<8x2xf32>
      %799 = arith.addf %797, %798 : vector<8x2xf32>
      %800 = arith.cmpf ogt, %799, %792 : vector<8x2xf32>
      %801 = arith.select %800, %799, %792 : vector<8x2xi1>, vector<8x2xf32>
      %c6_i32_148 = arith.constant 6 : i32
      %802 = vector.broadcast %c6_i32_148 : i32 to vector<8x2xi32>
      %803 = arith.select %800, %802, %794 : vector<8x2xi1>, vector<8x2xi32>
      %c10_149 = arith.constant 10 : index
      %c0_150 = arith.constant 0 : index
      %c0_151 = arith.constant 0 : index
      %804 = vector.load %arg9[%c10_149, %c0_150, %c0_151] : memref<16x8x2xi32, #tpu.memory_space<vmem>>, vector<1x8x2xi32>
      %805 = vector.shape_cast %804 : vector<1x8x2xi32> to vector<8x2xi32>
      %806 = vector.shape_cast %803 : vector<8x2xi32> to vector<1x8x2xi32>
      tpu.vector_store %arg9[%c10_149, %c0_150, %c0_151], %806 {strides = array<i32>} : memref<16x8x2xi32, #tpu.memory_space<vmem>>, vector<1x8x2xi32>,
      %cst_152 = arith.constant 0.000000e+00 : f32
      %807 = vector.broadcast %cst_152 : f32 to vector<1x2xf32>
      %808 = arith.cmpf ogt, %743, %807 : vector<1x2xf32>
      %809 = arith.addf %801, %741 : vector<8x2xf32>
      %810 = vector.shape_cast %808 : vector<1x2xi1> to vector<1x2xi1>
      %811 = vector.broadcast %810 : vector<1x2xi1> to vector<8x2xi1>
      %812 = arith.select %811, %809, %740 : vector<8x2xi1>, vector<8x2xf32>
      %813 = vector.extract_strided_slice %18 {offsets = [0, 22], sizes = [8, 2], strides = [1, 1]} : vector<8x32xf32> to vector<8x2xf32>
      %c11 = arith.constant 11 : index
      %c0_153 = arith.constant 0 : index
      %c0_154 = arith.constant 0 : index
      %814 = vector.load %arg4[%c11, %c0_153, %c0_154] : memref<16x1x2xf32, #tpu.memory_space<vmem>>, vector<1x1x2xf32>
      %815 = vector.shape_cast %814 : vector<1x1x2xf32> to vector<1x2xf32>
      %816 = vector.extract_strided_slice %812 {offsets = [0, 0], sizes = [1, 2], strides = [1, 1]} : vector<8x2xf32> to vector<1x2xf32>
      %817 = vector.extract_strided_slice %19 {offsets = [0, 0], sizes = [8, 1], strides = [1, 1]} : vector<8x8xf32> to vector<8x1xf32>
      %818 = vector.broadcast %816 : vector<1x2xf32> to vector<8x2xf32>
      %819 = vector.broadcast %817 : vector<8x1xf32> to vector<8x2xf32>
      %820 = arith.addf %818, %819 : vector<8x2xf32>
      %c0_i32_155 = arith.constant 0 : i32
      %821 = vector.broadcast %c0_i32_155 : i32 to vector<8x2xi32>
      %822 = vector.extract_strided_slice %812 {offsets = [1, 0], sizes = [1, 2], strides = [1, 1]} : vector<8x2xf32> to vector<1x2xf32>
      %823 = vector.extract_strided_slice %19 {offsets = [0, 1], sizes = [8, 1], strides = [1, 1]} : vector<8x8xf32> to vector<8x1xf32>
      %824 = vector.broadcast %822 : vector<1x2xf32> to vector<8x2xf32>
      %825 = vector.broadcast %823 : vector<8x1xf32> to vector<8x2xf32>
      %826 = arith.addf %824, %825 : vector<8x2xf32>
      %827 = arith.cmpf ogt, %826, %820 : vector<8x2xf32>
      %828 = arith.select %827, %826, %820 : vector<8x2xi1>, vector<8x2xf32>
      %c1_i32_156 = arith.constant 1 : i32
      %829 = vector.broadcast %c1_i32_156 : i32 to vector<8x2xi32>
      %830 = arith.select %827, %829, %821 : vector<8x2xi1>, vector<8x2xi32>
      %831 = vector.extract_strided_slice %812 {offsets = [2, 0], sizes = [1, 2], strides = [1, 1]} : vector<8x2xf32> to vector<1x2xf32>
      %832 = vector.extract_strided_slice %19 {offsets = [0, 2], sizes = [8, 1], strides = [1, 1]} : vector<8x8xf32> to vector<8x1xf32>
      %833 = vector.broadcast %831 : vector<1x2xf32> to vector<8x2xf32>
      %834 = vector.broadcast %832 : vector<8x1xf32> to vector<8x2xf32>
      %835 = arith.addf %833, %834 : vector<8x2xf32>
      %836 = arith.cmpf ogt, %835, %828 : vector<8x2xf32>
      %837 = arith.select %836, %835, %828 : vector<8x2xi1>, vector<8x2xf32>
      %c2_i32_157 = arith.constant 2 : i32
      %838 = vector.broadcast %c2_i32_157 : i32 to vector<8x2xi32>
      %839 = arith.select %836, %838, %830 : vector<8x2xi1>, vector<8x2xi32>
      %840 = vector.extract_strided_slice %812 {offsets = [3, 0], sizes = [1, 2], strides = [1, 1]} : vector<8x2xf32> to vector<1x2xf32>
      %841 = vector.extract_strided_slice %19 {offsets = [0, 3], sizes = [8, 1], strides = [1, 1]} : vector<8x8xf32> to vector<8x1xf32>
      %842 = vector.broadcast %840 : vector<1x2xf32> to vector<8x2xf32>
      %843 = vector.broadcast %841 : vector<8x1xf32> to vector<8x2xf32>
      %844 = arith.addf %842, %843 : vector<8x2xf32>
      %845 = arith.cmpf ogt, %844, %837 : vector<8x2xf32>
      %846 = arith.select %845, %844, %837 : vector<8x2xi1>, vector<8x2xf32>
      %c3_i32_158 = arith.constant 3 : i32
      %847 = vector.broadcast %c3_i32_158 : i32 to vector<8x2xi32>
      %848 = arith.select %845, %847, %839 : vector<8x2xi1>, vector<8x2xi32>
      %849 = vector.extract_strided_slice %812 {offsets = [4, 0], sizes = [1, 2], strides = [1, 1]} : vector<8x2xf32> to vector<1x2xf32>
      %850 = vector.extract_strided_slice %19 {offsets = [0, 4], sizes = [8, 1], strides = [1, 1]} : vector<8x8xf32> to vector<8x1xf32>
      %851 = vector.broadcast %849 : vector<1x2xf32> to vector<8x2xf32>
      %852 = vector.broadcast %850 : vector<8x1xf32> to vector<8x2xf32>
      %853 = arith.addf %851, %852 : vector<8x2xf32>
      %854 = arith.cmpf ogt, %853, %846 : vector<8x2xf32>
      %855 = arith.select %854, %853, %846 : vector<8x2xi1>, vector<8x2xf32>
      %c4_i32_159 = arith.constant 4 : i32
      %856 = vector.broadcast %c4_i32_159 : i32 to vector<8x2xi32>
      %857 = arith.select %854, %856, %848 : vector<8x2xi1>, vector<8x2xi32>
      %858 = vector.extract_strided_slice %812 {offsets = [5, 0], sizes = [1, 2], strides = [1, 1]} : vector<8x2xf32> to vector<1x2xf32>
      %859 = vector.extract_strided_slice %19 {offsets = [0, 5], sizes = [8, 1], strides = [1, 1]} : vector<8x8xf32> to vector<8x1xf32>
      %860 = vector.broadcast %858 : vector<1x2xf32> to vector<8x2xf32>
      %861 = vector.broadcast %859 : vector<8x1xf32> to vector<8x2xf32>
      %862 = arith.addf %860, %861 : vector<8x2xf32>
      %863 = arith.cmpf ogt, %862, %855 : vector<8x2xf32>
      %864 = arith.select %863, %862, %855 : vector<8x2xi1>, vector<8x2xf32>
      %c5_i32_160 = arith.constant 5 : i32
      %865 = vector.broadcast %c5_i32_160 : i32 to vector<8x2xi32>
      %866 = arith.select %863, %865, %857 : vector<8x2xi1>, vector<8x2xi32>
      %867 = vector.extract_strided_slice %812 {offsets = [6, 0], sizes = [1, 2], strides = [1, 1]} : vector<8x2xf32> to vector<1x2xf32>
      %868 = vector.extract_strided_slice %19 {offsets = [0, 6], sizes = [8, 1], strides = [1, 1]} : vector<8x8xf32> to vector<8x1xf32>
      %869 = vector.broadcast %867 : vector<1x2xf32> to vector<8x2xf32>
      %870 = vector.broadcast %868 : vector<8x1xf32> to vector<8x2xf32>
      %871 = arith.addf %869, %870 : vector<8x2xf32>
      %872 = arith.cmpf ogt, %871, %864 : vector<8x2xf32>
      %873 = arith.select %872, %871, %864 : vector<8x2xi1>, vector<8x2xf32>
      %c6_i32_161 = arith.constant 6 : i32
      %874 = vector.broadcast %c6_i32_161 : i32 to vector<8x2xi32>
      %875 = arith.select %872, %874, %866 : vector<8x2xi1>, vector<8x2xi32>
      %c11_162 = arith.constant 11 : index
      %c0_163 = arith.constant 0 : index
      %c0_164 = arith.constant 0 : index
      %876 = vector.load %arg9[%c11_162, %c0_163, %c0_164] : memref<16x8x2xi32, #tpu.memory_space<vmem>>, vector<1x8x2xi32>
      %877 = vector.shape_cast %876 : vector<1x8x2xi32> to vector<8x2xi32>
      %878 = vector.shape_cast %875 : vector<8x2xi32> to vector<1x8x2xi32>
      tpu.vector_store %arg9[%c11_162, %c0_163, %c0_164], %878 {strides = array<i32>} : memref<16x8x2xi32, #tpu.memory_space<vmem>>, vector<1x8x2xi32>,
      %cst_165 = arith.constant 0.000000e+00 : f32
      %879 = vector.broadcast %cst_165 : f32 to vector<1x2xf32>
      %880 = arith.cmpf ogt, %815, %879 : vector<1x2xf32>
      %881 = arith.addf %873, %813 : vector<8x2xf32>
      %882 = vector.shape_cast %880 : vector<1x2xi1> to vector<1x2xi1>
      %883 = vector.broadcast %882 : vector<1x2xi1> to vector<8x2xi1>
      %884 = arith.select %883, %881, %812 : vector<8x2xi1>, vector<8x2xf32>
      %885 = vector.extract_strided_slice %18 {offsets = [0, 24], sizes = [8, 2], strides = [1, 1]} : vector<8x32xf32> to vector<8x2xf32>
      %c12 = arith.constant 12 : index
      %c0_166 = arith.constant 0 : index
      %c0_167 = arith.constant 0 : index
      %886 = vector.load %arg4[%c12, %c0_166, %c0_167] : memref<16x1x2xf32, #tpu.memory_space<vmem>>, vector<1x1x2xf32>
      %887 = vector.shape_cast %886 : vector<1x1x2xf32> to vector<1x2xf32>
      %888 = vector.extract_strided_slice %884 {offsets = [0, 0], sizes = [1, 2], strides = [1, 1]} : vector<8x2xf32> to vector<1x2xf32>
      %889 = vector.extract_strided_slice %19 {offsets = [0, 0], sizes = [8, 1], strides = [1, 1]} : vector<8x8xf32> to vector<8x1xf32>
      %890 = vector.broadcast %888 : vector<1x2xf32> to vector<8x2xf32>
      %891 = vector.broadcast %889 : vector<8x1xf32> to vector<8x2xf32>
      %892 = arith.addf %890, %891 : vector<8x2xf32>
      %c0_i32_168 = arith.constant 0 : i32
      %893 = vector.broadcast %c0_i32_168 : i32 to vector<8x2xi32>
      %894 = vector.extract_strided_slice %884 {offsets = [1, 0], sizes = [1, 2], strides = [1, 1]} : vector<8x2xf32> to vector<1x2xf32>
      %895 = vector.extract_strided_slice %19 {offsets = [0, 1], sizes = [8, 1], strides = [1, 1]} : vector<8x8xf32> to vector<8x1xf32>
      %896 = vector.broadcast %894 : vector<1x2xf32> to vector<8x2xf32>
      %897 = vector.broadcast %895 : vector<8x1xf32> to vector<8x2xf32>
      %898 = arith.addf %896, %897 : vector<8x2xf32>
      %899 = arith.cmpf ogt, %898, %892 : vector<8x2xf32>
      %900 = arith.select %899, %898, %892 : vector<8x2xi1>, vector<8x2xf32>
      %c1_i32_169 = arith.constant 1 : i32
      %901 = vector.broadcast %c1_i32_169 : i32 to vector<8x2xi32>
      %902 = arith.select %899, %901, %893 : vector<8x2xi1>, vector<8x2xi32>
      %903 = vector.extract_strided_slice %884 {offsets = [2, 0], sizes = [1, 2], strides = [1, 1]} : vector<8x2xf32> to vector<1x2xf32>
      %904 = vector.extract_strided_slice %19 {offsets = [0, 2], sizes = [8, 1], strides = [1, 1]} : vector<8x8xf32> to vector<8x1xf32>
      %905 = vector.broadcast %903 : vector<1x2xf32> to vector<8x2xf32>
      %906 = vector.broadcast %904 : vector<8x1xf32> to vector<8x2xf32>
      %907 = arith.addf %905, %906 : vector<8x2xf32>
      %908 = arith.cmpf ogt, %907, %900 : vector<8x2xf32>
      %909 = arith.select %908, %907, %900 : vector<8x2xi1>, vector<8x2xf32>
      %c2_i32_170 = arith.constant 2 : i32
      %910 = vector.broadcast %c2_i32_170 : i32 to vector<8x2xi32>
      %911 = arith.select %908, %910, %902 : vector<8x2xi1>, vector<8x2xi32>
      %912 = vector.extract_strided_slice %884 {offsets = [3, 0], sizes = [1, 2], strides = [1, 1]} : vector<8x2xf32> to vector<1x2xf32>
      %913 = vector.extract_strided_slice %19 {offsets = [0, 3], sizes = [8, 1], strides = [1, 1]} : vector<8x8xf32> to vector<8x1xf32>
      %914 = vector.broadcast %912 : vector<1x2xf32> to vector<8x2xf32>
      %915 = vector.broadcast %913 : vector<8x1xf32> to vector<8x2xf32>
      %916 = arith.addf %914, %915 : vector<8x2xf32>
      %917 = arith.cmpf ogt, %916, %909 : vector<8x2xf32>
      %918 = arith.select %917, %916, %909 : vector<8x2xi1>, vector<8x2xf32>
      %c3_i32_171 = arith.constant 3 : i32
      %919 = vector.broadcast %c3_i32_171 : i32 to vector<8x2xi32>
      %920 = arith.select %917, %919, %911 : vector<8x2xi1>, vector<8x2xi32>
      %921 = vector.extract_strided_slice %884 {offsets = [4, 0], sizes = [1, 2], strides = [1, 1]} : vector<8x2xf32> to vector<1x2xf32>
      %922 = vector.extract_strided_slice %19 {offsets = [0, 4], sizes = [8, 1], strides = [1, 1]} : vector<8x8xf32> to vector<8x1xf32>
      %923 = vector.broadcast %921 : vector<1x2xf32> to vector<8x2xf32>
      %924 = vector.broadcast %922 : vector<8x1xf32> to vector<8x2xf32>
      %925 = arith.addf %923, %924 : vector<8x2xf32>
      %926 = arith.cmpf ogt, %925, %918 : vector<8x2xf32>
      %927 = arith.select %926, %925, %918 : vector<8x2xi1>, vector<8x2xf32>
      %c4_i32_172 = arith.constant 4 : i32
      %928 = vector.broadcast %c4_i32_172 : i32 to vector<8x2xi32>
      %929 = arith.select %926, %928, %920 : vector<8x2xi1>, vector<8x2xi32>
      %930 = vector.extract_strided_slice %884 {offsets = [5, 0], sizes = [1, 2], strides = [1, 1]} : vector<8x2xf32> to vector<1x2xf32>
      %931 = vector.extract_strided_slice %19 {offsets = [0, 5], sizes = [8, 1], strides = [1, 1]} : vector<8x8xf32> to vector<8x1xf32>
      %932 = vector.broadcast %930 : vector<1x2xf32> to vector<8x2xf32>
      %933 = vector.broadcast %931 : vector<8x1xf32> to vector<8x2xf32>
      %934 = arith.addf %932, %933 : vector<8x2xf32>
      %935 = arith.cmpf ogt, %934, %927 : vector<8x2xf32>
      %936 = arith.select %935, %934, %927 : vector<8x2xi1>, vector<8x2xf32>
      %c5_i32_173 = arith.constant 5 : i32
      %937 = vector.broadcast %c5_i32_173 : i32 to vector<8x2xi32>
      %938 = arith.select %935, %937, %929 : vector<8x2xi1>, vector<8x2xi32>
      %939 = vector.extract_strided_slice %884 {offsets = [6, 0], sizes = [1, 2], strides = [1, 1]} : vector<8x2xf32> to vector<1x2xf32>
      %940 = vector.extract_strided_slice %19 {offsets = [0, 6], sizes = [8, 1], strides = [1, 1]} : vector<8x8xf32> to vector<8x1xf32>
      %941 = vector.broadcast %939 : vector<1x2xf32> to vector<8x2xf32>
      %942 = vector.broadcast %940 : vector<8x1xf32> to vector<8x2xf32>
      %943 = arith.addf %941, %942 : vector<8x2xf32>
      %944 = arith.cmpf ogt, %943, %936 : vector<8x2xf32>
      %945 = arith.select %944, %943, %936 : vector<8x2xi1>, vector<8x2xf32>
      %c6_i32_174 = arith.constant 6 : i32
      %946 = vector.broadcast %c6_i32_174 : i32 to vector<8x2xi32>
      %947 = arith.select %944, %946, %938 : vector<8x2xi1>, vector<8x2xi32>
      %c12_175 = arith.constant 12 : index
      %c0_176 = arith.constant 0 : index
      %c0_177 = arith.constant 0 : index
      %948 = vector.load %arg9[%c12_175, %c0_176, %c0_177] : memref<16x8x2xi32, #tpu.memory_space<vmem>>, vector<1x8x2xi32>
      %949 = vector.shape_cast %948 : vector<1x8x2xi32> to vector<8x2xi32>
      %950 = vector.shape_cast %947 : vector<8x2xi32> to vector<1x8x2xi32>
      tpu.vector_store %arg9[%c12_175, %c0_176, %c0_177], %950 {strides = array<i32>} : memref<16x8x2xi32, #tpu.memory_space<vmem>>, vector<1x8x2xi32>,
      %cst_178 = arith.constant 0.000000e+00 : f32
      %951 = vector.broadcast %cst_178 : f32 to vector<1x2xf32>
      %952 = arith.cmpf ogt, %887, %951 : vector<1x2xf32>
      %953 = arith.addf %945, %885 : vector<8x2xf32>
      %954 = vector.shape_cast %952 : vector<1x2xi1> to vector<1x2xi1>
      %955 = vector.broadcast %954 : vector<1x2xi1> to vector<8x2xi1>
      %956 = arith.select %955, %953, %884 : vector<8x2xi1>, vector<8x2xf32>
      %957 = vector.extract_strided_slice %18 {offsets = [0, 26], sizes = [8, 2], strides = [1, 1]} : vector<8x32xf32> to vector<8x2xf32>
      %c13 = arith.constant 13 : index
      %c0_179 = arith.constant 0 : index
      %c0_180 = arith.constant 0 : index
      %958 = vector.load %arg4[%c13, %c0_179, %c0_180] : memref<16x1x2xf32, #tpu.memory_space<vmem>>, vector<1x1x2xf32>
      %959 = vector.shape_cast %958 : vector<1x1x2xf32> to vector<1x2xf32>
      %960 = vector.extract_strided_slice %956 {offsets = [0, 0], sizes = [1, 2], strides = [1, 1]} : vector<8x2xf32> to vector<1x2xf32>
      %961 = vector.extract_strided_slice %19 {offsets = [0, 0], sizes = [8, 1], strides = [1, 1]} : vector<8x8xf32> to vector<8x1xf32>
      %962 = vector.broadcast %960 : vector<1x2xf32> to vector<8x2xf32>
      %963 = vector.broadcast %961 : vector<8x1xf32> to vector<8x2xf32>
      %964 = arith.addf %962, %963 : vector<8x2xf32>
      %c0_i32_181 = arith.constant 0 : i32
      %965 = vector.broadcast %c0_i32_181 : i32 to vector<8x2xi32>
      %966 = vector.extract_strided_slice %956 {offsets = [1, 0], sizes = [1, 2], strides = [1, 1]} : vector<8x2xf32> to vector<1x2xf32>
      %967 = vector.extract_strided_slice %19 {offsets = [0, 1], sizes = [8, 1], strides = [1, 1]} : vector<8x8xf32> to vector<8x1xf32>
      %968 = vector.broadcast %966 : vector<1x2xf32> to vector<8x2xf32>
      %969 = vector.broadcast %967 : vector<8x1xf32> to vector<8x2xf32>
      %970 = arith.addf %968, %969 : vector<8x2xf32>
      %971 = arith.cmpf ogt, %970, %964 : vector<8x2xf32>
      %972 = arith.select %971, %970, %964 : vector<8x2xi1>, vector<8x2xf32>
      %c1_i32_182 = arith.constant 1 : i32
      %973 = vector.broadcast %c1_i32_182 : i32 to vector<8x2xi32>
      %974 = arith.select %971, %973, %965 : vector<8x2xi1>, vector<8x2xi32>
      %975 = vector.extract_strided_slice %956 {offsets = [2, 0], sizes = [1, 2], strides = [1, 1]} : vector<8x2xf32> to vector<1x2xf32>
      %976 = vector.extract_strided_slice %19 {offsets = [0, 2], sizes = [8, 1], strides = [1, 1]} : vector<8x8xf32> to vector<8x1xf32>
      %977 = vector.broadcast %975 : vector<1x2xf32> to vector<8x2xf32>
      %978 = vector.broadcast %976 : vector<8x1xf32> to vector<8x2xf32>
      %979 = arith.addf %977, %978 : vector<8x2xf32>
      %980 = arith.cmpf ogt, %979, %972 : vector<8x2xf32>
      %981 = arith.select %980, %979, %972 : vector<8x2xi1>, vector<8x2xf32>
      %c2_i32_183 = arith.constant 2 : i32
      %982 = vector.broadcast %c2_i32_183 : i32 to vector<8x2xi32>
      %983 = arith.select %980, %982, %974 : vector<8x2xi1>, vector<8x2xi32>
      %984 = vector.extract_strided_slice %956 {offsets = [3, 0], sizes = [1, 2], strides = [1, 1]} : vector<8x2xf32> to vector<1x2xf32>
      %985 = vector.extract_strided_slice %19 {offsets = [0, 3], sizes = [8, 1], strides = [1, 1]} : vector<8x8xf32> to vector<8x1xf32>
      %986 = vector.broadcast %984 : vector<1x2xf32> to vector<8x2xf32>
      %987 = vector.broadcast %985 : vector<8x1xf32> to vector<8x2xf32>
      %988 = arith.addf %986, %987 : vector<8x2xf32>
      %989 = arith.cmpf ogt, %988, %981 : vector<8x2xf32>
      %990 = arith.select %989, %988, %981 : vector<8x2xi1>, vector<8x2xf32>
      %c3_i32_184 = arith.constant 3 : i32
      %991 = vector.broadcast %c3_i32_184 : i32 to vector<8x2xi32>
      %992 = arith.select %989, %991, %983 : vector<8x2xi1>, vector<8x2xi32>
      %993 = vector.extract_strided_slice %956 {offsets = [4, 0], sizes = [1, 2], strides = [1, 1]} : vector<8x2xf32> to vector<1x2xf32>
      %994 = vector.extract_strided_slice %19 {offsets = [0, 4], sizes = [8, 1], strides = [1, 1]} : vector<8x8xf32> to vector<8x1xf32>
      %995 = vector.broadcast %993 : vector<1x2xf32> to vector<8x2xf32>
      %996 = vector.broadcast %994 : vector<8x1xf32> to vector<8x2xf32>
      %997 = arith.addf %995, %996 : vector<8x2xf32>
      %998 = arith.cmpf ogt, %997, %990 : vector<8x2xf32>
      %999 = arith.select %998, %997, %990 : vector<8x2xi1>, vector<8x2xf32>
      %c4_i32_185 = arith.constant 4 : i32
      %1000 = vector.broadcast %c4_i32_185 : i32 to vector<8x2xi32>
      %1001 = arith.select %998, %1000, %992 : vector<8x2xi1>, vector<8x2xi32>
      %1002 = vector.extract_strided_slice %956 {offsets = [5, 0], sizes = [1, 2], strides = [1, 1]} : vector<8x2xf32> to vector<1x2xf32>
      %1003 = vector.extract_strided_slice %19 {offsets = [0, 5], sizes = [8, 1], strides = [1, 1]} : vector<8x8xf32> to vector<8x1xf32>
      %1004 = vector.broadcast %1002 : vector<1x2xf32> to vector<8x2xf32>
      %1005 = vector.broadcast %1003 : vector<8x1xf32> to vector<8x2xf32>
      %1006 = arith.addf %1004, %1005 : vector<8x2xf32>
      %1007 = arith.cmpf ogt, %1006, %999 : vector<8x2xf32>
      %1008 = arith.select %1007, %1006, %999 : vector<8x2xi1>, vector<8x2xf32>
      %c5_i32_186 = arith.constant 5 : i32
      %1009 = vector.broadcast %c5_i32_186 : i32 to vector<8x2xi32>
      %1010 = arith.select %1007, %1009, %1001 : vector<8x2xi1>, vector<8x2xi32>
      %1011 = vector.extract_strided_slice %956 {offsets = [6, 0], sizes = [1, 2], strides = [1, 1]} : vector<8x2xf32> to vector<1x2xf32>
      %1012 = vector.extract_strided_slice %19 {offsets = [0, 6], sizes = [8, 1], strides = [1, 1]} : vector<8x8xf32> to vector<8x1xf32>
      %1013 = vector.broadcast %1011 : vector<1x2xf32> to vector<8x2xf32>
      %1014 = vector.broadcast %1012 : vector<8x1xf32> to vector<8x2xf32>
      %1015 = arith.addf %1013, %1014 : vector<8x2xf32>
      %1016 = arith.cmpf ogt, %1015, %1008 : vector<8x2xf32>
      %1017 = arith.select %1016, %1015, %1008 : vector<8x2xi1>, vector<8x2xf32>
      %c6_i32_187 = arith.constant 6 : i32
      %1018 = vector.broadcast %c6_i32_187 : i32 to vector<8x2xi32>
      %1019 = arith.select %1016, %1018, %1010 : vector<8x2xi1>, vector<8x2xi32>
      %c13_188 = arith.constant 13 : index
      %c0_189 = arith.constant 0 : index
      %c0_190 = arith.constant 0 : index
      %1020 = vector.load %arg9[%c13_188, %c0_189, %c0_190] : memref<16x8x2xi32, #tpu.memory_space<vmem>>, vector<1x8x2xi32>
      %1021 = vector.shape_cast %1020 : vector<1x8x2xi32> to vector<8x2xi32>
      %1022 = vector.shape_cast %1019 : vector<8x2xi32> to vector<1x8x2xi32>
      tpu.vector_store %arg9[%c13_188, %c0_189, %c0_190], %1022 {strides = array<i32>} : memref<16x8x2xi32, #tpu.memory_space<vmem>>, vector<1x8x2xi32>,
      %cst_191 = arith.constant 0.000000e+00 : f32
      %1023 = vector.broadcast %cst_191 : f32 to vector<1x2xf32>
      %1024 = arith.cmpf ogt, %959, %1023 : vector<1x2xf32>
      %1025 = arith.addf %1017, %957 : vector<8x2xf32>
      %1026 = vector.shape_cast %1024 : vector<1x2xi1> to vector<1x2xi1>
      %1027 = vector.broadcast %1026 : vector<1x2xi1> to vector<8x2xi1>
      %1028 = arith.select %1027, %1025, %956 : vector<8x2xi1>, vector<8x2xf32>
      %1029 = vector.extract_strided_slice %18 {offsets = [0, 28], sizes = [8, 2], strides = [1, 1]} : vector<8x32xf32> to vector<8x2xf32>
      %c14 = arith.constant 14 : index
      %c0_192 = arith.constant 0 : index
      %c0_193 = arith.constant 0 : index
      %1030 = vector.load %arg4[%c14, %c0_192, %c0_193] : memref<16x1x2xf32, #tpu.memory_space<vmem>>, vector<1x1x2xf32>
      %1031 = vector.shape_cast %1030 : vector<1x1x2xf32> to vector<1x2xf32>
      %1032 = vector.extract_strided_slice %1028 {offsets = [0, 0], sizes = [1, 2], strides = [1, 1]} : vector<8x2xf32> to vector<1x2xf32>
      %1033 = vector.extract_strided_slice %19 {offsets = [0, 0], sizes = [8, 1], strides = [1, 1]} : vector<8x8xf32> to vector<8x1xf32>
      %1034 = vector.broadcast %1032 : vector<1x2xf32> to vector<8x2xf32>
      %1035 = vector.broadcast %1033 : vector<8x1xf32> to vector<8x2xf32>
      %1036 = arith.addf %1034, %1035 : vector<8x2xf32>
      %c0_i32_194 = arith.constant 0 : i32
      %1037 = vector.broadcast %c0_i32_194 : i32 to vector<8x2xi32>
      %1038 = vector.extract_strided_slice %1028 {offsets = [1, 0], sizes = [1, 2], strides = [1, 1]} : vector<8x2xf32> to vector<1x2xf32>
      %1039 = vector.extract_strided_slice %19 {offsets = [0, 1], sizes = [8, 1], strides = [1, 1]} : vector<8x8xf32> to vector<8x1xf32>
      %1040 = vector.broadcast %1038 : vector<1x2xf32> to vector<8x2xf32>
      %1041 = vector.broadcast %1039 : vector<8x1xf32> to vector<8x2xf32>
      %1042 = arith.addf %1040, %1041 : vector<8x2xf32>
      %1043 = arith.cmpf ogt, %1042, %1036 : vector<8x2xf32>
      %1044 = arith.select %1043, %1042, %1036 : vector<8x2xi1>, vector<8x2xf32>
      %c1_i32_195 = arith.constant 1 : i32
      %1045 = vector.broadcast %c1_i32_195 : i32 to vector<8x2xi32>
      %1046 = arith.select %1043, %1045, %1037 : vector<8x2xi1>, vector<8x2xi32>
      %1047 = vector.extract_strided_slice %1028 {offsets = [2, 0], sizes = [1, 2], strides = [1, 1]} : vector<8x2xf32> to vector<1x2xf32>
      %1048 = vector.extract_strided_slice %19 {offsets = [0, 2], sizes = [8, 1], strides = [1, 1]} : vector<8x8xf32> to vector<8x1xf32>
      %1049 = vector.broadcast %1047 : vector<1x2xf32> to vector<8x2xf32>
      %1050 = vector.broadcast %1048 : vector<8x1xf32> to vector<8x2xf32>
      %1051 = arith.addf %1049, %1050 : vector<8x2xf32>
      %1052 = arith.cmpf ogt, %1051, %1044 : vector<8x2xf32>
      %1053 = arith.select %1052, %1051, %1044 : vector<8x2xi1>, vector<8x2xf32>
      %c2_i32_196 = arith.constant 2 : i32
      %1054 = vector.broadcast %c2_i32_196 : i32 to vector<8x2xi32>
      %1055 = arith.select %1052, %1054, %1046 : vector<8x2xi1>, vector<8x2xi32>
      %1056 = vector.extract_strided_slice %1028 {offsets = [3, 0], sizes = [1, 2], strides = [1, 1]} : vector<8x2xf32> to vector<1x2xf32>
      %1057 = vector.extract_strided_slice %19 {offsets = [0, 3], sizes = [8, 1], strides = [1, 1]} : vector<8x8xf32> to vector<8x1xf32>
      %1058 = vector.broadcast %1056 : vector<1x2xf32> to vector<8x2xf32>
      %1059 = vector.broadcast %1057 : vector<8x1xf32> to vector<8x2xf32>
      %1060 = arith.addf %1058, %1059 : vector<8x2xf32>
      %1061 = arith.cmpf ogt, %1060, %1053 : vector<8x2xf32>
      %1062 = arith.select %1061, %1060, %1053 : vector<8x2xi1>, vector<8x2xf32>
      %c3_i32_197 = arith.constant 3 : i32
      %1063 = vector.broadcast %c3_i32_197 : i32 to vector<8x2xi32>
      %1064 = arith.select %1061, %1063, %1055 : vector<8x2xi1>, vector<8x2xi32>
      %1065 = vector.extract_strided_slice %1028 {offsets = [4, 0], sizes = [1, 2], strides = [1, 1]} : vector<8x2xf32> to vector<1x2xf32>
      %1066 = vector.extract_strided_slice %19 {offsets = [0, 4], sizes = [8, 1], strides = [1, 1]} : vector<8x8xf32> to vector<8x1xf32>
      %1067 = vector.broadcast %1065 : vector<1x2xf32> to vector<8x2xf32>
      %1068 = vector.broadcast %1066 : vector<8x1xf32> to vector<8x2xf32>
      %1069 = arith.addf %1067, %1068 : vector<8x2xf32>
      %1070 = arith.cmpf ogt, %1069, %1062 : vector<8x2xf32>
      %1071 = arith.select %1070, %1069, %1062 : vector<8x2xi1>, vector<8x2xf32>
      %c4_i32_198 = arith.constant 4 : i32
      %1072 = vector.broadcast %c4_i32_198 : i32 to vector<8x2xi32>
      %1073 = arith.select %1070, %1072, %1064 : vector<8x2xi1>, vector<8x2xi32>
      %1074 = vector.extract_strided_slice %1028 {offsets = [5, 0], sizes = [1, 2], strides = [1, 1]} : vector<8x2xf32> to vector<1x2xf32>
      %1075 = vector.extract_strided_slice %19 {offsets = [0, 5], sizes = [8, 1], strides = [1, 1]} : vector<8x8xf32> to vector<8x1xf32>
      %1076 = vector.broadcast %1074 : vector<1x2xf32> to vector<8x2xf32>
      %1077 = vector.broadcast %1075 : vector<8x1xf32> to vector<8x2xf32>
      %1078 = arith.addf %1076, %1077 : vector<8x2xf32>
      %1079 = arith.cmpf ogt, %1078, %1071 : vector<8x2xf32>
      %1080 = arith.select %1079, %1078, %1071 : vector<8x2xi1>, vector<8x2xf32>
      %c5_i32_199 = arith.constant 5 : i32
      %1081 = vector.broadcast %c5_i32_199 : i32 to vector<8x2xi32>
      %1082 = arith.select %1079, %1081, %1073 : vector<8x2xi1>, vector<8x2xi32>
      %1083 = vector.extract_strided_slice %1028 {offsets = [6, 0], sizes = [1, 2], strides = [1, 1]} : vector<8x2xf32> to vector<1x2xf32>
      %1084 = vector.extract_strided_slice %19 {offsets = [0, 6], sizes = [8, 1], strides = [1, 1]} : vector<8x8xf32> to vector<8x1xf32>
      %1085 = vector.broadcast %1083 : vector<1x2xf32> to vector<8x2xf32>
      %1086 = vector.broadcast %1084 : vector<8x1xf32> to vector<8x2xf32>
      %1087 = arith.addf %1085, %1086 : vector<8x2xf32>
      %1088 = arith.cmpf ogt, %1087, %1080 : vector<8x2xf32>
      %1089 = arith.select %1088, %1087, %1080 : vector<8x2xi1>, vector<8x2xf32>
      %c6_i32_200 = arith.constant 6 : i32
      %1090 = vector.broadcast %c6_i32_200 : i32 to vector<8x2xi32>
      %1091 = arith.select %1088, %1090, %1082 : vector<8x2xi1>, vector<8x2xi32>
      %c14_201 = arith.constant 14 : index
      %c0_202 = arith.constant 0 : index
      %c0_203 = arith.constant 0 : index
      %1092 = vector.load %arg9[%c14_201, %c0_202, %c0_203] : memref<16x8x2xi32, #tpu.memory_space<vmem>>, vector<1x8x2xi32>
      %1093 = vector.shape_cast %1092 : vector<1x8x2xi32> to vector<8x2xi32>
      %1094 = vector.shape_cast %1091 : vector<8x2xi32> to vector<1x8x2xi32>
      tpu.vector_store %arg9[%c14_201, %c0_202, %c0_203], %1094 {strides = array<i32>} : memref<16x8x2xi32, #tpu.memory_space<vmem>>, vector<1x8x2xi32>,
      %cst_204 = arith.constant 0.000000e+00 : f32
      %1095 = vector.broadcast %cst_204 : f32 to vector<1x2xf32>
      %1096 = arith.cmpf ogt, %1031, %1095 : vector<1x2xf32>
      %1097 = arith.addf %1089, %1029 : vector<8x2xf32>
      %1098 = vector.shape_cast %1096 : vector<1x2xi1> to vector<1x2xi1>
      %1099 = vector.broadcast %1098 : vector<1x2xi1> to vector<8x2xi1>
      %1100 = arith.select %1099, %1097, %1028 : vector<8x2xi1>, vector<8x2xf32>
      %1101 = vector.extract_strided_slice %18 {offsets = [0, 30], sizes = [8, 2], strides = [1, 1]} : vector<8x32xf32> to vector<8x2xf32>
      %c15 = arith.constant 15 : index
      %c0_205 = arith.constant 0 : index
      %c0_206 = arith.constant 0 : index
      %1102 = vector.load %arg4[%c15, %c0_205, %c0_206] : memref<16x1x2xf32, #tpu.memory_space<vmem>>, vector<1x1x2xf32>
      %1103 = vector.shape_cast %1102 : vector<1x1x2xf32> to vector<1x2xf32>
      %1104 = vector.extract_strided_slice %1100 {offsets = [0, 0], sizes = [1, 2], strides = [1, 1]} : vector<8x2xf32> to vector<1x2xf32>
      %1105 = vector.extract_strided_slice %19 {offsets = [0, 0], sizes = [8, 1], strides = [1, 1]} : vector<8x8xf32> to vector<8x1xf32>
      %1106 = vector.broadcast %1104 : vector<1x2xf32> to vector<8x2xf32>
      %1107 = vector.broadcast %1105 : vector<8x1xf32> to vector<8x2xf32>
      %1108 = arith.addf %1106, %1107 : vector<8x2xf32>
      %c0_i32_207 = arith.constant 0 : i32
      %1109 = vector.broadcast %c0_i32_207 : i32 to vector<8x2xi32>
      %1110 = vector.extract_strided_slice %1100 {offsets = [1, 0], sizes = [1, 2], strides = [1, 1]} : vector<8x2xf32> to vector<1x2xf32>
      %1111 = vector.extract_strided_slice %19 {offsets = [0, 1], sizes = [8, 1], strides = [1, 1]} : vector<8x8xf32> to vector<8x1xf32>
      %1112 = vector.broadcast %1110 : vector<1x2xf32> to vector<8x2xf32>
      %1113 = vector.broadcast %1111 : vector<8x1xf32> to vector<8x2xf32>
      %1114 = arith.addf %1112, %1113 : vector<8x2xf32>
      %1115 = arith.cmpf ogt, %1114, %1108 : vector<8x2xf32>
      %1116 = arith.select %1115, %1114, %1108 : vector<8x2xi1>, vector<8x2xf32>
      %c1_i32_208 = arith.constant 1 : i32
      %1117 = vector.broadcast %c1_i32_208 : i32 to vector<8x2xi32>
      %1118 = arith.select %1115, %1117, %1109 : vector<8x2xi1>, vector<8x2xi32>
      %1119 = vector.extract_strided_slice %1100 {offsets = [2, 0], sizes = [1, 2], strides = [1, 1]} : vector<8x2xf32> to vector<1x2xf32>
      %1120 = vector.extract_strided_slice %19 {offsets = [0, 2], sizes = [8, 1], strides = [1, 1]} : vector<8x8xf32> to vector<8x1xf32>
      %1121 = vector.broadcast %1119 : vector<1x2xf32> to vector<8x2xf32>
      %1122 = vector.broadcast %1120 : vector<8x1xf32> to vector<8x2xf32>
      %1123 = arith.addf %1121, %1122 : vector<8x2xf32>
      %1124 = arith.cmpf ogt, %1123, %1116 : vector<8x2xf32>
      %1125 = arith.select %1124, %1123, %1116 : vector<8x2xi1>, vector<8x2xf32>
      %c2_i32_209 = arith.constant 2 : i32
      %1126 = vector.broadcast %c2_i32_209 : i32 to vector<8x2xi32>
      %1127 = arith.select %1124, %1126, %1118 : vector<8x2xi1>, vector<8x2xi32>
      %1128 = vector.extract_strided_slice %1100 {offsets = [3, 0], sizes = [1, 2], strides = [1, 1]} : vector<8x2xf32> to vector<1x2xf32>
      %1129 = vector.extract_strided_slice %19 {offsets = [0, 3], sizes = [8, 1], strides = [1, 1]} : vector<8x8xf32> to vector<8x1xf32>
      %1130 = vector.broadcast %1128 : vector<1x2xf32> to vector<8x2xf32>
      %1131 = vector.broadcast %1129 : vector<8x1xf32> to vector<8x2xf32>
      %1132 = arith.addf %1130, %1131 : vector<8x2xf32>
      %1133 = arith.cmpf ogt, %1132, %1125 : vector<8x2xf32>
      %1134 = arith.select %1133, %1132, %1125 : vector<8x2xi1>, vector<8x2xf32>
      %c3_i32_210 = arith.constant 3 : i32
      %1135 = vector.broadcast %c3_i32_210 : i32 to vector<8x2xi32>
      %1136 = arith.select %1133, %1135, %1127 : vector<8x2xi1>, vector<8x2xi32>
      %1137 = vector.extract_strided_slice %1100 {offsets = [4, 0], sizes = [1, 2], strides = [1, 1]} : vector<8x2xf32> to vector<1x2xf32>
      %1138 = vector.extract_strided_slice %19 {offsets = [0, 4], sizes = [8, 1], strides = [1, 1]} : vector<8x8xf32> to vector<8x1xf32>
      %1139 = vector.broadcast %1137 : vector<1x2xf32> to vector<8x2xf32>
      %1140 = vector.broadcast %1138 : vector<8x1xf32> to vector<8x2xf32>
      %1141 = arith.addf %1139, %1140 : vector<8x2xf32>
      %1142 = arith.cmpf ogt, %1141, %1134 : vector<8x2xf32>
      %1143 = arith.select %1142, %1141, %1134 : vector<8x2xi1>, vector<8x2xf32>
      %c4_i32_211 = arith.constant 4 : i32
      %1144 = vector.broadcast %c4_i32_211 : i32 to vector<8x2xi32>
      %1145 = arith.select %1142, %1144, %1136 : vector<8x2xi1>, vector<8x2xi32>
      %1146 = vector.extract_strided_slice %1100 {offsets = [5, 0], sizes = [1, 2], strides = [1, 1]} : vector<8x2xf32> to vector<1x2xf32>
      %1147 = vector.extract_strided_slice %19 {offsets = [0, 5], sizes = [8, 1], strides = [1, 1]} : vector<8x8xf32> to vector<8x1xf32>
      %1148 = vector.broadcast %1146 : vector<1x2xf32> to vector<8x2xf32>
      %1149 = vector.broadcast %1147 : vector<8x1xf32> to vector<8x2xf32>
      %1150 = arith.addf %1148, %1149 : vector<8x2xf32>
      %1151 = arith.cmpf ogt, %1150, %1143 : vector<8x2xf32>
      %1152 = arith.select %1151, %1150, %1143 : vector<8x2xi1>, vector<8x2xf32>
      %c5_i32_212 = arith.constant 5 : i32
      %1153 = vector.broadcast %c5_i32_212 : i32 to vector<8x2xi32>
      %1154 = arith.select %1151, %1153, %1145 : vector<8x2xi1>, vector<8x2xi32>
      %1155 = vector.extract_strided_slice %1100 {offsets = [6, 0], sizes = [1, 2], strides = [1, 1]} : vector<8x2xf32> to vector<1x2xf32>
      %1156 = vector.extract_strided_slice %19 {offsets = [0, 6], sizes = [8, 1], strides = [1, 1]} : vector<8x8xf32> to vector<8x1xf32>
      %1157 = vector.broadcast %1155 : vector<1x2xf32> to vector<8x2xf32>
      %1158 = vector.broadcast %1156 : vector<8x1xf32> to vector<8x2xf32>
      %1159 = arith.addf %1157, %1158 : vector<8x2xf32>
      %1160 = arith.cmpf ogt, %1159, %1152 : vector<8x2xf32>
      %1161 = arith.select %1160, %1159, %1152 : vector<8x2xi1>, vector<8x2xf32>
      %c6_i32_213 = arith.constant 6 : i32
      %1162 = vector.broadcast %c6_i32_213 : i32 to vector<8x2xi32>
      %1163 = arith.select %1160, %1162, %1154 : vector<8x2xi1>, vector<8x2xi32>
      %c15_214 = arith.constant 15 : index
      %c0_215 = arith.constant 0 : index
      %c0_216 = arith.constant 0 : index
      %1164 = vector.load %arg9[%c15_214, %c0_215, %c0_216] : memref<16x8x2xi32, #tpu.memory_space<vmem>>, vector<1x8x2xi32>
      %1165 = vector.shape_cast %1164 : vector<1x8x2xi32> to vector<8x2xi32>
      %1166 = vector.shape_cast %1163 : vector<8x2xi32> to vector<1x8x2xi32>
      tpu.vector_store %arg9[%c15_214, %c0_215, %c0_216], %1166 {strides = array<i32>} : memref<16x8x2xi32, #tpu.memory_space<vmem>>, vector<1x8x2xi32>,
      %cst_217 = arith.constant 0.000000e+00 : f32
      %1167 = vector.broadcast %cst_217 : f32 to vector<1x2xf32>
      %1168 = arith.cmpf ogt, %1103, %1167 : vector<1x2xf32>
      %1169 = arith.addf %1161, %1101 : vector<8x2xf32>
      %1170 = vector.shape_cast %1168 : vector<1x2xi1> to vector<1x2xi1>
      %1171 = vector.broadcast %1170 : vector<1x2xi1> to vector<8x2xi1>
      %1172 = arith.select %1171, %1169, %1100 : vector<8x2xi1>, vector<8x2xf32>
      %c0_218 = arith.constant 0 : index
      %c0_219 = arith.constant 0 : index
      %1173 = vector.load %arg11[%c0_218, %c0_219] : memref<8x2xf32, #tpu.memory_space<vmem>>, vector<8x2xf32>
      tpu.vector_store %arg11[%c0_218, %c0_219], %1172 {strides = array<i32>} : memref<8x2xf32, #tpu.memory_space<vmem>>, vector<8x2xf32>,
    } else {
    }
    %c0_i32_3 = arith.constant 0 : i32
    %9 = arith.cmpi eq, %arg1, %c0_i32_3 : i32
    %10 = arith.extui %9 : i1 to i32
    %c0_i32_4 = arith.constant 0 : i32
    %11 = arith.cmpi ne, %10, %c0_i32_4 : i32
    scf.if %11 {
      %c0 = arith.constant 0 : index
      %c0_5 = arith.constant 0 : index
      %12 = vector.load %arg11[%c0, %c0_5] : memref<8x2xf32, #tpu.memory_space<vmem>>, vector<8x2xf32>
      %c0_6 = arith.constant 0 : index
      %c0_7 = arith.constant 0 : index
      %13 = vector.load %arg8[%c0_6, %c0_7] : memref<8x1xf32, #tpu.memory_space<vmem>>, vector<8x1xf32>
      %14 = vector.broadcast %13 : vector<8x1xf32> to vector<8x2xf32>
      %15 = arith.addf %12, %14 : vector<8x2xf32>
      %c0_8 = arith.constant 0 : index
      %c0_9 = arith.constant 0 : index
      %16 = vector.load %arg10[%c0_8, %c0_9] : memref<8x2xf32, #tpu.memory_space<vmem>>, vector<8x2xf32>
      tpu.vector_store %arg10[%c0_8, %c0_9], %15 {strides = array<i32>} : memref<8x2xf32, #tpu.memory_space<vmem>>, vector<8x2xf32>,
    } else {
    }
    return
  }
  func.func @transform_0(%arg0: i32, %arg1: i32, %arg2: memref<1x1xi32, #tpu.memory_space<smem>>) -> (i32, i32, i32) {
    %c0_i32 = arith.constant 0 : i32
    %c0_i32_0 = arith.constant 0 : i32
    return %arg1, %arg0, %c0_i32 : i32, i32, i32
  }
  func.func @transform_1(%arg0: i32, %arg1: i32, %arg2: memref<1x1xi32, #tpu.memory_space<smem>>) -> (i32, i32, i32) {
    %c0_i32 = arith.constant 0 : i32
    %c0_i32_0 = arith.constant 0 : i32
    return %arg1, %c0_i32, %arg0 : i32, i32, i32
  }
  func.func @transform_2(%arg0: i32, %arg1: i32, %arg2: memref<1x1xi32, #tpu.memory_space<smem>>) -> (i32, i32) {
    %c0_i32 = arith.constant 0 : i32
    %c0_i32_0 = arith.constant 0 : i32
    %c0_i32_1 = arith.constant 0 : i32
    return %c0_i32, %c0_i32_0 : i32, i32
  }
  func.func @transform_3(%arg0: i32, %arg1: i32, %arg2: memref<1x1xi32, #tpu.memory_space<smem>>) -> (i32, i32) {
    %c0_i32 = arith.constant 0 : i32
    %c0_i32_0 = arith.constant 0 : i32
    %c0_i32_1 = arith.constant 0 : i32
    return %c0_i32, %c0_i32_0 : i32, i32
  }
  func.func @transform_4(%arg0: i32, %arg1: i32, %arg2: memref<1x1xi32, #tpu.memory_space<smem>>) -> (i32, i32) {
    %c0_i32 = arith.constant 0 : i32
    %c0_i32_0 = arith.constant 0 : i32
    %c0_i32_1 = arith.constant 0 : i32
    return %c0_i32, %c0_i32_0 : i32, i32
  }
  func.func @transform_5(%arg0: i32, %arg1: i32, %arg2: memref<1x1xi32, #tpu.memory_space<smem>>) -> (i32, i32) {
    %c0_i32 = arith.constant 0 : i32
    %c0_i32_0 = arith.constant 0 : i32
    %c0_i32_1 = arith.constant 0 : i32
    return %c0_i32, %c0_i32_0 : i32, i32
  }
  func.func @transform_6(%arg0: i32, %arg1: i32, %arg2: memref<1x1xi32, #tpu.memory_space<smem>>) -> (i32, i32, i32) {
    %c0_i32 = arith.constant 0 : i32
    %c0_i32_0 = arith.constant 0 : i32
    return %arg1, %c0_i32, %arg0 : i32, i32, i32
  }
  func.func @transform_7(%arg0: i32, %arg1: i32, %arg2: memref<1x1xi32, #tpu.memory_space<smem>>) -> (i32, i32) {
    %c0_i32 = arith.constant 0 : i32
    %c0_i32_0 = arith.constant 0 : i32
    return %c0_i32, %arg0 : i32, i32
  }
}

</mosaic_0001>

<bundles_post_ra>
// kernel: tpu_custom_call.1
= control target key start
LH: loop header
LB: loop body
LE: loop exit
PB: predicated region body
PF: predicated region fallthrough
CT: control target
= control target key end

     0   :  { %v31_v0 = vlaneseq  ;;  %vm35_vm0 = vcmask 15360   ;;  %v1484_v2 = vmov -10000.0   ;;  %s2089_s0 = inlined_call_operand.<no memory space> [shape: s32[1,1], index: 0, kind: input, shape index: {}]   ;;  %s2090_s1 = inlined_call_operand.vmem [shape: f32[16,2,32], index: 1, kind: input, shape index: {}]   ;;  %s2091_s2 = inlined_call_operand.vmem [shape: f32[16,1,2], index: 2, kind: input, shape index: {}]   ;;  %s2092_s3 = inlined_call_operand.vmem [shape: f32[8,32], index: 3, kind: input, shape index: {}]   ;;  %s2093_s4 = inlined_call_operand.vmem [shape: f32[8,1], index: 4, kind: input, shape index: {}]   ;;  %s2094_s5 = inlined_call_operand.vmem [shape: f32[8,8], index: 5, kind: input, shape index: {}]   ;;  %s2095_s6 = inlined_call_operand.vmem [shape: f32[8,1], index: 6, kind: input, shape index: {}]   ;;  %s2096_s7 = inlined_call_operand.vmem [shape: s32[16,8,2], index: 7, kind: output, shape index: {0}]   ;;  %s2097_s8 = inlined_call_operand.vmem [shape: f32[8,2], index: 8, kind: output, shape index: {1}]  }
   0x1   :  { %p1388_p0 = scmp.eq.s32.totalorder %s2089_s0, 0 }
   0x2   :  { %v1557_v1 = vshrl.u32 %v31_v0, 7  ;;  %v45_v4 = vld [vmem:[%s2090_s1] sm:$0x3] (!%p1388_p0)  ;;  %v46_v5 = vld [vmem:[%s2090_s1 + $0x2] sm:$0x3] (!%p1388_p0)  ;;  %v1485_v6 = vmov (!%p1388_p0), 0.0|0.0  }
   0x3   :  { %44 = sbr.rel (%p1388_p0) target bundleno = 634 (0x27a), region = 33  ;;  %1440 = vmatprep.subr.bf16.mxu0 (!%p1388_p0), %v1485_v6  ;;  %v47_v7 = vld [vmem:[%s2090_s1 + $0x4] sm:$0x3] (!%p1388_p0)  ;;  %v48_v8 = vld [vmem:[%s2090_s1 + $0x6] sm:$0x3] (!%p1388_p0)  ;;  %v84_v20 = vcombine.low (!%p1388_p0), %v45_v4, %v46_v5  ;;  %vm1487_vm2 = vmmov (!%p1388_p0), 0  }
   0x4   :  { %vm33_vm1 = vcmp.eq.s32.totalorder %v1557_v1, 5  ;;  %v49_v9 = vld [vmem:[%s2090_s1 + $0x8] sm:$0x3] (!%p1388_p0)  ;;  %v50_v10 = vld [vmem:[%s2090_s1 + $0xa] sm:$0x3] (!%p1388_p0)  ;;  %v85_v21 = vcombine.low (!%p1388_p0), %v47_v7, %v48_v8  ;;  %v234_v29 = vld [vmem:[%s2094_s5] sm:$0xff] (!%p1388_p0) }
   0x5   :  { %v34_v3 = vsel %vm33_vm1, 0.0, %v1484_v2  ;;  %v51_v11 = vld [vmem:[%s2090_s1 + $0xc] sm:$0x3] (!%p1388_p0)  ;;  %v52_v12 = vld [vmem:[%s2090_s1 + $0xe] sm:$0x3] (!%p1388_p0)  ;;  %v101_v22 = vcombine.low (!%p1388_p0), %v49_v9, %v50_v10  ;;  %v62_v31 = vld [vmem:[%s2093_s4] sm:$0xff] (!%p1388_p0) }
   0x6   :  { %36 = vst.msk [vmem:[#allocation2] sm:$0xff] %vm35_vm0, %v34_v3  ;;  %v53_v13 = vld [vmem:[%s2090_s1 + $0x10] sm:$0x3] (!%p1388_p0)  ;;  %v54_v14 = vld [vmem:[%s2090_s1 + $0x12] sm:$0x3] (!%p1388_p0)  ;;  %v102_v27 = vcombine.low (!%p1388_p0), %v51_v11, %v52_v12  ;;  %v1488_v35 = vmov (!%p1388_p0), 0.0  }
   0x7   :  { %v1486_v15 = vmov (!%p1388_p0), 1983009808   ;;  %v55_v17 = vld [vmem:[%s2090_s1 + $0x14] sm:$0x3] (!%p1388_p0)  ;;  %v56_v18 = vld [vmem:[%s2090_s1 + $0x16] sm:$0x3] (!%p1388_p0)  ;;  %v118_v28 = vcombine.low (!%p1388_p0), %v53_v13, %v54_v14  ;;  %1437 = vmatprep.mubr.msk.f32.mxu0 (!%p1388_p0), %vm1487_vm2, %v1488_v35 }
   0x8   :  { %v87_v16 = vunpack.c.l.s4 (!%p1388_p0), %v1486_v15  ;;  %v57_v19 = vld [vmem:[%s2090_s1 + $0x18] sm:$0x3] (!%p1388_p0)  ;;  %v58_v23 = vld [vmem:[%s2090_s1 + $0x1a] sm:$0x3] (!%p1388_p0)  ;;  %v59_v24 = vld [vmem:[%s2090_s1 + $0x1c] sm:$0x3] (!%p1388_p0)  ;;  %v119_v30 = vcombine.low (!%p1388_p0), %v55_v17, %v56_v18 }
   0x9   :  { %v60_v25 = vld [vmem:[%s2090_s1 + $0x1e] sm:$0x3] (!%p1388_p0)  ;;  %v135_v33 = vcombine.low (!%p1388_p0), %v57_v19, %v58_v23  ;;  %v1489_v36 = vmov (!%p1388_p0), 1   ;;  %vm152_vm3 = vcmask (!%p1388_p0), 261120   ;;  %v1490_v37 = vmov (!%p1388_p0), 0   ;;  %v61_v58 = vld [vmem:[%s2092_s3] sm:$0xff] (!%p1388_p0) }
   0xa   :  { %v88_v26 = vunpack.c.0.s8 %v87_v16  ;;  %v136_v34 = vcombine.low %v59_v24, %v60_v25  ;;  %1477 = vset.pattern.permute.xlu1 %v1489_v36  ;;  %1476 = vset.pattern.permute.xlu0 %v1490_v37  ;;  %vm1622_vm4 = vmpackc.low %vm152_vm3, %vm152_vm3  ;;  %v1491_v49 = vmov 2   ;;  %v1492_v53 = vmov 4   ;;  %s1496_s21 = smov 122   ;;  %s1497_s22 = smov 126  }
   0xb   :  { %252 = vperm.xlu1 %1477, %v234_v29   ;;  %65 = vperm.xlu0 %1476, %v62_v31   ;;  %v1493_v54 = vmov 3   ;;  %v1494_v56 = vmov 5   ;;  %v1495_v57 = vmov 6   ;;  %v1635_v59 = vsub.s32 1, %v1557_v1  ;;  %s1498_s23 = smov 118   ;;  %s1499_s24 = smov 124  }
   0xc   :  { %v91_v32 = vsub.s32 %v88_v26, %v1557_v1  ;;  %v1638_v61 = vsub.s32 2, %v1557_v1  ;;  %v1641_v62 = vsub.s32 0, %v1557_v1  ;;  %v1649_v5 = vsub.s32 4, %v1557_v1  ;;  %s1500_s25 = smov 114   ;;  %s1501_s26 = smov 120  }
   0xd   :  { %v235_v60 = vld [vmem:[#allocation2] sm:$0xff]  ;;  %v1664_v14 = vsub.s32 5, %v1557_v1  ;;  %v1668_v17 = vsub.s32 6, %v1557_v1  ;;  %s1502_s27 = smov 110   ;;  %s1503_s28 = smov 116  }
   0xe   :  { %v92_v38 = vrot.slane %v84_v20, %v91_v32  ;;  %v99_v39 = vrot.slane %v85_v21, %v91_v32  ;;  %v109_v40 = vrot.slane %v101_v22, %v91_v32  ;;  %v116_v41 = vrot.slane %v102_v27, %v91_v32  ;;  %s1504_s29 = smov 106   ;;  %s1505_s30 = smov 112  }
   0xf   :  { %v126_v42 = vrot.slane %v118_v28, %v91_v32  ;;  %v133_v43 = vrot.slane %v119_v30, %v91_v32  ;;  %v143_v46 = vrot.slane %v135_v33, %v91_v32  ;;  %v150_v47 = vrot.slane %v136_v34, %v91_v32  ;;  %1478 = vset.pattern.permute.xlu1 %v1491_v49  ;;  %s1506_s11 = smov 102   ;;  %s1507_s12 = smov 108  }
  0x10   :  { %v100_v44 = vcombine.low %v92_v38, %v99_v39  ;;  %v117_v45 = vcombine.low %v109_v40, %v116_v41  ;;  %264 = vperm.xlu1 %1478, %v234_v29   ;;  %243 = vperm.xlu0 %1476, %v234_v29   ;;  %v250_v63 = vrot.slane %v235_v60, %v1635_v59  ;;  %v236_v38 = vld [vmem:[%s2091_s2] sm:$0x1]  ;;  %s1508_s13 = smov 98   ;;  %s1509_s14 = smov 104  }
  0x11   :  { %v134_v51 = vcombine.low %v126_v42, %v133_v43  ;;  %v151_v52 = vcombine.low %v143_v46, %v150_v47  ;;  %v262_v3 = vrot.slane %v235_v60, %v1638_v61  ;;  %v240_v4 = vrot.slane %v235_v60, %v1641_v62  ;;  %s1510_s0 = smov 100  }
  0x12   :  { %v1441_v50 = vpack.c.bf16 %v117_v45, %v100_v44  ;;  %v286_v12 = vrot.slane %v235_v60, %v1649_v5  ;;  %v298_v24 = vrot.slane %v235_v60, %v1664_v14  ;;  %v310_v25 = vrot.slane %v235_v60, %v1668_v17 }
  0x13   :  { %v1445_v55 = vpack.c.bf16 %v151_v52, %v134_v51  ;;  %vm321_vm11 = vcmp.gt.f32.partialorder %v236_v38, 0.0 }
  0x14   :  { %1443 = vmatpush3.bf16.xpose.msk.msra.mxu0 %vm1622_vm4, %v1441_v50  ;;  %1480 = vset.pattern.permute.xlu1 %v1492_v53  ;;  %v323_v39 = vsel %vm321_vm11, 1, %v1490_v37 }
  0x15   :  { %1444 = vmatprep.subr.bf16.mxu0 %v1485_v6  ;;  %1479 = vset.pattern.permute.xlu0 %v1493_v54  ;;  %v1652_v6 = vsub.s32 3, %v1557_v1  ;;  %v327_v40 = vrot.slane %v323_v39, %v1641_v62 }
  0x16   :  { %288 = vperm.xlu1 %1480, %v234_v29   ;;  %276 = vperm.xlu0 %1479, %v234_v29  }
  0x17   :  { %v274_v13 = vrot.slane %v235_v60, %v1652_v6  ;;  %vm328_vm12 = vcmp.eq.s32.totalorder %v327_v40, 1 }
  0x1a   :  { %1481 = vset.pattern.permute.xlu1 %v1494_v56  ;;  %1482 = vset.pattern.permute.xlu0 %v1495_v57 }
  0x1b   :  { %300 = vperm.xlu1 %1481, %v234_v29   ;;  %312 = vperm.xlu0 %1482, %v234_v29  }
  0x1c   :  { %1447 = vmatpush3.bf16.xpose.msk.msra.mxu0 %vm1622_vm4, %v1445_v55 }
  0x23   :  { %1438 = vmatmul.mubr.msk.f32.vlgmr.msra.gmra.mrb[0].mxu0 %vm152_vm3, %v61_v58 }
  0x8a   :  { %v1644_v0 = vpop.permute.xlu1 %252  ;;  %v66_v2 = vpop.permute.xlu0 %65 }
  0x8b   :  { %v255_v7 = vadd.f32 %v1644_v0, %v250_v63 }
  0x8f   :  { %v1655_v8 = vpop.permute.xlu1 %264  ;;  %v1657_v9 = vpop.permute.xlu0 %243 }
  0x90   :  { %v267_v10 = vadd.f32 %v1655_v8, %v262_v3  ;;  %v246_v11 = vadd.f32 %v1657_v9, %v240_v4 }
  0x92   :  { %vm256_vm5 = vcmp.gt.f32.partialorder %v255_v7, %v246_v11 }
  0x93   :  { %v257_v15 = vsel %vm256_vm5, %v255_v7, %v246_v11  ;;  %v258_v16 = vsel %vm256_vm5, 1, %v1490_v37 }
  0x94   :  { %vm268_vm6 = vcmp.gt.f32.partialorder %v267_v10, %v257_v15 }
  0x95   :  { %v1670_v18 = vpop.permute.xlu1 %288  ;;  %v1672_v19 = vpop.permute.xlu0 %276  ;;  %v269_v21 = vsel %vm268_vm6, %v267_v10, %v257_v15  ;;  %v270_v22 = vsel %vm268_vm6, 2, %v258_v16 }
  0x96   :  { %v291_v20 = vadd.f32 %v1670_v18, %v286_v12  ;;  %v279_v23 = vadd.f32 %v1672_v19, %v274_v13 }
  0x98   :  { %vm280_vm7 = vcmp.gt.f32.partialorder %v279_v23, %v269_v21 }
  0x99   :  { %v281_v26 = vsel %vm280_vm7, %v279_v23, %v269_v21  ;;  %v282_v27 = vsel %vm280_vm7, 3, %v270_v22  ;;  %v1394_v21 = vld [vmem:[%s2091_s2 + $0x1] sm:$0x1] }
  0x9a   :  { %v1678_v1 = vpop.permute.xlu1 %300  ;;  %vm292_vm8 = vcmp.gt.f32.partialorder %v291_v20, %v281_v26  ;;  %v1681_v31 = vpop.permute.xlu0 %312  ;;  %vm387_vm4 = vcmp.gt.f32.partialorder %v1394_v21, 0.0 }
  0x9b   :  { %v293_v28 = vsel %vm292_vm8, %v291_v20, %v281_v26  ;;  %v294_v29 = vsel %vm292_vm8, 4, %v282_v27  ;;  %v303_v30 = vadd.f32 %v1678_v1, %v298_v24  ;;  %v315_v32 = vadd.f32 %v1681_v31, %v310_v25 }
  0x9c   :  { %v393_v22 = vsel %vm387_vm4, 1, %v1490_v37 }
  0x9d   :  { %vm304_vm9 = vcmp.gt.f32.partialorder %v303_v30, %v293_v28  ;;  %v397_v23 = vrot.slane %v393_v22, %v1641_v62 }
  0x9e   :  { %v306_v33 = vsel %vm304_vm9, 5, %v294_v29  ;;  %v305_v34 = vsel %vm304_vm9, %v303_v30, %v293_v28  ;;  %v1396_v30 = vld [vmem:[%s2091_s2 + $0x2] sm:$0x1] }
  0x9f   :  { %vm316_vm10 = vcmp.gt.f32.partialorder %v315_v32, %v305_v34  ;;  %vm398_vm5 = vcmp.eq.s32.totalorder %v397_v23, 1  ;;  %vm457_vm7 = vcmp.gt.f32.partialorder %v1396_v30, 0.0 }
  0xa0   :  { %v317_v35 = vsel %vm316_vm10, %v315_v32, %v305_v34  ;;  %v318_v36 = vsel %vm316_vm10, 6, %v306_v33 }
  0xa1   :  { %320 = vst.msk [vmem:[%s2096_s7] sm:$0xff] %vm35_vm0, %v318_v36 }
  0xf6   :  { %v230_v41 = vpop.f32.mrb[0].mxu0 }
  0xf7   :  { %v1693_v42 = vadd.f32 %v230_v41, %v66_v2  ;;  %v1439_v43 = vpop.f32.mrb[1].mxu0 }
  0xf9   :  { %v322_v44 = vadd.f32 %v317_v35, %v1693_v42  ;;  %527 = vrot.lane.b32.xlu0 %v1693_v42, %s1496_s21  ;;  %389 = vrot.lane.b32.xlu1 %v1693_v42, %s1497_s22 }
  0xfb   :  { %v1698_v45 = vsel %vm328_vm12, %v322_v44, %v235_v60  ;;  %v462_v44 = vsel %vm457_vm7, 1, %v1490_v37 }
  0xfc   :  { %v335_v46 = vrot.slane %v1698_v45, %v1641_v62  ;;  %v340_v47 = vrot.slane %v1698_v45, %v1635_v59  ;;  %v348_v48 = vrot.slane %v1698_v45, %v1638_v61  ;;  %v356_v51 = vrot.slane %v1698_v45, %v1652_v6 }
  0xfd   :  { %665 = vrot.lane.b32.xlu0 %v1693_v42, %s1498_s23  ;;  %458 = vrot.lane.b32.xlu1 %v1693_v42, %s1499_s24  ;;  %v364_v53 = vrot.slane %v1698_v45, %v1649_v5  ;;  %v372_v57 = vrot.slane %v1698_v45, %v1664_v14  ;;  %v380_v2 = vrot.slane %v1698_v45, %v1668_v17 }
  0xfe   :  { %v336_v49 = vadd.f32 %v335_v46, %v1657_v9  ;;  %v341_v50 = vadd.f32 %v340_v47, %v1644_v0  ;;  %v349_v52 = vadd.f32 %v348_v48, %v1655_v8  ;;  %v357_v56 = vadd.f32 %v356_v51, %v1672_v19 }
  0xff   :  { %v365_v63 = vadd.f32 %v364_v53, %v1670_v18  ;;  %v373_v7 = vadd.f32 %v372_v57, %v1678_v1  ;;  %v381_v12 = vadd.f32 %v380_v2, %v1681_v31 }
 0x100   :  { %vm342_vm13 = vcmp.gt.f32.partialorder %v341_v50, %v336_v49 }
 0x101   :  { %803 = vrot.lane.b32.xlu0 %v1693_v42, %s1500_s25  ;;  %596 = vrot.lane.b32.xlu1 %v1693_v42, %s1501_s26  ;;  %v343_v54 = vsel %vm342_vm13, %v341_v50, %v336_v49  ;;  %v344_v55 = vsel %vm342_vm13, 1, %v1490_v37  ;;  %v466_v50 = vrot.slane %v462_v44, %v1641_v62 }
 0x102   :  { %vm350_vm14 = vcmp.gt.f32.partialorder %v349_v52, %v343_v54 }
 0x103   :  { %v351_v58 = vsel %vm350_vm14, %v349_v52, %v343_v54  ;;  %v352_v60 = vsel %vm350_vm14, 2, %v344_v55  ;;  %vm467_vm13 = vcmp.eq.s32.totalorder %v466_v50, 1 }
 0x104   :  { %vm358_vm15 = vcmp.gt.f32.partialorder %v357_v56, %v351_v58 }
 0x105   :  { %941 = vrot.lane.b32.xlu0 %v1693_v42, %s1502_s27  ;;  %734 = vrot.lane.b32.xlu1 %v1693_v42, %s1503_s28  ;;  %v359_v3 = vsel %vm358_vm15, %v357_v56, %v351_v58  ;;  %v360_v4 = vsel %vm358_vm15, 3, %v352_v60 }
 0x106   :  { %vm366_vm1 = vcmp.gt.f32.partialorder %v365_v63, %v359_v3 }
 0x107   :  { %v367_v10 = vsel %vm366_vm1, %v365_v63, %v359_v3  ;;  %v368_v11 = vsel %vm366_vm1, 4, %v360_v4 }
 0x108   :  { %vm374_vm2 = vcmp.gt.f32.partialorder %v373_v7, %v367_v10 }
 0x109   :  { %1079 = vrot.lane.b32.xlu0 %v1693_v42, %s1504_s29  ;;  %872 = vrot.lane.b32.xlu1 %v1693_v42, %s1505_s30  ;;  %v375_v13 = vsel %vm374_vm2, %v373_v7, %v367_v10  ;;  %v376_v15 = vsel %vm374_vm2, 5, %v368_v11  ;;  %v1398_v7 = vld [vmem:[%s2091_s2 + $0x3] sm:$0x1] }
 0x10a   :  { %vm382_vm3 = vcmp.gt.f32.partialorder %v381_v12, %v375_v13  ;;  %vm526_vm15 = vcmp.gt.f32.partialorder %v1398_v7, 0.0 }
 0x10b   :  { %v383_v16 = vsel %vm382_vm3, %v381_v12, %v375_v13  ;;  %v384_v20 = vsel %vm382_vm3, 6, %v376_v15 }
 0x10c   :  { %1395 = vst.msk [vmem:[%s2096_s7 + $0x8] sm:$0xff] %vm35_vm0, %v384_v20 }
 0x10d   :  { %1217 = vrot.lane.b32.xlu0 %v1693_v42, %s1506_s11  ;;  %1010 = vrot.lane.b32.xlu1 %v1693_v42, %s1507_s12 }
 0x111   :  { %1355 = vrot.lane.b32.xlu0 %v1693_v42, %s1508_s13  ;;  %1148 = vrot.lane.b32.xlu1 %v1693_v42, %s1509_s14 }
 0x115   :  { %1286 = vrot.lane.b32.xlu1 %v1693_v42, %s1510_s0 }
 0x16b   :  { %v390_v24 = vpop.permute.xlu1 %389 }
 0x16c   :  { %v392_v25 = vadd.f32 %v390_v24, %v383_v16 }
 0x16e   :  { %v399_v26 = vsel %vm398_vm5, %v392_v25, %v1698_v45  ;;  %v531_v25 = vsel %vm526_vm15, 1, %v1490_v37 }
 0x16f   :  { %v405_v27 = vrot.slane %v399_v26, %v1641_v62  ;;  %v410_v28 = vrot.slane %v399_v26, %v1635_v59  ;;  %v418_v29 = vrot.slane %v399_v26, %v1638_v61  ;;  %v426_v34 = vrot.slane %v399_v26, %v1652_v6  ;;  %v459_v56 = vpop.permute.xlu1 %458 }
 0x170   :  { %v434_v36 = vrot.slane %v399_v26, %v1649_v5  ;;  %v442_v41 = vrot.slane %v399_v26, %v1664_v14  ;;  %v450_v46 = vrot.slane %v399_v26, %v1668_v17 }
 0x171   :  { %v406_v32 = vadd.f32 %v405_v27, %v1657_v9  ;;  %v411_v33 = vadd.f32 %v410_v28, %v1644_v0  ;;  %v419_v35 = vadd.f32 %v418_v29, %v1655_v8  ;;  %v427_v40 = vadd.f32 %v426_v34, %v1672_v19 }
 0x172   :  { %v435_v45 = vadd.f32 %v434_v36, %v1670_v18  ;;  %v443_v49 = vadd.f32 %v442_v41, %v1678_v1  ;;  %v451_v53 = vadd.f32 %v450_v46, %v1681_v31 }
 0x173   :  { %vm412_vm6 = vcmp.gt.f32.partialorder %v411_v33, %v406_v32 }
 0x174   :  { %v413_v38 = vsel %vm412_vm6, %v411_v33, %v406_v32  ;;  %v414_v39 = vsel %vm412_vm6, 1, %v1490_v37  ;;  %v535_v32 = vrot.slane %v531_v25, %v1641_v62 }
 0x175   :  { %vm420_vm8 = vcmp.gt.f32.partialorder %v419_v35, %v413_v38 }
 0x176   :  { %v421_v42 = vsel %vm420_vm8, %v419_v35, %v413_v38  ;;  %v422_v43 = vsel %vm420_vm8, 2, %v414_v39  ;;  %v528_v39 = vpop.permute.xlu0 %527  ;;  %vm536_vm6 = vcmp.eq.s32.totalorder %v535_v32, 1 }
 0x177   :  { %vm428_vm9 = vcmp.gt.f32.partialorder %v427_v40, %v421_v42 }
 0x178   :  { %v429_v47 = vsel %vm428_vm9, %v427_v40, %v421_v42  ;;  %v430_v48 = vsel %vm428_vm9, 3, %v422_v43 }
 0x179   :  { %vm436_vm10 = vcmp.gt.f32.partialorder %v435_v45, %v429_v47 }
 0x17a   :  { %v437_v51 = vsel %vm436_vm10, %v435_v45, %v429_v47  ;;  %v438_v52 = vsel %vm436_vm10, 4, %v430_v48  ;;  %v1400_v47 = vld [vmem:[%s2091_s2 + $0x4] sm:$0x1] }
 0x17b   :  { %vm444_vm11 = vcmp.gt.f32.partialorder %v443_v49, %v437_v51  ;;  %vm595_vm8 = vcmp.gt.f32.partialorder %v1400_v47, 0.0 }
 0x17c   :  { %v445_v54 = vsel %vm444_vm11, %v443_v49, %v437_v51  ;;  %v446_v55 = vsel %vm444_vm11, 5, %v438_v52 }
 0x17d   :  { %vm452_vm12 = vcmp.gt.f32.partialorder %v451_v53, %v445_v54 }
 0x17e   :  { %v453_v57 = vsel %vm452_vm12, %v451_v53, %v445_v54  ;;  %v454_v58 = vsel %vm452_vm12, 6, %v446_v55 }
 0x17f   :  { %1397 = vst.msk [vmem:[%s2096_s7 + $0x10] sm:$0xff] %vm35_vm0, %v454_v58  ;;  %v461_v60 = vadd.f32 %v459_v56, %v453_v57 }
 0x181   :  { %v468_v63 = vsel %vm467_vm13, %v461_v60, %v399_v26  ;;  %v600_v60 = vsel %vm595_vm8, 1, %v1490_v37 }
 0x182   :  { %v474_v2 = vrot.slane %v468_v63, %v1641_v62  ;;  %v479_v3 = vrot.slane %v468_v63, %v1635_v59  ;;  %v487_v4 = vrot.slane %v468_v63, %v1638_v61  ;;  %v495_v12 = vrot.slane %v468_v63, %v1652_v6 }
 0x183   :  { %v503_v15 = vrot.slane %v468_v63, %v1649_v5  ;;  %v511_v22 = vrot.slane %v468_v63, %v1664_v14  ;;  %v519_v27 = vrot.slane %v468_v63, %v1668_v17 }
 0x184   :  { %v475_v10 = vadd.f32 %v474_v2, %v1657_v9  ;;  %v480_v11 = vadd.f32 %v479_v3, %v1644_v0  ;;  %v488_v13 = vadd.f32 %v487_v4, %v1655_v8  ;;  %v496_v21 = vadd.f32 %v495_v12, %v1672_v19 }
 0x185   :  { %v504_v26 = vadd.f32 %v503_v15, %v1670_v18  ;;  %v512_v30 = vadd.f32 %v511_v22, %v1678_v1  ;;  %v520_v35 = vadd.f32 %v519_v27, %v1681_v31 }
 0x186   :  { %vm481_vm14 = vcmp.gt.f32.partialorder %v480_v11, %v475_v10 }
 0x187   :  { %v482_v16 = vsel %vm481_vm14, %v480_v11, %v475_v10  ;;  %v483_v20 = vsel %vm481_vm14, 1, %v1490_v37  ;;  %v604_v10 = vrot.slane %v600_v60, %v1641_v62 }
 0x188   :  { %vm489_vm1 = vcmp.gt.f32.partialorder %v488_v13, %v482_v16 }
 0x189   :  { %v490_v23 = vsel %vm489_vm1, %v488_v13, %v482_v16  ;;  %v491_v24 = vsel %vm489_vm1, 2, %v483_v20  ;;  %vm605_vm14 = vcmp.eq.s32.totalorder %v604_v10, 1  ;;  %v597_v20 = vpop.permute.xlu1 %596 }
 0x18a   :  { %vm497_vm2 = vcmp.gt.f32.partialorder %v496_v21, %v490_v23 }
 0x18b   :  { %v498_v28 = vsel %vm497_vm2, %v496_v21, %v490_v23  ;;  %v499_v29 = vsel %vm497_vm2, 3, %v491_v24 }
 0x18c   :  { %vm505_vm3 = vcmp.gt.f32.partialorder %v504_v26, %v498_v28 }
 0x18d   :  { %v506_v33 = vsel %vm505_vm3, %v504_v26, %v498_v28  ;;  %v507_v34 = vsel %vm505_vm3, 4, %v499_v29  ;;  %v1402_v28 = vld [vmem:[%s2091_s2 + $0x5] sm:$0x1] }
 0x18e   :  { %vm513_vm4 = vcmp.gt.f32.partialorder %v512_v30, %v506_v33  ;;  %vm664_vm1 = vcmp.gt.f32.partialorder %v1402_v28, 0.0 }
 0x18f   :  { %v514_v36 = vsel %vm513_vm4, %v512_v30, %v506_v33  ;;  %v515_v38 = vsel %vm513_vm4, 5, %v507_v34 }
 0x190   :  { %vm521_vm5 = vcmp.gt.f32.partialorder %v520_v35, %v514_v36 }
 0x191   :  { %v522_v40 = vsel %vm521_vm5, %v520_v35, %v514_v36  ;;  %v523_v41 = vsel %vm521_vm5, 6, %v515_v38 }
 0x192   :  { %1399 = vst.msk [vmem:[%s2096_s7 + $0x18] sm:$0xff] %vm35_vm0, %v523_v41  ;;  %v530_v42 = vadd.f32 %v528_v39, %v522_v40 }
 0x194   :  { %v537_v43 = vsel %vm536_vm6, %v530_v42, %v468_v63  ;;  %v669_v42 = vsel %vm664_vm1, 1, %v1490_v37 }
 0x195   :  { %v543_v44 = vrot.slane %v537_v43, %v1641_v62  ;;  %v548_v45 = vrot.slane %v537_v43, %v1635_v59  ;;  %v556_v46 = vrot.slane %v537_v43, %v1638_v61  ;;  %v564_v50 = vrot.slane %v537_v43, %v1652_v6 }
 0x196   :  { %v572_v52 = vrot.slane %v537_v43, %v1649_v5  ;;  %v580_v56 = vrot.slane %v537_v43, %v1664_v14  ;;  %v588_v2 = vrot.slane %v537_v43, %v1668_v17 }
 0x197   :  { %v544_v48 = vadd.f32 %v543_v44, %v1657_v9  ;;  %v549_v49 = vadd.f32 %v548_v45, %v1644_v0  ;;  %v557_v51 = vadd.f32 %v556_v46, %v1655_v8  ;;  %v565_v55 = vadd.f32 %v564_v50, %v1672_v19 }
 0x198   :  { %v573_v63 = vadd.f32 %v572_v52, %v1670_v18  ;;  %v581_v7 = vadd.f32 %v580_v56, %v1678_v1  ;;  %v589_v13 = vadd.f32 %v588_v2, %v1681_v31 }
 0x199   :  { %vm550_vm7 = vcmp.gt.f32.partialorder %v549_v49, %v544_v48 }
 0x19a   :  { %v551_v53 = vsel %vm550_vm7, %v549_v49, %v544_v48  ;;  %v552_v54 = vsel %vm550_vm7, 1, %v1490_v37  ;;  %v673_v48 = vrot.slane %v669_v42, %v1641_v62 }
 0x19b   :  { %vm558_vm9 = vcmp.gt.f32.partialorder %v557_v51, %v551_v53 }
 0x19c   :  { %v559_v57 = vsel %vm558_vm9, %v557_v51, %v551_v53  ;;  %v560_v58 = vsel %vm558_vm9, 2, %v552_v54  ;;  %v666_v54 = vpop.permute.xlu0 %665  ;;  %vm674_vm7 = vcmp.eq.s32.totalorder %v673_v48, 1 }
 0x19d   :  { %vm566_vm10 = vcmp.gt.f32.partialorder %v565_v55, %v559_v57 }
 0x19e   :  { %v567_v3 = vsel %vm566_vm10, %v565_v55, %v559_v57  ;;  %v568_v4 = vsel %vm566_vm10, 3, %v560_v58 }
 0x19f   :  { %vm574_vm11 = vcmp.gt.f32.partialorder %v573_v63, %v567_v3 }
 0x1a0   :  { %v575_v11 = vsel %vm574_vm11, %v573_v63, %v567_v3  ;;  %v576_v12 = vsel %vm574_vm11, 4, %v568_v4  ;;  %v1404_v3 = vld [vmem:[%s2091_s2 + $0x6] sm:$0x1] }
 0x1a1   :  { %vm582_vm12 = vcmp.gt.f32.partialorder %v581_v7, %v575_v11  ;;  %vm733_vm9 = vcmp.gt.f32.partialorder %v1404_v3, 0.0 }
 0x1a2   :  { %v583_v15 = vsel %vm582_vm12, %v581_v7, %v575_v11  ;;  %v584_v16 = vsel %vm582_vm12, 5, %v576_v12 }
 0x1a3   :  { %vm590_vm13 = vcmp.gt.f32.partialorder %v589_v13, %v583_v15 }
 0x1a4   :  { %v591_v21 = vsel %vm590_vm13, %v589_v13, %v583_v15  ;;  %v592_v22 = vsel %vm590_vm13, 6, %v584_v16 }
 0x1a5   :  { %1401 = vst.msk [vmem:[%s2096_s7 + $0x20] sm:$0xff] %vm35_vm0, %v592_v22  ;;  %v599_v23 = vadd.f32 %v597_v20, %v591_v21 }
 0x1a7   :  { %v606_v24 = vsel %vm605_vm14, %v599_v23, %v537_v43  ;;  %v738_v23 = vsel %vm733_vm9, 1, %v1490_v37 }
 0x1a8   :  { %v612_v25 = vrot.slane %v606_v24, %v1641_v62  ;;  %v617_v26 = vrot.slane %v606_v24, %v1635_v59  ;;  %v625_v27 = vrot.slane %v606_v24, %v1638_v61  ;;  %v633_v32 = vrot.slane %v606_v24, %v1652_v6 }
 0x1a9   :  { %v641_v34 = vrot.slane %v606_v24, %v1649_v5  ;;  %v649_v39 = vrot.slane %v606_v24, %v1664_v14  ;;  %v657_v44 = vrot.slane %v606_v24, %v1668_v17 }
 0x1aa   :  { %v613_v29 = vadd.f32 %v612_v25, %v1657_v9  ;;  %v618_v30 = vadd.f32 %v617_v26, %v1644_v0  ;;  %v626_v33 = vadd.f32 %v625_v27, %v1655_v8  ;;  %v634_v38 = vadd.f32 %v633_v32, %v1672_v19 }
 0x1ab   :  { %v642_v43 = vadd.f32 %v641_v34, %v1670_v18  ;;  %v650_v47 = vadd.f32 %v649_v39, %v1678_v1  ;;  %v658_v51 = vadd.f32 %v657_v44, %v1681_v31 }
 0x1ac   :  { %vm619_vm15 = vcmp.gt.f32.partialorder %v618_v30, %v613_v29 }
 0x1ad   :  { %v620_v35 = vsel %vm619_vm15, %v618_v30, %v613_v29  ;;  %v621_v36 = vsel %vm619_vm15, 1, %v1490_v37  ;;  %v742_v29 = vrot.slane %v738_v23, %v1641_v62 }
 0x1ae   :  { %vm627_vm2 = vcmp.gt.f32.partialorder %v626_v33, %v620_v35 }
 0x1af   :  { %v628_v40 = vsel %vm627_vm2, %v626_v33, %v620_v35  ;;  %v629_v41 = vsel %vm627_vm2, 2, %v621_v36  ;;  %vm743_vm15 = vcmp.eq.s32.totalorder %v742_v29, 1  ;;  %v735_v36 = vpop.permute.xlu1 %734 }
 0x1b0   :  { %vm635_vm3 = vcmp.gt.f32.partialorder %v634_v38, %v628_v40 }
 0x1b1   :  { %v636_v45 = vsel %vm635_vm3, %v634_v38, %v628_v40  ;;  %v637_v46 = vsel %vm635_vm3, 3, %v629_v41 }
 0x1b2   :  { %vm643_vm4 = vcmp.gt.f32.partialorder %v642_v43, %v636_v45 }
 0x1b3   :  { %v644_v49 = vsel %vm643_vm4, %v642_v43, %v636_v45  ;;  %v645_v50 = vsel %vm643_vm4, 4, %v637_v46  ;;  %v1406_v45 = vld [vmem:[%s2091_s2 + $0x7] sm:$0x1] }
 0x1b4   :  { %vm651_vm5 = vcmp.gt.f32.partialorder %v650_v47, %v644_v49  ;;  %vm802_vm2 = vcmp.gt.f32.partialorder %v1406_v45, 0.0 }
 0x1b5   :  { %v652_v52 = vsel %vm651_vm5, %v650_v47, %v644_v49  ;;  %v653_v53 = vsel %vm651_vm5, 5, %v645_v50 }
 0x1b6   :  { %vm659_vm6 = vcmp.gt.f32.partialorder %v658_v51, %v652_v52 }
 0x1b7   :  { %v660_v55 = vsel %vm659_vm6, %v658_v51, %v652_v52  ;;  %v661_v56 = vsel %vm659_vm6, 6, %v653_v53 }
 0x1b8   :  { %1403 = vst.msk [vmem:[%s2096_s7 + $0x28] sm:$0xff] %vm35_vm0, %v661_v56  ;;  %v668_v57 = vadd.f32 %v666_v54, %v660_v55 }
 0x1ba   :  { %v675_v58 = vsel %vm674_vm7, %v668_v57, %v606_v24  ;;  %v807_v57 = vsel %vm802_vm2, 1, %v1490_v37 }
 0x1bb   :  { %v681_v60 = vrot.slane %v675_v58, %v1641_v62  ;;  %v686_v63 = vrot.slane %v675_v58, %v1635_v59  ;;  %v694_v2 = vrot.slane %v675_v58, %v1638_v61  ;;  %v702_v10 = vrot.slane %v675_v58, %v1652_v6 }
 0x1bc   :  { %v710_v12 = vrot.slane %v675_v58, %v1649_v5  ;;  %v718_v20 = vrot.slane %v675_v58, %v1664_v14  ;;  %v726_v25 = vrot.slane %v675_v58, %v1668_v17 }
 0x1bd   :  { %v682_v4 = vadd.f32 %v681_v60, %v1657_v9  ;;  %v687_v7 = vadd.f32 %v686_v63, %v1644_v0  ;;  %v695_v11 = vadd.f32 %v694_v2, %v1655_v8  ;;  %v703_v16 = vadd.f32 %v702_v10, %v1672_v19 }
 0x1be   :  { %v711_v24 = vadd.f32 %v710_v12, %v1670_v18  ;;  %v719_v28 = vadd.f32 %v718_v20, %v1678_v1  ;;  %v727_v33 = vadd.f32 %v726_v25, %v1681_v31 }
 0x1bf   :  { %vm688_vm8 = vcmp.gt.f32.partialorder %v687_v7, %v682_v4 }
 0x1c0   :  { %v689_v13 = vsel %vm688_vm8, %v687_v7, %v682_v4  ;;  %v690_v15 = vsel %vm688_vm8, 1, %v1490_v37  ;;  %v811_v4 = vrot.slane %v807_v57, %v1641_v62 }
 0x1c1   :  { %vm696_vm10 = vcmp.gt.f32.partialorder %v695_v11, %v689_v13 }
 0x1c2   :  { %v697_v21 = vsel %vm696_vm10, %v695_v11, %v689_v13  ;;  %v698_v22 = vsel %vm696_vm10, 2, %v690_v15  ;;  %v804_v15 = vpop.permute.xlu0 %803  ;;  %vm812_vm8 = vcmp.eq.s32.totalorder %v811_v4, 1  ;;  %v1410_v4 = vld [vmem:[%s2091_s2 + $0x9] sm:$0x1] }
 0x1c3   :  { %vm704_vm11 = vcmp.gt.f32.partialorder %v703_v16, %v697_v21 }
 0x1c4   :  { %v705_v26 = vsel %vm704_vm11, %v703_v16, %v697_v21  ;;  %v706_v27 = vsel %vm704_vm11, 3, %v698_v22 }
 0x1c5   :  { %vm712_vm12 = vcmp.gt.f32.partialorder %v711_v24, %v705_v26 }
 0x1c6   :  { %v713_v30 = vsel %vm712_vm12, %v711_v24, %v705_v26  ;;  %v714_v32 = vsel %vm712_vm12, 4, %v706_v27  ;;  %v1408_v26 = vld [vmem:[%s2091_s2 + $0x8] sm:$0x1] }
 0x1c7   :  { %vm720_vm13 = vcmp.gt.f32.partialorder %v719_v28, %v713_v30  ;;  %vm871_vm10 = vcmp.gt.f32.partialorder %v1408_v26, 0.0 }
 0x1c8   :  { %v721_v34 = vsel %vm720_vm13, %v719_v28, %v713_v30  ;;  %v722_v35 = vsel %vm720_vm13, 5, %v714_v32 }
 0x1c9   :  { %vm728_vm14 = vcmp.gt.f32.partialorder %v727_v33, %v721_v34 }
 0x1ca   :  { %v729_v38 = vsel %vm728_vm14, %v727_v33, %v721_v34  ;;  %v730_v39 = vsel %vm728_vm14, 6, %v722_v35 }
 0x1cb   :  { %1405 = vst.msk [vmem:[%s2096_s7 + $0x30] sm:$0xff] %vm35_vm0, %v730_v39  ;;  %v737_v40 = vadd.f32 %v735_v36, %v729_v38 }
 0x1cd   :  { %v744_v41 = vsel %vm743_vm15, %v737_v40, %v675_v58  ;;  %v876_v40 = vsel %vm871_vm10, 1, %v1490_v37 }
 0x1ce   :  { %v750_v42 = vrot.slane %v744_v41, %v1641_v62  ;;  %v755_v43 = vrot.slane %v744_v41, %v1635_v59  ;;  %v763_v44 = vrot.slane %v744_v41, %v1638_v61  ;;  %v771_v48 = vrot.slane %v744_v41, %v1652_v6 }
 0x1cf   :  { %v779_v50 = vrot.slane %v744_v41, %v1649_v5  ;;  %v787_v54 = vrot.slane %v744_v41, %v1664_v14  ;;  %v795_v60 = vrot.slane %v744_v41, %v1668_v17 }
 0x1d0   :  { %v751_v46 = vadd.f32 %v750_v42, %v1657_v9  ;;  %v756_v47 = vadd.f32 %v755_v43, %v1644_v0  ;;  %v764_v49 = vadd.f32 %v763_v44, %v1655_v8  ;;  %v772_v53 = vadd.f32 %v771_v48, %v1672_v19 }
 0x1d1   :  { %v780_v58 = vadd.f32 %v779_v50, %v1670_v18  ;;  %v788_v3 = vadd.f32 %v787_v54, %v1678_v1  ;;  %v796_v11 = vadd.f32 %v795_v60, %v1681_v31 }
 0x1d2   :  { %vm757_vm1 = vcmp.gt.f32.partialorder %v756_v47, %v751_v46 }
 0x1d3   :  { %v758_v51 = vsel %vm757_vm1, %v756_v47, %v751_v46  ;;  %v759_v52 = vsel %vm757_vm1, 1, %v1490_v37  ;;  %v880_v46 = vrot.slane %v876_v40, %v1641_v62 }
 0x1d4   :  { %vm765_vm3 = vcmp.gt.f32.partialorder %v764_v49, %v758_v51 }
 0x1d5   :  { %v766_v55 = vsel %vm765_vm3, %v764_v49, %v758_v51  ;;  %v767_v56 = vsel %vm765_vm3, 2, %v759_v52  ;;  %vm881_vm1 = vcmp.eq.s32.totalorder %v880_v46, 1  ;;  %v873_v52 = vpop.permute.xlu1 %872  ;;  %vm940_vm3 = vcmp.gt.f32.partialorder %v1410_v4, 0.0 }
 0x1d6   :  { %vm773_vm4 = vcmp.gt.f32.partialorder %v772_v53, %v766_v55 }
 0x1d7   :  { %v774_v63 = vsel %vm773_vm4, %v772_v53, %v766_v55  ;;  %v775_v2 = vsel %vm773_vm4, 3, %v767_v56 }
 0x1d8   :  { %vm781_vm5 = vcmp.gt.f32.partialorder %v780_v58, %v774_v63 }
 0x1d9   :  { %v782_v7 = vsel %vm781_vm5, %v780_v58, %v774_v63  ;;  %v783_v10 = vsel %vm781_vm5, 4, %v775_v2 }
 0x1da   :  { %vm789_vm6 = vcmp.gt.f32.partialorder %v788_v3, %v782_v7 }
 0x1db   :  { %v790_v12 = vsel %vm789_vm6, %v788_v3, %v782_v7  ;;  %v791_v13 = vsel %vm789_vm6, 5, %v783_v10 }
 0x1dc   :  { %vm797_vm7 = vcmp.gt.f32.partialorder %v796_v11, %v790_v12 }
 0x1dd   :  { %v798_v16 = vsel %vm797_vm7, %v796_v11, %v790_v12  ;;  %v799_v20 = vsel %vm797_vm7, 6, %v791_v13 }
 0x1de   :  { %1407 = vst.msk [vmem:[%s2096_s7 + $0x38] sm:$0xff] %vm35_vm0, %v799_v20  ;;  %v806_v21 = vadd.f32 %v804_v15, %v798_v16 }
 0x1e0   :  { %v813_v22 = vsel %vm812_vm8, %v806_v21, %v744_v41 }
 0x1e1   :  { %v819_v23 = vrot.slane %v813_v22, %v1641_v62  ;;  %v824_v24 = vrot.slane %v813_v22, %v1635_v59  ;;  %v832_v25 = vrot.slane %v813_v22, %v1638_v61  ;;  %v840_v29 = vrot.slane %v813_v22, %v1652_v6 }
 0x1e2   :  { %v848_v32 = vrot.slane %v813_v22, %v1649_v5  ;;  %v856_v36 = vrot.slane %v813_v22, %v1664_v14  ;;  %v864_v42 = vrot.slane %v813_v22, %v1668_v17 }
 0x1e3   :  { %v820_v27 = vadd.f32 %v819_v23, %v1657_v9  ;;  %v825_v28 = vadd.f32 %v824_v24, %v1644_v0  ;;  %v833_v30 = vadd.f32 %v832_v25, %v1655_v8  ;;  %v841_v35 = vadd.f32 %v840_v29, %v1672_v19 }
 0x1e4   :  { %v849_v41 = vadd.f32 %v848_v32, %v1670_v18  ;;  %v857_v45 = vadd.f32 %v856_v36, %v1678_v1  ;;  %v865_v49 = vadd.f32 %v864_v42, %v1681_v31  ;;  %v945_v23 = vsel %vm940_vm3, 1, %v1490_v37 }
 0x1e5   :  { %vm826_vm9 = vcmp.gt.f32.partialorder %v825_v28, %v820_v27  ;;  %v949_v29 = vrot.slane %v945_v23, %v1641_v62 }
 0x1e6   :  { %v827_v33 = vsel %vm826_vm9, %v825_v28, %v820_v27  ;;  %v828_v34 = vsel %vm826_vm9, 1, %v1490_v37 }
 0x1e7   :  { %vm834_vm11 = vcmp.gt.f32.partialorder %v833_v30, %v827_v33  ;;  %vm950_vm9 = vcmp.eq.s32.totalorder %v949_v29, 1 }
 0x1e8   :  { %v835_v38 = vsel %vm834_vm11, %v833_v30, %v827_v33  ;;  %v836_v39 = vsel %vm834_vm11, 2, %v828_v34  ;;  %v942_v34 = vpop.permute.xlu0 %941 }
 0x1e9   :  { %vm842_vm12 = vcmp.gt.f32.partialorder %v841_v35, %v835_v38 }
 0x1ea   :  { %v843_v43 = vsel %vm842_vm12, %v841_v35, %v835_v38  ;;  %v844_v44 = vsel %vm842_vm12, 3, %v836_v39 }
 0x1eb   :  { %vm850_vm13 = vcmp.gt.f32.partialorder %v849_v41, %v843_v43 }
 0x1ec   :  { %v851_v47 = vsel %vm850_vm13, %v849_v41, %v843_v43  ;;  %v852_v48 = vsel %vm850_vm13, 4, %v844_v44  ;;  %v1412_v43 = vld [vmem:[%s2091_s2 + $0xa] sm:$0x1] }
 0x1ed   :  { %vm858_vm14 = vcmp.gt.f32.partialorder %v857_v45, %v851_v47  ;;  %vm1009_vm11 = vcmp.gt.f32.partialorder %v1412_v43, 0.0 }
 0x1ee   :  { %v859_v50 = vsel %vm858_vm14, %v857_v45, %v851_v47  ;;  %v860_v51 = vsel %vm858_vm14, 5, %v852_v48 }
 0x1ef   :  { %vm866_vm15 = vcmp.gt.f32.partialorder %v865_v49, %v859_v50 }
 0x1f0   :  { %v867_v53 = vsel %vm866_vm15, %v865_v49, %v859_v50  ;;  %v868_v54 = vsel %vm866_vm15, 6, %v860_v51 }
 0x1f1   :  { %1409 = vst.msk [vmem:[%s2096_s7 + $0x40] sm:$0xff] %vm35_vm0, %v868_v54  ;;  %v875_v55 = vadd.f32 %v873_v52, %v867_v53 }
 0x1f3   :  { %v882_v56 = vsel %vm881_vm1, %v875_v55, %v813_v22  ;;  %v1014_v55 = vsel %vm1009_vm11, 1, %v1490_v37 }
 0x1f4   :  { %v888_v57 = vrot.slane %v882_v56, %v1641_v62  ;;  %v893_v58 = vrot.slane %v882_v56, %v1635_v59  ;;  %v901_v60 = vrot.slane %v882_v56, %v1638_v61  ;;  %v909_v3 = vrot.slane %v882_v56, %v1652_v6 }
 0x1f5   :  { %v917_v10 = vrot.slane %v882_v56, %v1649_v5  ;;  %v925_v15 = vrot.slane %v882_v56, %v1664_v14  ;;  %v933_v22 = vrot.slane %v882_v56, %v1668_v17 }
 0x1f6   :  { %v889_v63 = vadd.f32 %v888_v57, %v1657_v9  ;;  %v894_v2 = vadd.f32 %v893_v58, %v1644_v0  ;;  %v902_v7 = vadd.f32 %v901_v60, %v1655_v8  ;;  %v910_v13 = vadd.f32 %v909_v3, %v1672_v19 }
 0x1f7   :  { %v918_v21 = vadd.f32 %v917_v10, %v1670_v18  ;;  %v926_v26 = vadd.f32 %v925_v15, %v1678_v1  ;;  %v934_v30 = vadd.f32 %v933_v22, %v1681_v31 }
 0x1f8   :  { %vm895_vm2 = vcmp.gt.f32.partialorder %v894_v2, %v889_v63 }
 0x1f9   :  { %v896_v11 = vsel %vm895_vm2, %v894_v2, %v889_v63  ;;  %v897_v12 = vsel %vm895_vm2, 1, %v1490_v37  ;;  %v1018_v2 = vrot.slane %v1014_v55, %v1641_v62 }
 0x1fa   :  { %vm903_vm4 = vcmp.gt.f32.partialorder %v902_v7, %v896_v11 }
 0x1fb   :  { %v904_v16 = vsel %vm903_vm4, %v902_v7, %v896_v11  ;;  %v905_v20 = vsel %vm903_vm4, 2, %v897_v12  ;;  %vm1019_vm2 = vcmp.eq.s32.totalorder %v1018_v2, 1  ;;  %v1011_v12 = vpop.permute.xlu1 %1010 }
 0x1fc   :  { %vm911_vm5 = vcmp.gt.f32.partialorder %v910_v13, %v904_v16 }
 0x1fd   :  { %v912_v24 = vsel %vm911_vm5, %v910_v13, %v904_v16  ;;  %v913_v25 = vsel %vm911_vm5, 3, %v905_v20 }
 0x1fe   :  { %vm919_vm6 = vcmp.gt.f32.partialorder %v918_v21, %v912_v24 }
 0x1ff   :  { %v920_v27 = vsel %vm919_vm6, %v918_v21, %v912_v24  ;;  %v921_v28 = vsel %vm919_vm6, 4, %v913_v25 }
 0x200   :  { %vm927_vm7 = vcmp.gt.f32.partialorder %v926_v26, %v920_v27 }
 0x201   :  { %v928_v32 = vsel %vm927_vm7, %v926_v26, %v920_v27  ;;  %v929_v33 = vsel %vm927_vm7, 5, %v921_v28  ;;  %v1414_v27 = vld [vmem:[%s2091_s2 + $0xb] sm:$0x1] }
 0x202   :  { %vm935_vm8 = vcmp.gt.f32.partialorder %v934_v30, %v928_v32  ;;  %vm1078_vm4 = vcmp.gt.f32.partialorder %v1414_v27, 0.0 }
 0x203   :  { %v937_v35 = vsel %vm935_vm8, 6, %v929_v33  ;;  %v936_v36 = vsel %vm935_vm8, %v934_v30, %v928_v32 }
 0x204   :  { %1411 = vst.msk [vmem:[%s2096_s7 + $0x48] sm:$0xff] %vm35_vm0, %v937_v35  ;;  %v944_v38 = vadd.f32 %v942_v34, %v936_v36 }
 0x206   :  { %v951_v39 = vsel %vm950_vm9, %v944_v38, %v882_v56 }
 0x207   :  { %v957_v40 = vrot.slane %v951_v39, %v1641_v62  ;;  %v962_v41 = vrot.slane %v951_v39, %v1635_v59  ;;  %v970_v42 = vrot.slane %v951_v39, %v1638_v61  ;;  %v978_v46 = vrot.slane %v951_v39, %v1652_v6 }
 0x208   :  { %v986_v48 = vrot.slane %v951_v39, %v1649_v5  ;;  %v994_v52 = vrot.slane %v951_v39, %v1664_v14  ;;  %v1002_v57 = vrot.slane %v951_v39, %v1668_v17 }
 0x209   :  { %v958_v44 = vadd.f32 %v957_v40, %v1657_v9  ;;  %v963_v45 = vadd.f32 %v962_v41, %v1644_v0  ;;  %v971_v47 = vadd.f32 %v970_v42, %v1655_v8  ;;  %v979_v51 = vadd.f32 %v978_v46, %v1672_v19 }
 0x20a   :  { %v987_v56 = vadd.f32 %v986_v48, %v1670_v18  ;;  %v995_v63 = vadd.f32 %v994_v52, %v1678_v1  ;;  %v1003_v7 = vadd.f32 %v1002_v57, %v1681_v31  ;;  %v1083_v40 = vsel %vm1078_vm4, 1, %v1490_v37 }
 0x20b   :  { %vm964_vm10 = vcmp.gt.f32.partialorder %v963_v45, %v958_v44  ;;  %v1087_v46 = vrot.slane %v1083_v40, %v1641_v62 }
 0x20c   :  { %v965_v49 = vsel %vm964_vm10, %v963_v45, %v958_v44  ;;  %v966_v50 = vsel %vm964_vm10, 1, %v1490_v37 }
 0x20d   :  { %vm972_vm12 = vcmp.gt.f32.partialorder %v971_v47, %v965_v49  ;;  %vm1088_vm10 = vcmp.eq.s32.totalorder %v1087_v46, 1 }
 0x20e   :  { %v973_v53 = vsel %vm972_vm12, %v971_v47, %v965_v49  ;;  %v974_v54 = vsel %vm972_vm12, 2, %v966_v50  ;;  %v1080_v50 = vpop.permute.xlu0 %1079 }
 0x20f   :  { %vm980_vm13 = vcmp.gt.f32.partialorder %v979_v51, %v973_v53 }
 0x210   :  { %v981_v58 = vsel %vm980_vm13, %v979_v51, %v973_v53  ;;  %v982_v60 = vsel %vm980_vm13, 3, %v974_v54 }
 0x211   :  { %vm988_vm14 = vcmp.gt.f32.partialorder %v987_v56, %v981_v58 }
 0x212   :  { %v989_v3 = vsel %vm988_vm14, %v987_v56, %v981_v58  ;;  %v990_v4 = vsel %vm988_vm14, 4, %v982_v60  ;;  %v1416_v58 = vld [vmem:[%s2091_s2 + $0xc] sm:$0x1] }
 0x213   :  { %vm996_vm15 = vcmp.gt.f32.partialorder %v995_v63, %v989_v3  ;;  %vm1147_vm12 = vcmp.gt.f32.partialorder %v1416_v58, 0.0 }
 0x214   :  { %v997_v10 = vsel %vm996_vm15, %v995_v63, %v989_v3  ;;  %v998_v11 = vsel %vm996_vm15, 5, %v990_v4 }
 0x215   :  { %vm1004_vm1 = vcmp.gt.f32.partialorder %v1003_v7, %v997_v10 }
 0x216   :  { %v1005_v13 = vsel %vm1004_vm1, %v1003_v7, %v997_v10  ;;  %v1006_v15 = vsel %vm1004_vm1, 6, %v998_v11 }
 0x217   :  { %1413 = vst.msk [vmem:[%s2096_s7 + $0x50] sm:$0xff] %vm35_vm0, %v1006_v15  ;;  %v1013_v16 = vadd.f32 %v1011_v12, %v1005_v13 }
 0x219   :  { %v1020_v20 = vsel %vm1019_vm2, %v1013_v16, %v951_v39  ;;  %v1152_v16 = vsel %vm1147_vm12, 1, %v1490_v37 }
 0x21a   :  { %v1026_v21 = vrot.slane %v1020_v20, %v1641_v62  ;;  %v1031_v22 = vrot.slane %v1020_v20, %v1635_v59  ;;  %v1039_v23 = vrot.slane %v1020_v20, %v1638_v61  ;;  %v1047_v26 = vrot.slane %v1020_v20, %v1652_v6 }
 0x21b   :  { %v1055_v29 = vrot.slane %v1020_v20, %v1649_v5  ;;  %v1063_v34 = vrot.slane %v1020_v20, %v1664_v14  ;;  %v1071_v39 = vrot.slane %v1020_v20, %v1668_v17 }
 0x21c   :  { %v1027_v24 = vadd.f32 %v1026_v21, %v1657_v9  ;;  %v1032_v25 = vadd.f32 %v1031_v22, %v1644_v0  ;;  %v1040_v28 = vadd.f32 %v1039_v23, %v1655_v8  ;;  %v1048_v33 = vadd.f32 %v1047_v26, %v1672_v19 }
 0x21d   :  { %v1056_v38 = vadd.f32 %v1055_v29, %v1670_v18  ;;  %v1064_v43 = vadd.f32 %v1063_v34, %v1678_v1  ;;  %v1072_v47 = vadd.f32 %v1071_v39, %v1681_v31 }
 0x21e   :  { %vm1033_vm3 = vcmp.gt.f32.partialorder %v1032_v25, %v1027_v24 }
 0x21f   :  { %v1034_v30 = vsel %vm1033_vm3, %v1032_v25, %v1027_v24  ;;  %v1035_v32 = vsel %vm1033_vm3, 1, %v1490_v37  ;;  %v1156_v25 = vrot.slane %v1152_v16, %v1641_v62 }
 0x220   :  { %vm1041_vm5 = vcmp.gt.f32.partialorder %v1040_v28, %v1034_v30 }
 0x221   :  { %v1042_v35 = vsel %vm1041_vm5, %v1040_v28, %v1034_v30  ;;  %v1043_v36 = vsel %vm1041_vm5, 2, %v1035_v32  ;;  %vm1157_vm3 = vcmp.eq.s32.totalorder %v1156_v25, 1  ;;  %v1149_v32 = vpop.permute.xlu1 %1148 }
 0x222   :  { %vm1049_vm6 = vcmp.gt.f32.partialorder %v1048_v33, %v1042_v35 }
 0x223   :  { %v1050_v41 = vsel %vm1049_vm6, %v1048_v33, %v1042_v35  ;;  %v1051_v42 = vsel %vm1049_vm6, 3, %v1043_v36 }
 0x224   :  { %vm1057_vm7 = vcmp.gt.f32.partialorder %v1056_v38, %v1050_v41 }
 0x225   :  { %v1058_v44 = vsel %vm1057_vm7, %v1056_v38, %v1050_v41  ;;  %v1059_v45 = vsel %vm1057_vm7, 4, %v1051_v42 }
 0x226   :  { %vm1065_vm8 = vcmp.gt.f32.partialorder %v1064_v43, %v1058_v44 }
 0x227   :  { %v1066_v48 = vsel %vm1065_vm8, %v1064_v43, %v1058_v44  ;;  %v1067_v49 = vsel %vm1065_vm8, 5, %v1059_v45  ;;  %v1418_v44 = vld [vmem:[%s2091_s2 + $0xd] sm:$0x1] }
 0x228   :  { %vm1073_vm9 = vcmp.gt.f32.partialorder %v1072_v47, %v1066_v48  ;;  %vm1216_vm5 = vcmp.gt.f32.partialorder %v1418_v44, 0.0 }
 0x229   :  { %v1075_v51 = vsel %vm1073_vm9, 6, %v1067_v49  ;;  %v1074_v52 = vsel %vm1073_vm9, %v1072_v47, %v1066_v48 }
 0x22a   :  { %1415 = vst.msk [vmem:[%s2096_s7 + $0x58] sm:$0xff] %vm35_vm0, %v1075_v51  ;;  %v1082_v53 = vadd.f32 %v1080_v50, %v1074_v52 }
 0x22c   :  { %v1089_v54 = vsel %vm1088_vm10, %v1082_v53, %v1020_v20 }
 0x22d   :  { %v1095_v55 = vrot.slane %v1089_v54, %v1641_v62  ;;  %v1100_v56 = vrot.slane %v1089_v54, %v1635_v59  ;;  %v1108_v57 = vrot.slane %v1089_v54, %v1638_v61  ;;  %v1116_v2 = vrot.slane %v1089_v54, %v1652_v6 }
 0x22e   :  { %v1124_v4 = vrot.slane %v1089_v54, %v1649_v5  ;;  %v1132_v12 = vrot.slane %v1089_v54, %v1664_v14  ;;  %v1140_v21 = vrot.slane %v1089_v54, %v1668_v17 }
 0x22f   :  { %v1096_v60 = vadd.f32 %v1095_v55, %v1657_v9  ;;  %v1101_v63 = vadd.f32 %v1100_v56, %v1644_v0  ;;  %v1109_v3 = vadd.f32 %v1108_v57, %v1655_v8  ;;  %v1117_v11 = vadd.f32 %v1116_v2, %v1672_v19 }
 0x230   :  { %v1125_v20 = vadd.f32 %v1124_v4, %v1670_v18  ;;  %v1133_v24 = vadd.f32 %v1132_v12, %v1678_v1  ;;  %v1141_v28 = vadd.f32 %v1140_v21, %v1681_v31  ;;  %v1221_v55 = vsel %vm1216_vm5, 1, %v1490_v37 }
 0x231   :  { %vm1102_vm11 = vcmp.gt.f32.partialorder %v1101_v63, %v1096_v60  ;;  %v1225_v2 = vrot.slane %v1221_v55, %v1641_v62 }
 0x232   :  { %v1103_v7 = vsel %vm1102_vm11, %v1101_v63, %v1096_v60  ;;  %v1104_v10 = vsel %vm1102_vm11, 1, %v1490_v37 }
 0x233   :  { %vm1110_vm13 = vcmp.gt.f32.partialorder %v1109_v3, %v1103_v7  ;;  %vm1226_vm11 = vcmp.eq.s32.totalorder %v1225_v2, 1 }
 0x234   :  { %v1111_v13 = vsel %vm1110_vm13, %v1109_v3, %v1103_v7  ;;  %v1112_v15 = vsel %vm1110_vm13, 2, %v1104_v10  ;;  %v1218_v10 = vpop.permute.xlu0 %1217 }
 0x235   :  { %vm1118_vm14 = vcmp.gt.f32.partialorder %v1117_v11, %v1111_v13 }
 0x236   :  { %v1119_v22 = vsel %vm1118_vm14, %v1117_v11, %v1111_v13  ;;  %v1120_v23 = vsel %vm1118_vm14, 3, %v1112_v15 }
 0x237   :  { %vm1126_vm15 = vcmp.gt.f32.partialorder %v1125_v20, %v1119_v22 }
 0x238   :  { %v1127_v26 = vsel %vm1126_vm15, %v1125_v20, %v1119_v22  ;;  %v1128_v27 = vsel %vm1126_vm15, 4, %v1120_v23  ;;  %v1420_v22 = vld [vmem:[%s2091_s2 + $0xe] sm:$0x1] }
 0x239   :  { %vm1134_vm1 = vcmp.gt.f32.partialorder %v1133_v24, %v1127_v26  ;;  %vm1285_vm13 = vcmp.gt.f32.partialorder %v1420_v22, 0.0 }
 0x23a   :  { %v1135_v29 = vsel %vm1134_vm1, %v1133_v24, %v1127_v26  ;;  %v1136_v30 = vsel %vm1134_vm1, 5, %v1128_v27 }
 0x23b   :  { %vm1142_vm2 = vcmp.gt.f32.partialorder %v1141_v28, %v1135_v29 }
 0x23c   :  { %v1143_v33 = vsel %vm1142_vm2, %v1141_v28, %v1135_v29  ;;  %v1144_v34 = vsel %vm1142_vm2, 6, %v1136_v30 }
 0x23d   :  { %1417 = vst.msk [vmem:[%s2096_s7 + $0x60] sm:$0xff] %vm35_vm0, %v1144_v34  ;;  %v1151_v35 = vadd.f32 %v1149_v32, %v1143_v33 }
 0x23f   :  { %v1158_v36 = vsel %vm1157_vm3, %v1151_v35, %v1089_v54  ;;  %v1290_v35 = vsel %vm1285_vm13, 1, %v1490_v37 }
 0x240   :  { %v1164_v38 = vrot.slane %v1158_v36, %v1641_v62  ;;  %v1169_v39 = vrot.slane %v1158_v36, %v1635_v59  ;;  %v1177_v40 = vrot.slane %v1158_v36, %v1638_v61  ;;  %v1185_v43 = vrot.slane %v1158_v36, %v1652_v6 }
 0x241   :  { %v1193_v46 = vrot.slane %v1158_v36, %v1649_v5  ;;  %v1201_v50 = vrot.slane %v1158_v36, %v1664_v14  ;;  %v1209_v54 = vrot.slane %v1158_v36, %v1668_v17 }
 0x242   :  { %v1165_v41 = vadd.f32 %v1164_v38, %v1657_v9  ;;  %v1170_v42 = vadd.f32 %v1169_v39, %v1644_v0  ;;  %v1178_v45 = vadd.f32 %v1177_v40, %v1655_v8  ;;  %v1186_v49 = vadd.f32 %v1185_v43, %v1672_v19 }
 0x243   :  { %v1194_v53 = vadd.f32 %v1193_v46, %v1670_v18  ;;  %v1202_v58 = vadd.f32 %v1201_v50, %v1678_v1  ;;  %v1210_v3 = vadd.f32 %v1209_v54, %v1681_v31 }
 0x244   :  { %vm1171_vm4 = vcmp.gt.f32.partialorder %v1170_v42, %v1165_v41 }
 0x245   :  { %v1172_v47 = vsel %vm1171_vm4, %v1170_v42, %v1165_v41  ;;  %v1173_v48 = vsel %vm1171_vm4, 1, %v1490_v37  ;;  %v1294_v42 = vrot.slane %v1290_v35, %v1641_v62 }
 0x246   :  { %vm1179_vm6 = vcmp.gt.f32.partialorder %v1178_v45, %v1172_v47 }
 0x247   :  { %v1180_v51 = vsel %vm1179_vm6, %v1178_v45, %v1172_v47  ;;  %v1181_v52 = vsel %vm1179_vm6, 2, %v1173_v48  ;;  %vm1295_vm4 = vcmp.eq.s32.totalorder %v1294_v42, 1  ;;  %v1287_v48 = vpop.permute.xlu1 %1286 }
 0x248   :  { %vm1187_vm7 = vcmp.gt.f32.partialorder %v1186_v49, %v1180_v51 }
 0x249   :  { %v1188_v56 = vsel %vm1187_vm7, %v1186_v49, %v1180_v51  ;;  %v1189_v57 = vsel %vm1187_vm7, 3, %v1181_v52 }
 0x24a   :  { %vm1195_vm8 = vcmp.gt.f32.partialorder %v1194_v53, %v1188_v56 }
 0x24b   :  { %v1196_v60 = vsel %vm1195_vm8, %v1194_v53, %v1188_v56  ;;  %v1197_v63 = vsel %vm1195_vm8, 4, %v1189_v57  ;;  %v1422_v56 = vld [vmem:[%s2091_s2 + $0xf] sm:$0x1] }
 0x24c   :  { %vm1203_vm9 = vcmp.gt.f32.partialorder %v1202_v58, %v1196_v60  ;;  %vm1354_vm6 = vcmp.gt.f32.partialorder %v1422_v56, 0.0 }
 0x24d   :  { %v1204_v4 = vsel %vm1203_vm9, %v1202_v58, %v1196_v60  ;;  %v1205_v7 = vsel %vm1203_vm9, 5, %v1197_v63 }
 0x24e   :  { %vm1211_vm10 = vcmp.gt.f32.partialorder %v1210_v3, %v1204_v4 }
 0x24f   :  { %v1213_v11 = vsel %vm1211_vm10, 6, %v1205_v7  ;;  %v1212_v12 = vsel %vm1211_vm10, %v1210_v3, %v1204_v4 }
 0x250   :  { %1419 = vst.msk [vmem:[%s2096_s7 + $0x68] sm:$0xff] %vm35_vm0, %v1213_v11  ;;  %v1220_v13 = vadd.f32 %v1218_v10, %v1212_v12 }
 0x252   :  { %v1227_v15 = vsel %vm1226_vm11, %v1220_v13, %v1158_v36 }
 0x253   :  { %v1233_v16 = vrot.slane %v1227_v15, %v1641_v62  ;;  %v1238_v20 = vrot.slane %v1227_v15, %v1635_v59  ;;  %v1246_v21 = vrot.slane %v1227_v15, %v1638_v61  ;;  %v1254_v25 = vrot.slane %v1227_v15, %v1652_v6 }
 0x254   :  { %v1262_v27 = vrot.slane %v1227_v15, %v1649_v5  ;;  %v1270_v32 = vrot.slane %v1227_v15, %v1664_v14  ;;  %v1278_v38 = vrot.slane %v1227_v15, %v1668_v17 }
 0x255   :  { %v1234_v23 = vadd.f32 %v1233_v16, %v1657_v9  ;;  %v1239_v24 = vadd.f32 %v1238_v20, %v1644_v0  ;;  %v1247_v26 = vadd.f32 %v1246_v21, %v1655_v8  ;;  %v1255_v30 = vadd.f32 %v1254_v25, %v1672_v19 }
 0x256   :  { %v1263_v36 = vadd.f32 %v1262_v27, %v1670_v18  ;;  %v1271_v41 = vadd.f32 %v1270_v32, %v1678_v1  ;;  %v1279_v45 = vadd.f32 %v1278_v38, %v1681_v31 }
 0x257   :  { %vm1240_vm12 = vcmp.gt.f32.partialorder %v1239_v24, %v1234_v23 }
 0x258   :  { %v1241_v28 = vsel %vm1240_vm12, %v1239_v24, %v1234_v23  ;;  %v1242_v29 = vsel %vm1240_vm12, 1, %v1490_v37 }
 0x259   :  { %vm1248_vm14 = vcmp.gt.f32.partialorder %v1247_v26, %v1241_v28 }
 0x25a   :  { %v1249_v33 = vsel %vm1248_vm14, %v1247_v26, %v1241_v28  ;;  %v1250_v34 = vsel %vm1248_vm14, 2, %v1242_v29 }
 0x25b   :  { %vm1256_vm15 = vcmp.gt.f32.partialorder %v1255_v30, %v1249_v33 }
 0x25c   :  { %v1257_v39 = vsel %vm1256_vm15, %v1255_v30, %v1249_v33  ;;  %v1258_v40 = vsel %vm1256_vm15, 3, %v1250_v34 }
 0x25d   :  { %vm1264_vm1 = vcmp.gt.f32.partialorder %v1263_v36, %v1257_v39 }
 0x25e   :  { %v1265_v43 = vsel %vm1264_vm1, %v1263_v36, %v1257_v39  ;;  %v1266_v44 = vsel %vm1264_vm1, 4, %v1258_v40 }
 0x25f   :  { %vm1272_vm2 = vcmp.gt.f32.partialorder %v1271_v41, %v1265_v43 }
 0x260   :  { %v1273_v46 = vsel %vm1272_vm2, %v1271_v41, %v1265_v43  ;;  %v1274_v47 = vsel %vm1272_vm2, 5, %v1266_v44 }
 0x261   :  { %vm1280_vm3 = vcmp.gt.f32.partialorder %v1279_v45, %v1273_v46 }
 0x262   :  { %v1281_v49 = vsel %vm1280_vm3, %v1279_v45, %v1273_v46  ;;  %v1282_v50 = vsel %vm1280_vm3, 6, %v1274_v47 }
 0x263   :  { %1421 = vst.msk [vmem:[%s2096_s7 + $0x70] sm:$0xff] %vm35_vm0, %v1282_v50  ;;  %v1289_v51 = vadd.f32 %v1287_v48, %v1281_v49 }
 0x265   :  { %v1296_v52 = vsel %vm1295_vm4, %v1289_v51, %v1227_v15 }
 0x266   :  { %v1302_v53 = vrot.slane %v1296_v52, %v1641_v62  ;;  %v1307_v54 = vrot.slane %v1296_v52, %v1635_v59  ;;  %v1315_v55 = vrot.slane %v1296_v52, %v1638_v61  ;;  %v1323_v60 = vrot.slane %v1296_v52, %v1652_v6 }
 0x267   :  { %v1331_v2 = vrot.slane %v1296_v52, %v1649_v5  ;;  %v1339_v4 = vrot.slane %v1296_v52, %v1664_v14 }
 0x268   :  { %v1303_v57 = vadd.f32 %v1302_v53, %v1657_v9  ;;  %v1308_v58 = vadd.f32 %v1307_v54, %v1644_v0  ;;  %v1316_v63 = vadd.f32 %v1315_v55, %v1655_v8  ;;  %v1324_v61 = vadd.f32 %v1323_v60, %v1672_v19 }
 0x269   :  { %v1359_v0 = vsel %vm1354_vm6, 1, %v1490_v37  ;;  %v1332_v6 = vadd.f32 %v1331_v2, %v1670_v18  ;;  %v1347_v8 = vrot.slane %v1296_v52, %v1668_v17  ;;  %v1340_v11 = vadd.f32 %v1339_v4, %v1678_v1 }
 0x26a   :  { %vm1309_vm5 = vcmp.gt.f32.partialorder %v1308_v58, %v1303_v57  ;;  %v1363_v12 = vrot.slane %v1359_v0, %v1641_v62 }
 0x26b   :  { %v1310_v3 = vsel %vm1309_vm5, %v1308_v58, %v1303_v57  ;;  %v1311_v59 = vsel %vm1309_vm5, 1, %v1490_v37  ;;  %v1348_v14 = vadd.f32 %v1347_v8, %v1681_v31  ;;  %v1356_v37 = vpop.permute.xlu0 %1355 }
 0x26c   :  { %vm1317_vm7 = vcmp.gt.f32.partialorder %v1316_v63, %v1310_v3  ;;  %vm1364_vm12 = vcmp.eq.s32.totalorder %v1363_v12, 1 }
 0x26d   :  { %v1318_v7 = vsel %vm1317_vm7, %v1316_v63, %v1310_v3  ;;  %v1319_v9 = vsel %vm1317_vm7, 2, %v1311_v59 }
 0x26e   :  { %vm1325_vm8 = vcmp.gt.f32.partialorder %v1324_v61, %v1318_v7 }
 0x26f   :  { %v1326_v10 = vsel %vm1325_vm8, %v1324_v61, %v1318_v7  ;;  %v1327_v5 = vsel %vm1325_vm8, 3, %v1319_v9 }
 0x270   :  { %vm1333_vm9 = vcmp.gt.f32.partialorder %v1332_v6, %v1326_v10 }
 0x271   :  { %v1334_v13 = vsel %vm1333_vm9, %v1332_v6, %v1326_v10  ;;  %v1335_v19 = vsel %vm1333_vm9, 4, %v1327_v5 }
 0x272   :  { %vm1341_vm10 = vcmp.gt.f32.partialorder %v1340_v11, %v1334_v13 }
 0x273   :  { %v1342_v15 = vsel %vm1341_vm10, %v1340_v11, %v1334_v13  ;;  %v1343_v16 = vsel %vm1341_vm10, 5, %v1335_v19 }
 0x274   :  { %vm1349_vm11 = vcmp.gt.f32.partialorder %v1348_v14, %v1342_v15 }
 0x275   :  { %v1350_v18 = vsel %vm1349_vm11, %v1348_v14, %v1342_v15  ;;  %v1351_v20 = vsel %vm1349_vm11, 6, %v1343_v16 }
 0x276   :  { %1423 = vst.msk [vmem:[%s2096_s7 + $0x78] sm:$0xff] %vm35_vm0, %v1351_v20  ;;  %v1358_v17 = vadd.f32 %v1356_v37, %v1350_v18 }
 0x278   :  { %v1365_v1 = vsel %vm1364_vm12, %v1358_v17, %v1296_v52 }
 0x279   :  { %1366 = vst.msk [vmem:[#allocation2] sm:$0xff] %vm35_vm0, %v1365_v1 }
 0x27a PF:  { %v1371_v62 = vld [vmem:[%s2095_s6] sm:$0xff]  ;;  %v1511_v31 = vmov 0  }
 0x27b   :  { %1483 = vset.pattern.permute.xlu0 %v1511_v31 }
 0x27c   :  { %1374 = vperm.xlu0 %1483, %v1371_v62  }
 0x280   :  { %v1370_v21 = vld [vmem:[#allocation2] sm:$0xff] }
 0x2fb   :  { %v1375_v22 = vpop.permute.xlu0 %1374 }
 0x2fc   :  { %v1377_v23 = vadd.f32 %v1375_v22, %v1370_v21 }
 0x2fe   :  { %1379 = vst.msk [vmem:[%s2097_s8] sm:$0xff] %vm35_vm0, %v1377_v23 }

</bundles_post_ra>
